<compile_context>
chip_gen: v6e
topology: v6e:2x2x1
jax: 0.10.0
libtpu: 0.0.40
codegen_flags: <defaults>
</compile_context>

<pallas_src>
import jax
import jax.numpy as jnp
from jax.experimental import pallas as pl
from jax.experimental.pallas import tpu as pltpu


def _make_kernel(batch_tile, H, W, Chid, Cout):
    rows = batch_tile * H * W

    def kernel(x_ref, w1d_ref, b1_ref, w2_ref, w3_ref, bf_ref, o_ref, pad_ref):
        # x_ref  : (rows, Cin)                 bf16
        # w1d_ref: (Cin, Chid + Cout)          bf16   [conv1 | downsample], BN folded
        # b1_ref : (1, Chid)                   f32    folded BN1 bias
        # w2_ref : (3, 3, Chid, Chid)          bf16   BN2-folded 3x3 weights
        # w3_ref : (Chid, Cout)                bf16   BN3-folded 1x1 weights
        # bf_ref : (1, Cout)                   f32    b3 + bd + b2 @ w3 (exact fold)
        # o_ref  : (rows, Cout)                f32
        # pad_ref: (batch_tile, H+2, W+2, Chid) f32 VMEM scratch (persistent)

        # Zero only the 1-pixel halo, and only once.  Safe because the interior
        # is fully overwritten every grid step and the scratch persists across
        # steps (grid axis is "arbitrary"/sequential).
        @pl.when(pl.program_id(0) == 0)
        def _zero_halo():
            zr = jnp.zeros((batch_tile, 1, W + 2, Chid), jnp.float32)
            zc = jnp.zeros((batch_tile, H + 2, 1, Chid), jnp.float32)
            pad_ref[:, 0:1, :, :] = zr
            pad_ref[:, H + 1:H + 2, :, :] = zr
            pad_ref[:, :, 0:1, :] = zc
            pad_ref[:, :, W + 1:W + 2, :] = zc

        x2 = x_ref[...]                                        # (rows, Cin) bf16

        # ---- fused conv1 + downsample 1x1: one MXU pass over x2 ----
        yf = jnp.dot(x2, w1d_ref[...], preferred_element_type=jnp.float32)
        y1 = yf[:, :Chid] + b1_ref[...]                        # BN1 output (f32)
        yd = yf[:, Chid:Chid + Cout]                           # downsample branch

        # ---- conv2: 3x3, stride 1, pad 1 ----
        # Write BN1 output into the padded scratch, then accumulate the 9 taps
        # as shifted-window matmuls.  The dx shifts slice the W (sublane) axis,
        # so those 3 views are built once, outside the tap loop.
        pad_ref[:, 1:H + 1, 1:W + 1, :] = y1.reshape(batch_tile, H, W, Chid)
        p = pad_ref[...]                                       # (B, H+2, W+2, Chid)
        shifted = [p[:, :, dx:dx + W, :] for dx in range(3)]   # (B, H+2, W, Chid)

        y2 = None
        for dy in range(3):
            for dx in range(3):
                patch = shifted[dx][:, dy:dy + H, :, :].reshape(rows, Chid)
                tap = jnp.dot(patch.astype(jnp.bfloat16), w2_ref[dy, dx],
                              preferred_element_type=jnp.float32)
                y2 = tap if y2 is None else y2 + tap           # (rows, Chid) f32

        # ---- conv3 1x1 + residual add + folded biases + ReLU ----
        y3 = jnp.dot(y2.astype(jnp.bfloat16), w3_ref[...],
                     preferred_element_type=jnp.float32)       # (rows, Cout)
        out = jnp.maximum(y3 + yd + bf_ref[...], 0.0)
        o_ref[...] = out.astype(o_ref.dtype)

    return kernel


def _fold_bn_1x1(w_oi, bn, eps=1e-5):
    """w_oi: (O, I) 1x1 conv weight; bn = (gamma, beta, mean, var) each (O,)."""
    gamma, beta, mean, var = bn
    scale = gamma * jax.lax.rsqrt(var + eps)          # (O,)
    w_io = (w_oi * scale[:, None]).T                  # (I, O), BN folded in
    bias = beta - mean * scale                        # (O,)
    return w_io, bias


def _pick_batch_tile(n, h, w, cin, chid, cout, budget_bytes=6 << 20):
    """Largest divisor of n whose live activations + pad scratch fit a budget."""
    per_image = 4 * h * w * (cin + 3 * chid + 3 * cout) \
        + 4 * (h + 2) * (w + 2) * chid
    bt = int(max(1, min(n, budget_bytes // max(per_image, 1))))
    while n % bt:
        bt -= 1
    return bt


def bottleneck_forward(x_nchw, params):
    """x_nchw: (N, Cin, H, W) float32. Returns (N, Cout, H, W) float32."""
    N, Cin, H, W = x_nchw.shape
    Chid = params["w1"].shape[0]
    Cout = params["w3"].shape[0]

    # ---- fold eval-mode BN into conv weights/biases (f32), cast MXU operands bf16.
    w1, b1 = _fold_bn_1x1(params["w1"][:, :, 0, 0], params["bn1"])   # (Cin, Chid)
    wd, bd = _fold_bn_1x1(params["wd"][:, :, 0, 0], params["bnd"])   # (Cin, Cout)
    w3, b3 = _fold_bn_1x1(params["w3"][:, :, 0, 0], params["bn3"])   # (Chid, Cout)

    g2, be2, m2, v2 = params["bn2"]
    scale2 = g2 * jax.lax.rsqrt(v2 + 1e-5)
    w2 = jnp.transpose(params["w2"] * scale2[:, None, None, None],
                       (2, 3, 1, 0))                                  # (3,3,Chid,Chid)
    b2 = be2 - m2 * scale2                                            # (Chid,)

    w1d = jnp.concatenate([w1, wd], axis=1).astype(jnp.bfloat16)      # (Cin, Chid+Cout)
    w2b = w2.astype(jnp.bfloat16)
    w3b = w3.astype(jnp.bfloat16)
    b1r = b1.reshape(1, Chid).astype(jnp.float32)
    # conv3 is 1x1 -> BN2 bias folds exactly through it; downsample bias folds
    # into the same final bias (it is only added before the ReLU).
    bfr = (b3 + bd + b2 @ w3).reshape(1, Cout).astype(jnp.float32)

    # ---- layout plumbing in XLA (not in the kernel): NCHW -> flattened NHWC rows.
    x_rows = jnp.transpose(x_nchw, (0, 2, 3, 1)).reshape(N * H * W, Cin)
    x_rows = x_rows.astype(jnp.bfloat16)

    bt = _pick_batch_tile(N, H, W, Cin, Chid, Cout)
    rows = bt * H * W
    kernel = _make_kernel(bt, H, W, Chid, Cout)

    out_rows = pl.pallas_call(
        kernel,
        out_shape=jax.ShapeDtypeStruct((N * H * W, Cout), jnp.float32),
        grid_spec=pltpu.PrefetchScalarGridSpec(
            num_scalar_prefetch=0,
            grid=(N // bt,),                       # batch tiles per step
            in_specs=[
                pl.BlockSpec((rows, Cin), lambda n: (n, 0)),               # x rows
                pl.BlockSpec((Cin, Chid + Cout), lambda n: (0, 0)),        # [w1|wd]
                pl.BlockSpec((1, Chid), lambda n: (0, 0)),                 # b1
                pl.BlockSpec((3, 3, Chid, Chid), lambda n: (0, 0, 0, 0)),  # w2
                pl.BlockSpec((Chid, Cout), lambda n: (0, 0)),              # w3
                pl.BlockSpec((1, Cout), lambda n: (0, 0)),                 # final bias
            ],
            out_specs=pl.BlockSpec((rows, Cout), lambda n: (n, 0)),
            scratch_shapes=[pltpu.VMEM((bt, H + 2, W + 2, Chid), jnp.float32)],
        ),
        # "arbitrary": the persistent pad scratch's halo is zeroed only at step
        # 0, so grid steps must execute sequentially on one core.
        compiler_params=pltpu.CompilerParams(
            dimension_semantics=("arbitrary",)),
    )(x_rows, w1d, b1r, w2b, w3b, bfr)

    out = out_rows.reshape(N, H, W, Cout)
    return jnp.transpose(out, (0, 3, 1, 2))       # NHWC rows -> NCHW


# ----------------------------- reference (plain JAX, NCHW like PyTorch) ------
def ref_bottleneck(x_nchw, p):
    def conv(x, w, stride, pad):
        return jax.lax.conv_general_dilated(
            x, w, (stride, stride), [(pad, pad), (pad, pad)],
            dimension_numbers=("NCHW", "OIHW", "NCHW"),
            precision=jax.lax.Precision.HIGHEST)

    def bn(x, prm, eps=1e-5):
        g, b, m, v = prm
        sc = g * jax.lax.rsqrt(v + eps)
        return x * sc[None, :, None, None] + (b - m * sc)[None, :, None, None]

    y = bn(conv(x_nchw, p["w1"], 1, 0), p["bn1"])
    y = bn(conv(y, p["w2"], 1, 1), p["bn2"])
    y = bn(conv(y, p["w3"], 1, 0), p["bn3"])
    d = bn(conv(x_nchw, p["wd"], 1, 0), p["bnd"])
    return jnp.maximum(y + d, 0.0)


def _make_bn_params(key, c):
    k1, k2, k3, k4 = jax.random.split(key, 4)
    gamma = 0.5 + jax.random.uniform(k1, (c,), jnp.float32)
    beta = 0.1 * jax.random.normal(k2, (c,), jnp.float32)
    mean = 0.1 * jax.random.normal(k3, (c,), jnp.float32)
    var = 0.5 + jax.random.uniform(k4, (c,), jnp.float32)
    return (gamma, beta, mean, var)


if __name__ == "__main__":
    # Bottleneck.Config(in_planes=4, hid_planes=8, out_planes=16,
    #                   downsample_by=1, conv_groups=1, norm=BatchNorm2d)
    N, Cin, Chid, Cout, H, W = 2, 4, 8, 16, 16, 16

    key = jax.random.PRNGKey(0)
    ks = jax.random.split(key, 9)
    params = {
        "w1": 0.2 * jax.random.normal(ks[0], (Chid, Cin, 1, 1), jnp.float32),
        "w2": 0.2 * jax.random.normal(ks[1], (Chid, Chid, 3, 3), jnp.float32),
        "w3": 0.2 * jax.random.normal(ks[2], (Cout, Chid, 1, 1), jnp.float32),
        "wd": 0.2 * jax.random.normal(ks[3], (Cout, Cin, 1, 1), jnp.float32),
        "bn1": _make_bn_params(ks[4], Chid),
        "bn2": _make_bn_params(ks[5], Chid),
        "bn3": _make_bn_params(ks[6], Cout),
        "bnd": _make_bn_params(ks[7], Cout),
    }
    x = jax.random.normal(ks[8], (N, Cin, H, W), jnp.float32)

    out = bottleneck_forward(x, params)
    out = jax.block_until_ready(out)

    assert out.shape == (N, Cout, H, W), out.shape
    ref = ref_bottleneck(x, params)
    # Tolerance loosened slightly vs. the pure-f32 version because the MXU
    # operands are bf16 (f32 accumulation), per the performance review.
    assert jnp.allclose(out, ref, atol=2e-2, rtol=2e-2), float(
        jnp.max(jnp.abs(out - ref)))

    print("KERNEL_OK")
</pallas_src>

<mosaic_0001>
module attributes {stable_mosaic.version = 11 : i64} {
  func.func @kernel(%arg0: i32, %arg1: memref<512x4xbf16, #tpu.memory_space<vmem>>, %arg2: memref<4x24xbf16, #tpu.memory_space<vmem>>, %arg3: memref<1x8xf32, #tpu.memory_space<vmem>>, %arg4: memref<3x3x8x8xbf16, #tpu.memory_space<vmem>>, %arg5: memref<8x16xbf16, #tpu.memory_space<vmem>>, %arg6: memref<1x16xf32, #tpu.memory_space<vmem>>, %arg7: memref<512x16xf32, #tpu.memory_space<vmem>>, %arg8: memref<2x18x18x8xf32, #tpu.memory_space<vmem>>) attributes {dimension_semantics = [#tpu.dimension_semantics<arbitrary>], iteration_bounds = array<i64: 1>, scalar_prefetch = 0 : i64, scratch_operands = 1 : i64, tpu.core_type = #tpu.core_type<tc>, window_params = [{transform_indices = @transform_0, window_bounds = array<i64: 512, 4>}, {pipeline_mode = #tpu.pipeline_mode<synchronous>, transform_indices = @transform_1, window_bounds = array<i64: 4, 24>}, {pipeline_mode = #tpu.pipeline_mode<synchronous>, transform_indices = @transform_2, window_bounds = array<i64: 1, 8>}, {pipeline_mode = #tpu.pipeline_mode<synchronous>, transform_indices = @transform_3, window_bounds = array<i64: 3, 3, 8, 8>}, {pipeline_mode = #tpu.pipeline_mode<synchronous>, transform_indices = @transform_4, window_bounds = array<i64: 8, 16>}, {pipeline_mode = #tpu.pipeline_mode<synchronous>, transform_indices = @transform_5, window_bounds = array<i64: 1, 16>}, {transform_indices = @transform_6, window_bounds = array<i64: 512, 16>}]} {
    %c0_i32 = arith.constant 0 : i32
    %0 = arith.cmpi eq, %arg0, %c0_i32 : i32
    %1 = arith.extui %0 : i1 to i32
    %c0_i32_0 = arith.constant 0 : i32
    %2 = arith.cmpi ne, %1, %c0_i32_0 : i32
    scf.if %2 {
      %cst_65 = arith.constant 0.000000e+00 : f32
      %89 = vector.broadcast %cst_65 : f32 to vector<2x1x18x8xf32>
      %cst_66 = arith.constant 0.000000e+00 : f32
      %90 = vector.broadcast %cst_66 : f32 to vector<2x18x1x8xf32>
      %c0_67 = arith.constant 0 : index
      %c0_68 = arith.constant 0 : index
      %c0_69 = arith.constant 0 : index
      %c0_70 = arith.constant 0 : index
      %91 = vector.load %arg8[%c0_67, %c0_68, %c0_69, %c0_70] : memref<2x18x18x8xf32, #tpu.memory_space<vmem>>, vector<2x1x18x8xf32>
      tpu.vector_store %arg8[%c0_67, %c0_68, %c0_69, %c0_70], %89 {strides = array<i32>} : memref<2x18x18x8xf32, #tpu.memory_space<vmem>>, vector<2x1x18x8xf32>,
      %c0_71 = arith.constant 0 : index
      %c17 = arith.constant 17 : index
      %c0_72 = arith.constant 0 : index
      %c0_73 = arith.constant 0 : index
      %92 = vector.load %arg8[%c0_71, %c17, %c0_72, %c0_73] : memref<2x18x18x8xf32, #tpu.memory_space<vmem>>, vector<2x1x18x8xf32>
      tpu.vector_store %arg8[%c0_71, %c17, %c0_72, %c0_73], %89 {strides = array<i32>} : memref<2x18x18x8xf32, #tpu.memory_space<vmem>>, vector<2x1x18x8xf32>,
      %c0_74 = arith.constant 0 : index
      %c0_75 = arith.constant 0 : index
      %c0_76 = arith.constant 0 : index
      %c0_77 = arith.constant 0 : index
      %93 = vector.load %arg8[%c0_74, %c0_75, %c0_76, %c0_77] : memref<2x18x18x8xf32, #tpu.memory_space<vmem>>, vector<2x18x1x8xf32>
      tpu.vector_store %arg8[%c0_74, %c0_75, %c0_76, %c0_77], %90 {strides = array<i32>} : memref<2x18x18x8xf32, #tpu.memory_space<vmem>>, vector<2x18x1x8xf32>,
      %c0_78 = arith.constant 0 : index
      %c0_79 = arith.constant 0 : index
      %c17_80 = arith.constant 17 : index
      %c0_81 = arith.constant 0 : index
      %94 = vector.load %arg8[%c0_78, %c0_79, %c17_80, %c0_81] : memref<2x18x18x8xf32, #tpu.memory_space<vmem>>, vector<2x18x1x8xf32>
      tpu.vector_store %arg8[%c0_78, %c0_79, %c17_80, %c0_81], %90 {strides = array<i32>} : memref<2x18x18x8xf32, #tpu.memory_space<vmem>>, vector<2x18x1x8xf32>,
    } else {
    }
    %c0 = arith.constant 0 : index
    %c0_1 = arith.constant 0 : index
    %3 = vector.load %arg1[%c0, %c0_1] : memref<512x4xbf16, #tpu.memory_space<vmem>>, vector<512x4xbf16>
    %c0_2 = arith.constant 0 : index
    %c0_3 = arith.constant 0 : index
    %4 = vector.load %arg2[%c0_2, %c0_3] : memref<4x24xbf16, #tpu.memory_space<vmem>>, vector<4x24xbf16>
    %cst = arith.constant dense<0.000000e+00> : vector<512x24xf32>
    %5 = tpu.matmul %3, %4, %cst {dimension_numbers = #tpu.dot_dimension_numbers<[1], [0], [0], [1], [0, 0, 1, 1], [], []>} : vector<512x4xbf16>, vector<4x24xbf16>, vector<512x24xf32> -> vector<512x24xf32>
    %6 = vector.extract_strided_slice %5 {offsets = [0, 0], sizes = [512, 8], strides = [1, 1]} : vector<512x24xf32> to vector<512x8xf32>
    %c0_4 = arith.constant 0 : index
    %c0_5 = arith.constant 0 : index
    %7 = vector.load %arg3[%c0_4, %c0_5] : memref<1x8xf32, #tpu.memory_space<vmem>>, vector<1x8xf32>
    %8 = vector.broadcast %7 : vector<1x8xf32> to vector<512x8xf32>
    %9 = arith.addf %6, %8 : vector<512x8xf32>
    %10 = vector.extract_strided_slice %5 {offsets = [0, 8], sizes = [512, 16], strides = [1, 1]} : vector<512x24xf32> to vector<512x16xf32>
    %11 = vector.shape_cast %9 : vector<512x8xf32> to vector<2x16x16x8xf32>
    %c0_6 = arith.constant 0 : index
    %c1 = arith.constant 1 : index
    %c1_7 = arith.constant 1 : index
    %c0_8 = arith.constant 0 : index
    %12 = vector.load %arg8[%c0_6, %c1, %c1_7, %c0_8] : memref<2x18x18x8xf32, #tpu.memory_space<vmem>>, vector<2x16x16x8xf32>
    tpu.vector_store %arg8[%c0_6, %c1, %c1_7, %c0_8], %11 {strides = array<i32>} : memref<2x18x18x8xf32, #tpu.memory_space<vmem>>, vector<2x16x16x8xf32>,
    %c0_9 = arith.constant 0 : index
    %c0_10 = arith.constant 0 : index
    %c0_11 = arith.constant 0 : index
    %c0_12 = arith.constant 0 : index
    %13 = vector.load %arg8[%c0_9, %c0_10, %c0_11, %c0_12] : memref<2x18x18x8xf32, #tpu.memory_space<vmem>>, vector<2x18x18x8xf32>
    %14 = vector.extract_strided_slice %13 {offsets = [0, 0, 0, 0], sizes = [2, 18, 16, 8], strides = [1, 1, 1, 1]} : vector<2x18x18x8xf32> to vector<2x18x16x8xf32>
    %15 = vector.extract_strided_slice %13 {offsets = [0, 0, 1, 0], sizes = [2, 18, 16, 8], strides = [1, 1, 1, 1]} : vector<2x18x18x8xf32> to vector<2x18x16x8xf32>
    %16 = vector.extract_strided_slice %13 {offsets = [0, 0, 2, 0], sizes = [2, 18, 16, 8], strides = [1, 1, 1, 1]} : vector<2x18x18x8xf32> to vector<2x18x16x8xf32>
    %17 = vector.extract_strided_slice %14 {offsets = [0, 0, 0, 0], sizes = [2, 16, 16, 8], strides = [1, 1, 1, 1]} : vector<2x18x16x8xf32> to vector<2x16x16x8xf32>
    %18 = vector.shape_cast %17 : vector<2x16x16x8xf32> to vector<512x8xf32>
    %19 = arith.truncf %18 : vector<512x8xf32> to vector<512x8xbf16>
    %c0_13 = arith.constant 0 : index
    %c0_14 = arith.constant 0 : index
    %c0_15 = arith.constant 0 : index
    %c0_16 = arith.constant 0 : index
    %20 = vector.load %arg4[%c0_13, %c0_14, %c0_15, %c0_16] : memref<3x3x8x8xbf16, #tpu.memory_space<vmem>>, vector<1x1x8x8xbf16>
    %21 = vector.shape_cast %20 : vector<1x1x8x8xbf16> to vector<8x8xbf16>
    %cst_17 = arith.constant dense<0.000000e+00> : vector<512x8xf32>
    %22 = tpu.matmul %19, %21, %cst_17 {dimension_numbers = #tpu.dot_dimension_numbers<[1], [0], [0], [1], [0, 0, 1, 1], [], []>} : vector<512x8xbf16>, vector<8x8xbf16>, vector<512x8xf32> -> vector<512x8xf32>
    %23 = vector.extract_strided_slice %15 {offsets = [0, 0, 0, 0], sizes = [2, 16, 16, 8], strides = [1, 1, 1, 1]} : vector<2x18x16x8xf32> to vector<2x16x16x8xf32>
    %24 = vector.shape_cast %23 : vector<2x16x16x8xf32> to vector<512x8xf32>
    %25 = arith.truncf %24 : vector<512x8xf32> to vector<512x8xbf16>
    %c0_18 = arith.constant 0 : index
    %c1_19 = arith.constant 1 : index
    %c0_20 = arith.constant 0 : index
    %c0_21 = arith.constant 0 : index
    %26 = vector.load %arg4[%c0_18, %c1_19, %c0_20, %c0_21] : memref<3x3x8x8xbf16, #tpu.memory_space<vmem>>, vector<1x1x8x8xbf16>
    %27 = vector.shape_cast %26 : vector<1x1x8x8xbf16> to vector<8x8xbf16>
    %cst_22 = arith.constant dense<0.000000e+00> : vector<512x8xf32>
    %28 = tpu.matmul %25, %27, %cst_22 {dimension_numbers = #tpu.dot_dimension_numbers<[1], [0], [0], [1], [0, 0, 1, 1], [], []>} : vector<512x8xbf16>, vector<8x8xbf16>, vector<512x8xf32> -> vector<512x8xf32>
    %29 = arith.addf %22, %28 : vector<512x8xf32>
    %30 = vector.extract_strided_slice %16 {offsets = [0, 0, 0, 0], sizes = [2, 16, 16, 8], strides = [1, 1, 1, 1]} : vector<2x18x16x8xf32> to vector<2x16x16x8xf32>
    %31 = vector.shape_cast %30 : vector<2x16x16x8xf32> to vector<512x8xf32>
    %32 = arith.truncf %31 : vector<512x8xf32> to vector<512x8xbf16>
    %c0_23 = arith.constant 0 : index
    %c2 = arith.constant 2 : index
    %c0_24 = arith.constant 0 : index
    %c0_25 = arith.constant 0 : index
    %33 = vector.load %arg4[%c0_23, %c2, %c0_24, %c0_25] : memref<3x3x8x8xbf16, #tpu.memory_space<vmem>>, vector<1x1x8x8xbf16>
    %34 = vector.shape_cast %33 : vector<1x1x8x8xbf16> to vector<8x8xbf16>
    %cst_26 = arith.constant dense<0.000000e+00> : vector<512x8xf32>
    %35 = tpu.matmul %32, %34, %cst_26 {dimension_numbers = #tpu.dot_dimension_numbers<[1], [0], [0], [1], [0, 0, 1, 1], [], []>} : vector<512x8xbf16>, vector<8x8xbf16>, vector<512x8xf32> -> vector<512x8xf32>
    %36 = arith.addf %29, %35 : vector<512x8xf32>
    %37 = vector.extract_strided_slice %14 {offsets = [0, 1, 0, 0], sizes = [2, 16, 16, 8], strides = [1, 1, 1, 1]} : vector<2x18x16x8xf32> to vector<2x16x16x8xf32>
    %38 = vector.shape_cast %37 : vector<2x16x16x8xf32> to vector<512x8xf32>
    %39 = arith.truncf %38 : vector<512x8xf32> to vector<512x8xbf16>
    %c1_27 = arith.constant 1 : index
    %c0_28 = arith.constant 0 : index
    %c0_29 = arith.constant 0 : index
    %c0_30 = arith.constant 0 : index
    %40 = vector.load %arg4[%c1_27, %c0_28, %c0_29, %c0_30] : memref<3x3x8x8xbf16, #tpu.memory_space<vmem>>, vector<1x1x8x8xbf16>
    %41 = vector.shape_cast %40 : vector<1x1x8x8xbf16> to vector<8x8xbf16>
    %cst_31 = arith.constant dense<0.000000e+00> : vector<512x8xf32>
    %42 = tpu.matmul %39, %41, %cst_31 {dimension_numbers = #tpu.dot_dimension_numbers<[1], [0], [0], [1], [0, 0, 1, 1], [], []>} : vector<512x8xbf16>, vector<8x8xbf16>, vector<512x8xf32> -> vector<512x8xf32>
    %43 = arith.addf %36, %42 : vector<512x8xf32>
    %44 = vector.extract_strided_slice %15 {offsets = [0, 1, 0, 0], sizes = [2, 16, 16, 8], strides = [1, 1, 1, 1]} : vector<2x18x16x8xf32> to vector<2x16x16x8xf32>
    %45 = vector.shape_cast %44 : vector<2x16x16x8xf32> to vector<512x8xf32>
    %46 = arith.truncf %45 : vector<512x8xf32> to vector<512x8xbf16>
    %c1_32 = arith.constant 1 : index
    %c1_33 = arith.constant 1 : index
    %c0_34 = arith.constant 0 : index
    %c0_35 = arith.constant 0 : index
    %47 = vector.load %arg4[%c1_32, %c1_33, %c0_34, %c0_35] : memref<3x3x8x8xbf16, #tpu.memory_space<vmem>>, vector<1x1x8x8xbf16>
    %48 = vector.shape_cast %47 : vector<1x1x8x8xbf16> to vector<8x8xbf16>
    %cst_36 = arith.constant dense<0.000000e+00> : vector<512x8xf32>
    %49 = tpu.matmul %46, %48, %cst_36 {dimension_numbers = #tpu.dot_dimension_numbers<[1], [0], [0], [1], [0, 0, 1, 1], [], []>} : vector<512x8xbf16>, vector<8x8xbf16>, vector<512x8xf32> -> vector<512x8xf32>
    %50 = arith.addf %43, %49 : vector<512x8xf32>
    %51 = vector.extract_strided_slice %16 {offsets = [0, 1, 0, 0], sizes = [2, 16, 16, 8], strides = [1, 1, 1, 1]} : vector<2x18x16x8xf32> to vector<2x16x16x8xf32>
    %52 = vector.shape_cast %51 : vector<2x16x16x8xf32> to vector<512x8xf32>
    %53 = arith.truncf %52 : vector<512x8xf32> to vector<512x8xbf16>
    %c1_37 = arith.constant 1 : index
    %c2_38 = arith.constant 2 : index
    %c0_39 = arith.constant 0 : index
    %c0_40 = arith.constant 0 : index
    %54 = vector.load %arg4[%c1_37, %c2_38, %c0_39, %c0_40] : memref<3x3x8x8xbf16, #tpu.memory_space<vmem>>, vector<1x1x8x8xbf16>
    %55 = vector.shape_cast %54 : vector<1x1x8x8xbf16> to vector<8x8xbf16>
    %cst_41 = arith.constant dense<0.000000e+00> : vector<512x8xf32>
    %56 = tpu.matmul %53, %55, %cst_41 {dimension_numbers = #tpu.dot_dimension_numbers<[1], [0], [0], [1], [0, 0, 1, 1], [], []>} : vector<512x8xbf16>, vector<8x8xbf16>, vector<512x8xf32> -> vector<512x8xf32>
    %57 = arith.addf %50, %56 : vector<512x8xf32>
    %58 = vector.extract_strided_slice %14 {offsets = [0, 2, 0, 0], sizes = [2, 16, 16, 8], strides = [1, 1, 1, 1]} : vector<2x18x16x8xf32> to vector<2x16x16x8xf32>
    %59 = vector.shape_cast %58 : vector<2x16x16x8xf32> to vector<512x8xf32>
    %60 = arith.truncf %59 : vector<512x8xf32> to vector<512x8xbf16>
    %c2_42 = arith.constant 2 : index
    %c0_43 = arith.constant 0 : index
    %c0_44 = arith.constant 0 : index
    %c0_45 = arith.constant 0 : index
    %61 = vector.load %arg4[%c2_42, %c0_43, %c0_44, %c0_45] : memref<3x3x8x8xbf16, #tpu.memory_space<vmem>>, vector<1x1x8x8xbf16>
    %62 = vector.shape_cast %61 : vector<1x1x8x8xbf16> to vector<8x8xbf16>
    %cst_46 = arith.constant dense<0.000000e+00> : vector<512x8xf32>
    %63 = tpu.matmul %60, %62, %cst_46 {dimension_numbers = #tpu.dot_dimension_numbers<[1], [0], [0], [1], [0, 0, 1, 1], [], []>} : vector<512x8xbf16>, vector<8x8xbf16>, vector<512x8xf32> -> vector<512x8xf32>
    %64 = arith.addf %57, %63 : vector<512x8xf32>
    %65 = vector.extract_strided_slice %15 {offsets = [0, 2, 0, 0], sizes = [2, 16, 16, 8], strides = [1, 1, 1, 1]} : vector<2x18x16x8xf32> to vector<2x16x16x8xf32>
    %66 = vector.shape_cast %65 : vector<2x16x16x8xf32> to vector<512x8xf32>
    %67 = arith.truncf %66 : vector<512x8xf32> to vector<512x8xbf16>
    %c2_47 = arith.constant 2 : index
    %c1_48 = arith.constant 1 : index
    %c0_49 = arith.constant 0 : index
    %c0_50 = arith.constant 0 : index
    %68 = vector.load %arg4[%c2_47, %c1_48, %c0_49, %c0_50] : memref<3x3x8x8xbf16, #tpu.memory_space<vmem>>, vector<1x1x8x8xbf16>
    %69 = vector.shape_cast %68 : vector<1x1x8x8xbf16> to vector<8x8xbf16>
    %cst_51 = arith.constant dense<0.000000e+00> : vector<512x8xf32>
    %70 = tpu.matmul %67, %69, %cst_51 {dimension_numbers = #tpu.dot_dimension_numbers<[1], [0], [0], [1], [0, 0, 1, 1], [], []>} : vector<512x8xbf16>, vector<8x8xbf16>, vector<512x8xf32> -> vector<512x8xf32>
    %71 = arith.addf %64, %70 : vector<512x8xf32>
    %72 = vector.extract_strided_slice %16 {offsets = [0, 2, 0, 0], sizes = [2, 16, 16, 8], strides = [1, 1, 1, 1]} : vector<2x18x16x8xf32> to vector<2x16x16x8xf32>
    %73 = vector.shape_cast %72 : vector<2x16x16x8xf32> to vector<512x8xf32>
    %74 = arith.truncf %73 : vector<512x8xf32> to vector<512x8xbf16>
    %c2_52 = arith.constant 2 : index
    %c2_53 = arith.constant 2 : index
    %c0_54 = arith.constant 0 : index
    %c0_55 = arith.constant 0 : index
    %75 = vector.load %arg4[%c2_52, %c2_53, %c0_54, %c0_55] : memref<3x3x8x8xbf16, #tpu.memory_space<vmem>>, vector<1x1x8x8xbf16>
    %76 = vector.shape_cast %75 : vector<1x1x8x8xbf16> to vector<8x8xbf16>
    %cst_56 = arith.constant dense<0.000000e+00> : vector<512x8xf32>
    %77 = tpu.matmul %74, %76, %cst_56 {dimension_numbers = #tpu.dot_dimension_numbers<[1], [0], [0], [1], [0, 0, 1, 1], [], []>} : vector<512x8xbf16>, vector<8x8xbf16>, vector<512x8xf32> -> vector<512x8xf32>
    %78 = arith.addf %71, %77 : vector<512x8xf32>
    %79 = arith.truncf %78 : vector<512x8xf32> to vector<512x8xbf16>
    %c0_57 = arith.constant 0 : index
    %c0_58 = arith.constant 0 : index
    %80 = vector.load %arg5[%c0_57, %c0_58] : memref<8x16xbf16, #tpu.memory_space<vmem>>, vector<8x16xbf16>
    %cst_59 = arith.constant dense<0.000000e+00> : vector<512x16xf32>
    %81 = tpu.matmul %79, %80, %cst_59 {dimension_numbers = #tpu.dot_dimension_numbers<[1], [0], [0], [1], [0, 0, 1, 1], [], []>} : vector<512x8xbf16>, vector<8x16xbf16>, vector<512x16xf32> -> vector<512x16xf32>
    %82 = arith.addf %81, %10 : vector<512x16xf32>
    %c0_60 = arith.constant 0 : index
    %c0_61 = arith.constant 0 : index
    %83 = vector.load %arg6[%c0_60, %c0_61] : memref<1x16xf32, #tpu.memory_space<vmem>>, vector<1x16xf32>
    %84 = vector.broadcast %83 : vector<1x16xf32> to vector<512x16xf32>
    %85 = arith.addf %82, %84 : vector<512x16xf32>
    %cst_62 = arith.constant 0.000000e+00 : f32
    %86 = vector.broadcast %cst_62 : f32 to vector<512x16xf32>
    %87 = arith.maximumf %85, %86 : vector<512x16xf32>
    %c0_63 = arith.constant 0 : index
    %c0_64 = arith.constant 0 : index
    %88 = vector.load %arg7[%c0_63, %c0_64] : memref<512x16xf32, #tpu.memory_space<vmem>>, vector<512x16xf32>
    tpu.vector_store %arg7[%c0_63, %c0_64], %87 {strides = array<i32>} : memref<512x16xf32, #tpu.memory_space<vmem>>, vector<512x16xf32>,
    return
  }
  func.func @transform_0(%arg0: i32) -> (i32, i32) {
    %c0_i32 = arith.constant 0 : i32
    %c0_i32_0 = arith.constant 0 : i32
    return %arg0, %c0_i32 : i32, i32
  }
  func.func @transform_1(%arg0: i32) -> (i32, i32) {
    %c0_i32 = arith.constant 0 : i32
    %c0_i32_0 = arith.constant 0 : i32
    %c0_i32_1 = arith.constant 0 : i32
    return %c0_i32, %c0_i32_0 : i32, i32
  }
  func.func @transform_2(%arg0: i32) -> (i32, i32) {
    %c0_i32 = arith.constant 0 : i32
    %c0_i32_0 = arith.constant 0 : i32
    %c0_i32_1 = arith.constant 0 : i32
    return %c0_i32, %c0_i32_0 : i32, i32
  }
  func.func @transform_3(%arg0: i32) -> (i32, i32, i32, i32) {
    %c0_i32 = arith.constant 0 : i32
    %c0_i32_0 = arith.constant 0 : i32
    %c0_i32_1 = arith.constant 0 : i32
    %c0_i32_2 = arith.constant 0 : i32
    %c0_i32_3 = arith.constant 0 : i32
    return %c0_i32, %c0_i32_0, %c0_i32_1, %c0_i32_2 : i32, i32, i32, i32
  }
  func.func @transform_4(%arg0: i32) -> (i32, i32) {
    %c0_i32 = arith.constant 0 : i32
    %c0_i32_0 = arith.constant 0 : i32
    %c0_i32_1 = arith.constant 0 : i32
    return %c0_i32, %c0_i32_0 : i32, i32
  }
  func.func @transform_5(%arg0: i32) -> (i32, i32) {
    %c0_i32 = arith.constant 0 : i32
    %c0_i32_0 = arith.constant 0 : i32
    %c0_i32_1 = arith.constant 0 : i32
    return %c0_i32, %c0_i32_0 : i32, i32
  }
  func.func @transform_6(%arg0: i32) -> (i32, i32) {
    %c0_i32 = arith.constant 0 : i32
    %c0_i32_0 = arith.constant 0 : i32
    return %arg0, %c0_i32 : i32, i32
  }
}

</mosaic_0001>

<bundles_post_ra>
// kernel: tpu_custom_call.1
= control target key start
LH: loop header
LB: loop body
LE: loop exit
PB: predicated region body
PF: predicated region fallthrough
CT: control target
= control target key end

     0   :  { %vm438_vm0 = vcmask 1041408   ;;  %vm341_vm1 = vcmask 31744   ;;  %vm1460_vm2 = vcmask 1043456   ;;  %vm28_vm3 = vcmask 64512   ;;  %s7539_s19 = smov 120   ;;  %s11494_s1 = inlined_call_operand.vmem [shape: bf16[4,24], index: 1, kind: input, shape index: {}]   ;;  %s11495_s0 = inlined_call_operand.vmem [shape: bf16[512,4], index: 0, kind: input, shape index: {}]   ;;  %s11496_s3 = inlined_call_operand.vmem [shape: bf16[3,3,8,8], index: 3, kind: input, shape index: {}]   ;;  %s11497_s2 = inlined_call_operand.vmem [shape: f32[1,8], index: 2, kind: input, shape index: {}]   ;;  %s11498_s4 = inlined_call_operand.vmem [shape: bf16[8,16], index: 4, kind: input, shape index: {}]   ;;  %s11499_s5 = inlined_call_operand.vmem [shape: f32[1,16], index: 5, kind: input, shape index: {}]   ;;  %s11500_s6 = inlined_call_operand.vmem [shape: f32[512,16], index: 6, kind: output, shape index: {}]  }
   0x1   :  { %v180_v0 = vld [vmem:[%s11494_s1] sm:$0x3]  ;;  %v7498_v4 = vld [vmem:[%s11495_s0 + $0x8] sm:$0xff]   ;;  %v7500_v6 = vld [vmem:[%s11495_s0 + $0x10] sm:$0xff]   ;;  %vm43_vm4 = vcmask 57344   ;;  %v7538_v36 = vmov 0.0  }
   0x2   :  { %7482 = vmatprep.subr.msk.bf16.mxu0 %vm438_vm0, %v180_v0  ;;  %7483 = vmatprep.subr.msk.bf16.mxu1 %vm438_vm0, %v180_v0  ;;  %v440_v1 = vsel %vm438_vm0, %v180_v0, 0  ;;  %v7496_v2 = vld [vmem:[%s11495_s0] sm:$0xff]   ;;  %v7499_v5 = vld [vmem:[%s11495_s0 + $0x88] sm:$0xff]   ;;  %v7501_v7 = vld [vmem:[%s11495_s0 + $0x18] sm:$0xff]   ;;  %29 = vst.msk [vmem:[#allocation2] sm:$0xff] %vm28_vm3, %v7538_v36  ;;  %vm31_vm5 = vcmask 58368  }
   0x3   :  { %6755 = vmatpush3.bf16.msra.mxu0 %v440_v1  ;;  %7481 = vmatpush3.bf16.msra.mxu1 %v440_v1  ;;  %v7497_v3 = vld [vmem:[%s11495_s0 + $0x80] sm:$0xff]   ;;  %v7503_v8 = vld [vmem:[%s11495_s0 + $0x90] sm:$0xff]   ;;  %v7505_v10 = vld [vmem:[%s11495_s0 + $0x98] sm:$0xff]   ;;  %30 = vst.msk [vmem:[#allocation2 + $0x8] sm:$0xff] %vm28_vm3, %v7538_v36  ;;  %vm1105_vm6 = vcmask 1046528   ;;  %vm2141_vm7 = vcmask 1045504  }
   0x4   :  { %6756 = vmatprep.mubr.msk.bf16.mxu0 %vm341_vm1, %v7496_v2  ;;  %6788 = vmatprep.mubr.msk.bf16.mxu1 %vm341_vm1, %v7497_v3  ;;  %v7502_v9 = vld [vmem:[%s11495_s0 + $0x20] sm:$0xff]   ;;  %v7504_v12 = vld [vmem:[%s11495_s0 + $0x28] sm:$0xff]   ;;  %v7506_v13 = vld [vmem:[%s11495_s0 + $0x30] sm:$0xff]   ;;  %33 = vst.msk [vmem:[#allocation2 + $0x1b0] sm:$0xff] %vm28_vm3, %v7538_v36  ;;  %vm5928_vm8 = vcmask 130048  }
   0x5   :  { %v7509_v11 = vld [vmem:[%s11495_s0 + $0xa0] sm:$0xff]   ;;  %v7511_v14 = vld [vmem:[%s11495_s0 + $0xa8] sm:$0xff]   ;;  %v7515_v15 = vld [vmem:[%s11495_s0 + $0xb0] sm:$0xff]   ;;  %34 = vst.msk [vmem:[#allocation2 + $0x1b8] sm:$0xff] %vm28_vm3, %v7538_v36 }
   0x6   :  { %6757 = vmatmul.mubr.msk.bf16.vlgmr.msra.gmra.mxu0 %vm341_vm1, %v7498_v4  ;;  %6789 = vmatmul.mubr.msk.bf16.vlgmr.msra.gmra.mxu1 %vm341_vm1, %v7499_v5  ;;  %v7507_v16 = vld [vmem:[%s11495_s0 + $0x38] sm:$0xff]   ;;  %v7508_v17 = vld [vmem:[%s11495_s0 + $0x40] sm:$0xff]   ;;  %v7510_v21 = vld [vmem:[%s11495_s0 + $0x48] sm:$0xff]   ;;  %37 = vst.msk [vmem:[#allocation2 + $0x198] sm:$0xff] %vm28_vm3, %v7538_v36 }
   0x7   :  { %6760 = vmatprep.mubr.msk.bf16.mxu0 %vm341_vm1, %v7500_v6  ;;  %6792 = vmatprep.mubr.msk.bf16.mxu1 %vm341_vm1, %v7503_v8  ;;  %v7517_v18 = vld [vmem:[%s11495_s0 + $0xb8] sm:$0xff]   ;;  %v7520_v19 = vld [vmem:[%s11495_s0 + $0xc0] sm:$0xff]   ;;  %v7512_v23 = vld [vmem:[%s11495_s0 + $0x50] sm:$0xff]   ;;  %38 = vst.msk [vmem:[#allocation2 + $0x1a0] sm:$0xff] %vm28_vm3, %v7538_v36 }
   0x8   :  { %v6062_v20 = vld [vmem:[%s11496_s3 + $0x4] sm:$0xf]  ;;  %v7521_v24 = vld [vmem:[%s11495_s0 + $0xc8] sm:$0xff]   ;;  %v7522_v25 = vld [vmem:[%s11495_s0 + $0xd0] sm:$0xff]   ;;  %40 = vst.msk [vmem:[#allocation2 + $0x348] sm:$0xff] %vm28_vm3, %v7538_v36 }
   0x9   :  { %7484 = vmatprep.subr.msk.bf16.mxu1 %vm1460_vm2, %v6062_v20  ;;  %v1462_v22 = vsel %vm1460_vm2, %v6062_v20, 0  ;;  %v7513_v26 = vld [vmem:[%s11495_s0 + $0x58] sm:$0xff]   ;;  %v7514_v27 = vld [vmem:[%s11495_s0 + $0x60] sm:$0xff]   ;;  %v7516_v30 = vld [vmem:[%s11495_s0 + $0x68] sm:$0xff]   ;;  %41 = vst.msk [vmem:[#allocation2 + $0x350] sm:$0xff] %vm28_vm3, %v7538_v36 }
   0xa   :  { %6821 = vmatpush3.bf16.msra.mxu1 %v1462_v22  ;;  %v7523_v28 = vld [vmem:[%s11495_s0 + $0xd8] sm:$0xff]   ;;  %v7524_v29 = vld [vmem:[%s11495_s0 + $0xe0] sm:$0xff]   ;;  %v7518_v31 = vld [vmem:[%s11495_s0 + $0x70] sm:$0xff]   ;;  %45 = vst.msk [vmem:[#allocation2 + $0x18] sm:$0x1] %vm43_vm4, %v7538_v36 }
   0xb   :  { %v7525_v32 = vld [vmem:[%s11495_s0 + $0xe8] sm:$0xff]   ;;  %v7526_v33 = vld [vmem:[%s11495_s0 + $0xf0] sm:$0xff]   ;;  %v7519_v34 = vld [vmem:[%s11495_s0 + $0x78] sm:$0xff]   ;;  %46 = vst.msk [vmem:[#allocation2 + $0x30] sm:$0x1] %vm43_vm4, %v7538_v36 }
   0xc   :  { %v7527_v35 = vld [vmem:[%s11495_s0 + $0xf8] sm:$0xff]   ;;  %47 = vst.msk [vmem:[#allocation2 + $0x48] sm:$0x1] %vm43_vm4, %v7538_v36  ;;  %48 = vst.msk [vmem:[#allocation2 + $0x60] sm:$0x1] %vm43_vm4, %v7538_v36  ;;  %v7882_v40 = vld [vmem:[#allocation2 + $0x8] sm:$0xff] }
   0xd   :  { %49 = vst.msk [vmem:[#allocation2 + $0x78] sm:$0x1] %vm43_vm4, %v7538_v36  ;;  %50 = vst.msk [vmem:[#allocation2 + $0x90] sm:$0x1] %vm43_vm4, %v7538_v36  ;;  %v1008_v37 = vld [vmem:[%s11496_s3] sm:$0xf] }
   0xe   :  { %6761 = vmatmul.mubr.msk.bf16.gmra.mxu0 %vm341_vm1, %v7501_v7  ;;  %6793 = vmatmul.mubr.msk.bf16.gmra.mxu1 %vm341_vm1, %v7505_v10  ;;  %51 = vst.msk [vmem:[#allocation2 + $0xa8] sm:$0x1] %vm43_vm4, %v7538_v36  ;;  %52 = vst.msk [vmem:[#allocation2 + $0xc0] sm:$0x1] %vm43_vm4, %v7538_v36  ;;  %v1850_v38 = vsel %vm1460_vm2, %v1008_v37, 0  ;;  %v1107_v44 = vrot.slane %v7882_v40, 1 }
   0xf   :  { %6764 = vmatprep.mubr.msk.bf16.mxu0 %vm341_vm1, %v7502_v9  ;;  %6796 = vmatprep.mubr.msk.bf16.mxu1 %vm341_vm1, %v7509_v11  ;;  %53 = vst.msk [vmem:[#allocation2 + $0xd8] sm:$0x1] %vm43_vm4, %v7538_v36  ;;  %54 = vst.msk [vmem:[#allocation2 + $0xf0] sm:$0x1] %vm43_vm4, %v7538_v36  ;;  %v7895_v49 = vld [vmem:[%s11496_s3 + $0x8] sm:$0xf] }
  0x10   :  { %55 = vst.msk [vmem:[#allocation2 + $0x108] sm:$0x1] %vm43_vm4, %v7538_v36  ;;  %56 = vst.msk [vmem:[#allocation2 + $0x120] sm:$0x1] %vm43_vm4, %v7538_v36  ;;  %7485 = vmatprep.subr.msk.bf16.mxu0 %vm1460_vm2, %v1008_v37  ;;  %7486 = vmatprep.subr.msk.bf16.mxu1 %vm1460_vm2, %v7895_v49  ;;  %v7902_v50 = vld [vmem:[%s11497_s2] ss:$0 sm:$0xff] }
  0x11   :  { %57 = vst.msk [vmem:[#allocation2 + $0x138] sm:$0x1] %vm43_vm4, %v7538_v36  ;;  %58 = vst.msk [vmem:[#allocation2 + $0x150] sm:$0x1] %vm43_vm4, %v7538_v36  ;;  %6887 = vmatpush3.bf16.msra.mxu0 %v1850_v38  ;;  %v7924_v5 = vld [vmem:[#allocation2 + $0x1b8] sm:$0xff] }
  0x12   :  { %59 = vst.msk [vmem:[#allocation2 + $0x168] sm:$0x1] %vm43_vm4, %v7538_v36  ;;  %60 = vst.msk [vmem:[#allocation2 + $0x180] sm:$0x1] %vm43_vm4, %v7538_v36 }
  0x13   :  { %63 = vst.msk [vmem:[#allocation2 + $0x1c8] sm:$0x1] %vm43_vm4, %v7538_v36  ;;  %64 = vst.msk [vmem:[#allocation2 + $0x1e0] sm:$0x1] %vm43_vm4, %v7538_v36 }
  0x14   :  { %65 = vst.msk [vmem:[#allocation2 + $0x1f8] sm:$0x1] %vm43_vm4, %v7538_v36  ;;  %66 = vst.msk [vmem:[#allocation2 + $0x210] sm:$0x1] %vm43_vm4, %v7538_v36 }
  0x15   :  { %67 = vst.msk [vmem:[#allocation2 + $0x228] sm:$0x1] %vm43_vm4, %v7538_v36  ;;  %68 = vst.msk [vmem:[#allocation2 + $0x240] sm:$0x1] %vm43_vm4, %v7538_v36 }
  0x16   :  { %6765 = vmatmul.mubr.msk.bf16.gmra.mxu0 %vm341_vm1, %v7504_v12  ;;  %6797 = vmatmul.mubr.msk.bf16.gmra.mxu1 %vm341_vm1, %v7511_v14  ;;  %69 = vst.msk [vmem:[#allocation2 + $0x258] sm:$0x1] %vm43_vm4, %v7538_v36  ;;  %70 = vst.msk [vmem:[#allocation2 + $0x270] sm:$0x1] %vm43_vm4, %v7538_v36  ;;  %v1187_v14 = vrot.slane %v7924_v5, 1 }
  0x17   :  { %6768 = vmatprep.mubr.msk.bf16.mxu0 %vm341_vm1, %v7506_v13  ;;  %6800 = vmatprep.mubr.msk.bf16.mxu1 %vm341_vm1, %v7515_v15  ;;  %71 = vst.msk [vmem:[#allocation2 + $0x288] sm:$0x1] %vm43_vm4, %v7538_v36  ;;  %72 = vst.msk [vmem:[#allocation2 + $0x2a0] sm:$0x1] %vm43_vm4, %v7538_v36 }
  0x18   :  { %73 = vst.msk [vmem:[#allocation2 + $0x2b8] sm:$0x1] %vm43_vm4, %v7538_v36  ;;  %74 = vst.msk [vmem:[#allocation2 + $0x2d0] sm:$0x1] %vm43_vm4, %v7538_v36 }
  0x19   :  { %75 = vst.msk [vmem:[#allocation2 + $0x2e8] sm:$0x1] %vm43_vm4, %v7538_v36  ;;  %76 = vst.msk [vmem:[#allocation2 + $0x300] sm:$0x1] %vm43_vm4, %v7538_v36 }
  0x1a   :  { %77 = vst.msk [vmem:[#allocation2 + $0x318] sm:$0x1] %vm43_vm4, %v7538_v36  ;;  %78 = vst.msk [vmem:[#allocation2 + $0x330] sm:$0x1] %vm43_vm4, %v7538_v36 }
  0x1b   :  { %81 = vst.msk [vmem:[#allocation2 + $0x29] sm:$0x1] %vm43_vm4, %v7538_v36  ;;  %82 = vst.msk [vmem:[#allocation2 + $0x41] sm:$0x1] %vm43_vm4, %v7538_v36 }
  0x1c   :  { %83 = vst.msk [vmem:[#allocation2 + $0x59] sm:$0x1] %vm43_vm4, %v7538_v36  ;;  %84 = vst.msk [vmem:[#allocation2 + $0x71] sm:$0x1] %vm43_vm4, %v7538_v36 }
  0x1d   :  { %85 = vst.msk [vmem:[#allocation2 + $0x89] sm:$0x1] %vm43_vm4, %v7538_v36  ;;  %86 = vst.msk [vmem:[#allocation2 + $0xa1] sm:$0x1] %vm43_vm4, %v7538_v36 }
  0x1e   :  { %6769 = vmatmul.mubr.msk.bf16.gmra.mxu0 %vm341_vm1, %v7507_v16  ;;  %6801 = vmatmul.mubr.msk.bf16.gmra.mxu1 %vm341_vm1, %v7517_v18  ;;  %87 = vst.msk [vmem:[#allocation2 + $0xb9] sm:$0x1] %vm43_vm4, %v7538_v36  ;;  %88 = vst.msk [vmem:[#allocation2 + $0xd1] sm:$0x1] %vm43_vm4, %v7538_v36 }
  0x1f   :  { %6772 = vmatprep.mubr.msk.bf16.mxu0 %vm341_vm1, %v7508_v17  ;;  %6804 = vmatprep.mubr.msk.bf16.mxu1 %vm341_vm1, %v7520_v19  ;;  %89 = vst.msk [vmem:[#allocation2 + $0xe9] sm:$0x1] %vm43_vm4, %v7538_v36  ;;  %90 = vst.msk [vmem:[#allocation2 + $0x101] sm:$0x1] %vm43_vm4, %v7538_v36 }
  0x20   :  { %91 = vst.msk [vmem:[#allocation2 + $0x119] sm:$0x1] %vm43_vm4, %v7538_v36  ;;  %92 = vst.msk [vmem:[#allocation2 + $0x131] sm:$0x1] %vm43_vm4, %v7538_v36 }
  0x21   :  { %93 = vst.msk [vmem:[#allocation2 + $0x149] sm:$0x1] %vm43_vm4, %v7538_v36  ;;  %94 = vst.msk [vmem:[#allocation2 + $0x161] sm:$0x1] %vm43_vm4, %v7538_v36 }
  0x22   :  { %95 = vst.msk [vmem:[#allocation2 + $0x179] sm:$0x1] %vm43_vm4, %v7538_v36  ;;  %96 = vst.msk [vmem:[#allocation2 + $0x191] sm:$0x1] %vm43_vm4, %v7538_v36 }
  0x23   :  { %99 = vst.msk [vmem:[#allocation2 + $0x1d9] sm:$0x1] %vm43_vm4, %v7538_v36  ;;  %100 = vst.msk [vmem:[#allocation2 + $0x1f1] sm:$0x1] %vm43_vm4, %v7538_v36 }
  0x24   :  { %101 = vst.msk [vmem:[#allocation2 + $0x209] sm:$0x1] %vm43_vm4, %v7538_v36  ;;  %102 = vst.msk [vmem:[#allocation2 + $0x221] sm:$0x1] %vm43_vm4, %v7538_v36 }
  0x25   :  { %103 = vst.msk [vmem:[#allocation2 + $0x239] sm:$0x1] %vm43_vm4, %v7538_v36  ;;  %104 = vst.msk [vmem:[#allocation2 + $0x251] sm:$0x1] %vm43_vm4, %v7538_v36 }
  0x26   :  { %6773 = vmatmul.mubr.msk.bf16.gmra.mxu0 %vm341_vm1, %v7510_v21  ;;  %6805 = vmatmul.mubr.msk.bf16.gmra.mxu1 %vm341_vm1, %v7521_v24  ;;  %105 = vst.msk [vmem:[#allocation2 + $0x269] sm:$0x1] %vm43_vm4, %v7538_v36  ;;  %106 = vst.msk [vmem:[#allocation2 + $0x281] sm:$0x1] %vm43_vm4, %v7538_v36 }
  0x27   :  { %6776 = vmatprep.mubr.msk.bf16.mxu0 %vm341_vm1, %v7512_v23  ;;  %6808 = vmatprep.mubr.msk.bf16.mxu1 %vm341_vm1, %v7522_v25  ;;  %107 = vst.msk [vmem:[#allocation2 + $0x299] sm:$0x1] %vm43_vm4, %v7538_v36  ;;  %108 = vst.msk [vmem:[#allocation2 + $0x2b1] sm:$0x1] %vm43_vm4, %v7538_v36 }
  0x28   :  { %109 = vst.msk [vmem:[#allocation2 + $0x2c9] sm:$0x1] %vm43_vm4, %v7538_v36  ;;  %110 = vst.msk [vmem:[#allocation2 + $0x2e1] sm:$0x1] %vm43_vm4, %v7538_v36 }
  0x29   :  { %111 = vst.msk [vmem:[#allocation2 + $0x2f9] sm:$0x1] %vm43_vm4, %v7538_v36  ;;  %112 = vst.msk [vmem:[#allocation2 + $0x311] sm:$0x1] %vm43_vm4, %v7538_v36 }
  0x2a   :  { %113 = vst.msk [vmem:[#allocation2 + $0x329] sm:$0x1] %vm43_vm4, %v7538_v36  ;;  %114 = vst.msk [vmem:[#allocation2 + $0x341] sm:$0x1] %vm43_vm4, %v7538_v36 }
  0x2b   :  { %44 = vst.msk [vmem:[#allocation2] sm:$0x1] %vm43_vm4, %v7538_v36  ;;  %61 = vst.msk [vmem:[#allocation2 + $0x198] sm:$0x1] %vm43_vm4, %v7538_v36 }
  0x2c   :  { %62 = vst.msk [vmem:[#allocation2 + $0x1b0] sm:$0x1] %vm43_vm4, %v7538_v36  ;;  %79 = vst.msk [vmem:[#allocation2 + $0x348] sm:$0x1] %vm43_vm4, %v7538_v36 }
  0x2d   :  { %32 = vst.msk [vmem:[#allocation2 + $0x10] sm:$0x3] %vm31_vm5, %v7538_v36  ;;  %35 = vst.msk [vmem:[#allocation2 + $0x1c0] sm:$0x3] %vm31_vm5, %v7538_v36 }
  0x2e   :  { %6777 = vmatmul.mubr.msk.bf16.gmra.mxu0 %vm341_vm1, %v7513_v26  ;;  %6809 = vmatmul.mubr.msk.bf16.gmra.mxu1 %vm341_vm1, %v7523_v28  ;;  %39 = vst.msk [vmem:[#allocation2 + $0x1a8] sm:$0x3] %vm31_vm5, %v7538_v36  ;;  %42 = vst.msk [vmem:[#allocation2 + $0x358] sm:$0x3] %vm31_vm5, %v7538_v36 }
  0x2f   :  { %6780 = vmatprep.mubr.msk.bf16.mxu0 %vm341_vm1, %v7514_v27  ;;  %6812 = vmatprep.mubr.msk.bf16.mxu1 %vm341_vm1, %v7524_v29  ;;  %80 = vst.msk [vmem:[#allocation2 + $0x11] sm:$0x1] %vm43_vm4, %v7538_v36  ;;  %97 = vst.msk [vmem:[#allocation2 + $0x1a9] sm:$0x1] %vm43_vm4, %v7538_v36  ;;  %v7965_v27 = vsel %vm1460_vm2, %v7895_v49, 0 }
  0x30   :  { %98 = vst.msk [vmem:[#allocation2 + $0x1c1] sm:$0x1] %vm43_vm4, %v7538_v36  ;;  %115 = vst.msk [vmem:[#allocation2 + $0x359] sm:$0x1] %vm43_vm4, %v7538_v36 }
  0x31   :  { %11741 = vst [vmem:[#allocation4_spill] sm:$0xff] %v7924_v5 }
  0x32   :  { %v7880_v39 = vld [vmem:[#allocation2] sm:$0xff] }
  0x33   :  { %v976_v42 = vpack.c.bf16 %v7882_v40, %v7880_v39  ;;  %v1106_v43 = vrot.slane %v7880_v39, 1  ;;  %v7922_v4 = vld [vmem:[#allocation2 + $0x1b0] sm:$0xff] }
  0x34   :  { %11740 = vst [vmem:[#allocation3_spill] sm:$0xff] %v7922_v4  ;;  %v1186_v13 = vrot.slane %v7922_v4, 1 }
  0x35   :  { %v1108_v46 = vsel %vm1105_vm6, %v1106_v43, %v1107_v44 }
  0x36   :  { %6781 = vmatmul.mubr.msk.bf16.gmra.mxu0 %vm341_vm1, %v7516_v30  ;;  %6813 = vmatmul.mubr.msk.bf16.gmra.mxu1 %vm341_vm1, %v7525_v32  ;;  %v870_v41 = vld [vmem:[#allocation2 + $0x10] sm:$0x3] }
  0x37   :  { %6784 = vmatprep.mubr.msk.bf16.mxu0 %vm341_vm1, %v7518_v31  ;;  %6816 = vmatprep.mubr.msk.bf16.mxu1 %vm341_vm1, %v7526_v33  ;;  %v1109_v45 = vrot.slane %v870_v41, 1  ;;  %v924_v8 = vld [vmem:[#allocation2 + $0x1c0] sm:$0x3]  ;;  %v7976_v33 = vsel %vm1105_vm6, %v1186_v13, %v1187_v14 }
  0x38   :  { %v1189_v17 = vrot.slane %v924_v8, 1 }
  0x39   :  { %v1110_v47 = vsel %vm1105_vm6, %v1107_v44, %v1109_v45 }
  0x3a   :  { %v1330_v48 = vpack.c.bf16 %v1110_v47, %v1108_v46 }
  0x3e   :  { %6785 = vmatmul.mubr.msk.bf16.gmra.mxu0 %vm341_vm1, %v7519_v34  ;;  %6817 = vmatmul.mubr.msk.bf16.gmra.mxu1 %vm341_vm1, %v7527_v35 }
  0x3f   :  { %6888 = vmatprep.mubr.msk.bf16.mxu0 %vm28_vm3, %v976_v42  ;;  %6822 = vmatprep.mubr.msk.bf16.mxu1 %vm28_vm3, %v1330_v48  ;;  %v7987_v42 = vsel %vm1105_vm6, %v1187_v14, %v1189_v17 }
  0xc6   :  { %v6758_v51 = vpop.f32.mrf.mxu0  ;;  %v6790_v53 = vpop.f32.mrf.mxu1 }
  0xc7   :  { %v740_v52 = vadd.f32 %v6758_v51, %v7902_v50  ;;  %5217 = vrot.lane.b32.xlu1 %v6758_v51, %s7539_s19  ;;  %v772_v54 = vadd.f32 %v6790_v53, %v7902_v50  ;;  %5281 = vrot.lane.b32.xlu0 %v6790_v53, %s7539_s19 }
  0xc8   :  { %v476_v55 = vpop.f32.mrf.mxu0  ;;  %v604_v57 = vpop.f32.mrf.mxu1 }
  0xc9   :  { %806 = vst.msk [vmem:[#allocation2 + $0x31] sm:$0xff] %vm28_vm3, %v740_v52  ;;  %v738_v56 = vadd.f32 %v7902_v50, %v476_v55  ;;  %838 = vst.msk [vmem:[#allocation2 + $0x1e1] sm:$0xff] %vm28_vm3, %v772_v54  ;;  %v770_v59 = vadd.f32 %v7902_v50, %v604_v57 }
  0xca   :  { %v6759_v58 = vpop.f32.mrf.mxu0  ;;  %v6791_v61 = vpop.f32.mrf.mxu1 }
  0xcb   :  { %804 = vst.msk [vmem:[#allocation2 + $0x19] sm:$0xff] %vm28_vm3, %v738_v56  ;;  %v741_v60 = vadd.f32 %v6759_v58, %v7902_v50  ;;  %5219 = vrot.lane.b32.xlu1 %v6759_v58, %s7539_s19  ;;  %5213 = vrot.lane.b32.xlu0 %v476_v55, %s7539_s19  ;;  %836 = vst.msk [vmem:[#allocation2 + $0x1c9] sm:$0xff] %vm28_vm3, %v770_v59  ;;  %v773_v63 = vadd.f32 %v6791_v61, %v7902_v50  ;;  %v6160_v55 = vld [vmem:[%s11496_s3 + $0xc] sm:$0xf] }
  0xcc   :  { %v479_v62 = vpop.f32.mrf.mxu0  ;;  %v607_v1 = vpop.f32.mrf.mxu1  ;;  %7487 = vmatprep.subr.msk.bf16.mxu0 %vm1460_vm2, %v6160_v55 }
  0xcd   :  { %807 = vst.msk [vmem:[#allocation2 + $0x39] sm:$0xff] %vm28_vm3, %v741_v60  ;;  %v739_v0 = vadd.f32 %v7902_v50, %v479_v62  ;;  %839 = vst.msk [vmem:[#allocation2 + $0x1e9] sm:$0xff] %vm28_vm3, %v773_v63  ;;  %v771_v3 = vadd.f32 %v7902_v50, %v607_v1 }
  0xce   :  { %v6762_v2 = vpop.f32.mrf.mxu0  ;;  %v7929_v7 = vpop.f32.mrf.mxu1 }
  0xcf   :  { %805 = vst.msk [vmem:[#allocation2 + $0x21] sm:$0xff] %vm28_vm3, %v739_v0  ;;  %v744_v6 = vadd.f32 %v6762_v2, %v7902_v50  ;;  %5283 = vrot.lane.b32.xlu1 %v6791_v61, %s7539_s19  ;;  %5277 = vrot.lane.b32.xlu0 %v604_v57, %s7539_s19  ;;  %837 = vst.msk [vmem:[#allocation2 + $0x1d1] sm:$0xff] %vm28_vm3, %v771_v3  ;;  %v776_v10 = vadd.f32 %v7929_v7, %v7902_v50 }
  0xd0   :  { %v7932_v9 = vpop.f32.mrf.mxu0  ;;  %v7940_v12 = vpop.f32.mrf.mxu1  ;;  %v7951_v21 = vld [vmem:[#allocation2 + $0x30] sm:$0xff]  ;;  %v8012_v54 = vld [vmem:[#allocation2 + $0x1e0] sm:$0xff] }
  0xd1   :  { %810 = vst.msk [vmem:[#allocation2 + $0x61] sm:$0xff] %vm28_vm3, %v744_v6  ;;  %v742_v11 = vadd.f32 %v7902_v50, %v7932_v9  ;;  %842 = vst.msk [vmem:[#allocation2 + $0x211] sm:$0xff] %vm28_vm3, %v776_v10  ;;  %v774_v16 = vadd.f32 %v7902_v50, %v7940_v12  ;;  %v1116_v36 = vrot.slane %v7951_v21, 1 }
  0xd2   :  { %v6763_v15 = vpop.f32.mrf.mxu0  ;;  %v6795_v20 = vpop.f32.mrf.mxu1  ;;  %11742 = vst [vmem:[#allocation5_spill] sm:$0xff] %v7951_v21  ;;  %v7958_v24 = vld [vmem:[#allocation2 + $0x18] sm:$0xff]  ;;  %11747 = vst [vmem:[#allocation10_spill] sm:$0xff] %v8012_v54 }
  0xd3   :  { %808 = vst.msk [vmem:[#allocation2 + $0x49] sm:$0xff] %vm28_vm3, %v742_v11  ;;  %v745_v18 = vadd.f32 %v6763_v15, %v7902_v50  ;;  %5279 = vrot.lane.b32.xlu1 %v607_v1, %s7539_s19  ;;  %5215 = vrot.lane.b32.xlu0 %v479_v62, %s7539_s19  ;;  %840 = vst.msk [vmem:[#allocation2 + $0x1f9] sm:$0xff] %vm28_vm3, %v774_v16  ;;  %v777_v25 = vadd.f32 %v6795_v20, %v7902_v50  ;;  %v1111_v45 = vrot.slane %v7958_v24, 1 }
  0xd4   :  { %v7954_v22 = vpop.f32.mrf.mxu0  ;;  %11743 = vst [vmem:[#allocation6_spill] sm:$0xff] %v7958_v24  ;;  %v7961_v26 = vld [vmem:[#allocation2 + $0x38] sm:$0xff]  ;;  %v876_v28 = vld [vmem:[#allocation2 + $0x40] sm:$0x3]  ;;  %v7971_v31 = vpop.f32.mrf.mxu1 }
  0xd5   :  { %11744 = vst [vmem:[#allocation7_spill] sm:$0xff] %v7961_v26  ;;  %811 = vst.msk [vmem:[#allocation2 + $0x69] sm:$0xff] %vm28_vm3, %v745_v18  ;;  %v743_v29 = vadd.f32 %v7902_v50, %v7954_v22  ;;  %v1117_v30 = vrot.slane %v7961_v26, 1  ;;  %v1119_v38 = vrot.slane %v876_v28, 1  ;;  %v775_v41 = vadd.f32 %v7902_v50, %v7971_v31 }
  0xd6   :  { %v7978_v34 = vpop.f32.mrf.mxu0  ;;  %v7980_v35 = vld [vmem:[#allocation2 + $0x20] sm:$0xff]  ;;  %843 = vst.msk [vmem:[#allocation2 + $0x219] sm:$0xff] %vm28_vm3, %v777_v25  ;;  %v873_v37 = vld [vmem:[#allocation2 + $0x28] sm:$0x3]  ;;  %v7999_v47 = vpop.f32.mrf.mxu1  ;;  %v8006_v49 = vpack.c.bf16 %v7961_v26, %v7951_v21  ;;  %v8162_v62 = vld [vmem:[#allocation2 + $0x1d8] sm:$0x3] }
  0xd7   :  { %809 = vst.msk [vmem:[#allocation2 + $0x51] sm:$0xff] %vm28_vm3, %v743_v29  ;;  %v748_v43 = vadd.f32 %v7978_v34, %v7902_v50  ;;  %5227 = vrot.lane.b32.xlu1 %v6763_v15, %s7539_s19  ;;  %v7995_v44 = vpack.c.bf16 %v7980_v35, %v7958_v24  ;;  %v1112_v46 = vrot.slane %v7980_v35, 1  ;;  %5225 = vrot.lane.b32.xlu0 %v6762_v2, %s7539_s19  ;;  %v1114_v51 = vrot.slane %v873_v37, 1  ;;  %v8038_v2 = vld [vmem:[#allocation2 + $0x1c8] sm:$0xff]  ;;  %v6193_v29 = vld [vmem:[%s11496_s3 + $0x10] sm:$0xf] }
  0xd8   :  { %v8002_v48 = vpop.f32.mrf.mxu0  ;;  %11746 = vst [vmem:[#allocation9_spill] sm:$0xff] %v8006_v49  ;;  %v1118_v52 = vsel %vm1105_vm6, %v1116_v36, %v1117_v30  ;;  %841 = vst.msk [vmem:[#allocation2 + $0x201] sm:$0xff] %vm28_vm3, %v775_v41  ;;  %v780_v53 = vadd.f32 %v7999_v47, %v7902_v50  ;;  %v1120_v58 = vsel %vm1105_vm6, %v1117_v30, %v1119_v38  ;;  %v8024_v59 = vpop.f32.mrf.mxu1  ;;  %v8048_v10 = vld [vmem:[#allocation2 + $0x60] sm:$0xff]  ;;  %v8081_v41 = vld [vmem:[#allocation2 + $0x1e8] sm:$0xff] }
  0xd9   :  { %11745 = vst [vmem:[#allocation8_spill] sm:$0xff] %v7995_v44  ;;  %814 = vst.msk [vmem:[#allocation2 + $0x91] sm:$0xff] %vm28_vm3, %v748_v43  ;;  %v746_v56 = vadd.f32 %v7902_v50, %v8002_v48  ;;  %6889 = vmatmul.mubr.msk.bf16.vlgmr.msra.gmra.mxu0 %vm28_vm3, %v7995_v44  ;;  %v1113_v57 = vsel %vm1105_vm6, %v1111_v45, %v1112_v46  ;;  %v1115_v63 = vsel %vm1105_vm6, %v1112_v46, %v1114_v51 }
  0xda   :  { %v8028_v61 = vpop.f32.mrf.mxu0  ;;  %6892 = vmatprep.mubr.msk.bf16.mxu0 %vm28_vm3, %v8006_v49  ;;  %846 = vst.msk [vmem:[#allocation2 + $0x241] sm:$0xff] %vm28_vm3, %v780_v53  ;;  %v778_v0 = vadd.f32 %v7902_v50, %v8024_v59  ;;  %11748 = vst [vmem:[#allocation11_spill] sm:$0xff] %v8038_v2  ;;  %v8044_v6 = vpack.c.bf16 %v1115_v63, %v1113_v57  ;;  %v8046_v8 = vld [vmem:[#allocation2 + $0x48] sm:$0xff]  ;;  %v8050_v11 = vpop.f32.mrf.mxu1  ;;  %v8059_v17 = vpack.c.bf16 %v1120_v58, %v1118_v52 }
  0xdb   :  { %812 = vst.msk [vmem:[#allocation2 + $0x79] sm:$0xff] %vm28_vm3, %v746_v56  ;;  %v749_v3 = vadd.f32 %v8028_v61, %v7902_v50  ;;  %5291 = vrot.lane.b32.xlu1 %v6795_v20, %s7539_s19  ;;  %11750 = vst [vmem:[#allocation13_spill] sm:$0xff] %v8046_v8  ;;  %5289 = vrot.lane.b32.xlu0 %v7929_v7, %s7539_s19  ;;  %v781_v25 = vadd.f32 %v8050_v11, %v7902_v50  ;;  %v1126_v51 = vrot.slane %v8048_v10, 1 }
  0xdc   :  { %11749 = vst [vmem:[#allocation12_spill] sm:$0xff] %v8044_v6  ;;  %11751 = vst [vmem:[#allocation14_spill] sm:$0xff] %v8048_v10  ;;  %v8057_v16 = vpop.f32.mrf.mxu0  ;;  %v8061_v18 = vld [vmem:[#allocation2 + $0x68] sm:$0xff]  ;;  %v882_v20 = vld [vmem:[#allocation2 + $0x70] sm:$0x3]  ;;  %6823 = vmatmul.mubr.msk.bf16.vlgmr.msra.gmra.mxu1 %vm28_vm3, %v8044_v6  ;;  %v8077_v36 = vpop.f32.mrf.mxu1  ;;  %v1121_v57 = vrot.slane %v8046_v8, 1 }
  0xdd   :  { %11752 = vst [vmem:[#allocation15_spill] sm:$0xff] %v8059_v17  ;;  %11753 = vst [vmem:[#allocation16_spill] sm:$0xff] %v8061_v18  ;;  %v747_v7 = vadd.f32 %v7902_v50, %v8057_v16  ;;  %v1127_v30 = vrot.slane %v8061_v18, 1  ;;  %6953 = vmatpush3.bf16.msra.mxu1 %v7965_v27  ;;  %6826 = vmatprep.mubr.msk.bf16.mxu1 %vm28_vm3, %v8059_v17  ;;  %v1129_v53 = vrot.slane %v882_v20, 1 }
  0xde   :  { %844 = vst.msk [vmem:[#allocation2 + $0x229] sm:$0xff] %vm28_vm3, %v778_v0  ;;  %815 = vst.msk [vmem:[#allocation2 + $0x99] sm:$0xff] %vm28_vm3, %v749_v3  ;;  %v8087_v45 = vpop.f32.mrf.mxu0  ;;  %v8089_v46 = vld [vmem:[#allocation2 + $0x50] sm:$0xff]  ;;  %v879_v52 = vld [vmem:[#allocation2 + $0x58] sm:$0x3]  ;;  %v779_v55 = vadd.f32 %v7902_v50, %v8077_v36  ;;  %v8106_v63 = vpop.f32.mrf.mxu1  ;;  %7488 = vmatprep.subr.msk.bf16.mxu1 %vm1460_vm2, %v6193_v29  ;;  %v8124_v29 = vpack.c.bf16 %v8081_v41, %v8012_v54 }
  0xdf   :  { %11754 = vst [vmem:[#allocation17_spill] sm:$0xff] %v8081_v41  ;;  %11755 = vst [vmem:[#allocation18_spill] sm:$0xff] %v8089_v46  ;;  %v752_v27 = vadd.f32 %v8087_v45, %v7902_v50  ;;  %5223 = vrot.lane.b32.xlu1 %v7954_v22, %s7539_s19  ;;  %v8102_v56 = vpack.c.bf16 %v8089_v46, %v8046_v8  ;;  %v1122_v58 = vrot.slane %v8089_v46, 1  ;;  %5221 = vrot.lane.b32.xlu0 %v7932_v9, %s7539_s19 }
  0xe0   :  { %847 = vst.msk [vmem:[#allocation2 + $0x249] sm:$0xff] %vm28_vm3, %v781_v25  ;;  %813 = vst.msk [vmem:[#allocation2 + $0x81] sm:$0xff] %vm28_vm3, %v747_v7  ;;  %v8111_v0 = vpop.f32.mrf.mxu0  ;;  %v8115_v22 = vpack.c.bf16 %v8061_v18, %v8048_v10  ;;  %v1124_v3 = vrot.slane %v879_v52, 1  ;;  %v784_v20 = vadd.f32 %v8106_v63, %v7902_v50  ;;  %v8120_v25 = vld [vmem:[#allocation2 + $0x1d0] sm:$0xff]  ;;  %v1128_v52 = vsel %vm1105_vm6, %v1126_v51, %v1127_v30  ;;  %v8134_v14 = vpop.f32.mrf.mxu1 }
  0xe1   :  { %11756 = vst [vmem:[#allocation19_spill] sm:$0xff] %v8102_v56  ;;  %845 = vst.msk [vmem:[#allocation2 + $0x231] sm:$0xff] %vm28_vm3, %v779_v55  ;;  %v750_v9 = vadd.f32 %v7902_v50, %v8111_v0  ;;  %6893 = vmatmul.mubr.msk.bf16.gmra.mxu0 %vm28_vm3, %v8102_v56  ;;  %v1123_v7 = vsel %vm1105_vm6, %v1121_v57, %v1122_v58  ;;  %v1130_v55 = vsel %vm1105_vm6, %v1127_v30, %v1129_v53 }
  0xe2   :  { %11757 = vst [vmem:[#allocation20_spill] sm:$0xff] %v8115_v22  ;;  %11758 = vst [vmem:[#allocation21_spill] sm:$0xff] %v8120_v25  ;;  %v8137_v60 = vpop.f32.mrf.mxu0  ;;  %6896 = vmatprep.mubr.msk.bf16.mxu0 %vm28_vm3, %v8115_v22  ;;  %v782_v57 = vadd.f32 %v7902_v50, %v8134_v14 }
  0xe3   :  { %11759 = vst [vmem:[#allocation22_spill] sm:$0xff] %v8124_v29  ;;  %818 = vst.msk [vmem:[#allocation2 + $0xc1] sm:$0xff] %vm28_vm3, %v752_v27  ;;  %v1125_v27 = vsel %vm1105_vm6, %v1122_v58, %v1124_v3  ;;  %v753_v30 = vadd.f32 %v8137_v60, %v7902_v50  ;;  %5287 = vrot.lane.b32.xlu1 %v7971_v31, %s7539_s19  ;;  %v8154_v58 = vld [vmem:[#allocation2 + $0x90] sm:$0xff]  ;;  %v8156_v3 = vpop.f32.mrf.mxu1  ;;  %5285 = vrot.lane.b32.xlu0 %v7940_v12, %s7539_s19 }
  0xe4   :  { %850 = vst.msk [vmem:[#allocation2 + $0x271] sm:$0xff] %vm28_vm3, %v784_v20  ;;  %816 = vst.msk [vmem:[#allocation2 + $0xa9] sm:$0xff] %vm28_vm3, %v750_v9  ;;  %v8152_v1 = vpack.c.bf16 %v1125_v27, %v1123_v7  ;;  %v8160_v20 = vpack.c.bf16 %v8120_v25, %v8038_v2  ;;  %v8167_v53 = vpop.f32.mrf.mxu0  ;;  %v8169_v31 = vpack.c.bf16 %v1130_v55, %v1128_v52  ;;  %v8171_v7 = vld [vmem:[#allocation2 + $0x78] sm:$0xff]  ;;  %v1192_v9 = vrot.slane %v8120_v25, 1 }
  0xe5   :  { %11761 = vst [vmem:[#allocation24_spill] sm:$0xff] %v8154_v58  ;;  %11763 = vst [vmem:[#allocation26_spill] sm:$0xff] %v8162_v62  ;;  %v8173_v27 = vld [vmem:[#allocation2 + $0x98] sm:$0xff]  ;;  %v8175_v43 = vld [vmem:[#allocation2 + $0xa0] sm:$0x3]  ;;  %v785_v15 = vadd.f32 %v8156_v3, %v7902_v50  ;;  %v751_v12 = vadd.f32 %v7902_v50, %v8167_v53  ;;  %v8187_v55 = vpop.f32.mrf.mxu1  ;;  %v1136_v23 = vrot.slane %v8154_v58, 1 }
  0xe6   :  { %11760 = vst [vmem:[#allocation23_spill] sm:$0xff] %v8152_v1  ;;  %11762 = vst [vmem:[#allocation25_spill] sm:$0xff] %v8160_v20  ;;  %6827 = vmatmul.mubr.msk.bf16.gmra.mxu1 %vm28_vm3, %v8152_v1  ;;  %v1137_v52 = vrot.slane %v8173_v27, 1  ;;  %v8193_v19 = vpop.f32.mrf.mxu0  ;;  %v1139_v32 = vrot.slane %v8175_v43, 1  ;;  %v783_v38 = vadd.f32 %v7902_v50, %v8187_v55  ;;  %v1131_v37 = vrot.slane %v8171_v7, 1 }
  0xe7   :  { %11764 = vst [vmem:[#allocation27_spill] sm:$0xff] %v8169_v31  ;;  %11765 = vst [vmem:[#allocation28_spill] sm:$0xff] %v8171_v7  ;;  %6830 = vmatprep.mubr.msk.bf16.mxu1 %vm28_vm3, %v8169_v31  ;;  %v8198_v28 = vld [vmem:[#allocation2 + $0x88] sm:$0x3]  ;;  %v756_v13 = vadd.f32 %v8193_v19, %v7902_v50  ;;  %5235 = vrot.lane.b32.xlu1 %v8028_v61, %s7539_s19  ;;  %v8216_v31 = vpop.f32.mrf.mxu1  ;;  %v8225_v61 = vpack.c.bf16 %v8173_v27, %v8154_v58 }
  0xe8   :  { %11766 = vst [vmem:[#allocation29_spill] sm:$0xff] %v8173_v27  ;;  %11767 = vst [vmem:[#allocation30_spill] sm:$0xff] %v8175_v43  ;;  %5233 = vrot.lane.b32.xlu0 %v7978_v34, %s7539_s19  ;;  %v1134_v17 = vrot.slane %v8198_v28, 1  ;;  %v788_v6 = vadd.f32 %v8216_v31, %v7902_v50  ;;  %v1138_v22 = vsel %vm1105_vm6, %v1136_v23, %v1137_v52 }
  0xe9   :  { %848 = vst.msk [vmem:[#allocation2 + $0x259] sm:$0xff] %vm28_vm3, %v782_v57  ;;  %819 = vst.msk [vmem:[#allocation2 + $0xc9] sm:$0xff] %vm28_vm3, %v753_v30  ;;  %v8195_v30 = vld [vmem:[#allocation2 + $0x80] sm:$0xff]  ;;  %v1194_v57 = vrot.slane %v8162_v62, 1  ;;  %v1140_v56 = vsel %vm1105_vm6, %v1137_v52, %v1139_v32  ;;  %v8239_v49 = vpop.f32.mrf.mxu1 }
  0xea   :  { %11768 = vst [vmem:[#allocation31_spill] sm:$0xff] %v8195_v30  ;;  %11769 = vst [vmem:[#allocation32_spill] sm:$0xff] %v8198_v28  ;;  %v8212_v51 = vpack.c.bf16 %v8195_v30, %v8171_v7  ;;  %v11788_v7 = vrot.slane %v8081_v41, 1 }
  0xeb   :  { %851 = vst.msk [vmem:[#allocation2 + $0x279] sm:$0xff] %vm28_vm3, %v785_v15  ;;  %817 = vst.msk [vmem:[#allocation2 + $0xb1] sm:$0xff] %vm28_vm3, %v751_v12  ;;  %v1132_v15 = vrot.slane %v8195_v30, 1  ;;  %v8221_v12 = vpop.f32.mrf.mxu0  ;;  %v1195_v32 = vsel %vm1105_vm6, %v1192_v9, %v1194_v57  ;;  %5299 = vrot.lane.b32.xlu1 %v8050_v11, %s7539_s19  ;;  %v8271_v57 = vpack.c.bf16 %v1140_v56, %v1138_v22 }
  0xec   :  { %11770 = vst [vmem:[#allocation33_spill] sm:$0xff] %v8212_v51  ;;  %11771 = vst [vmem:[#allocation34_spill] sm:$0xff] %v8225_v61  ;;  %v754_v1 = vadd.f32 %v7902_v50, %v8221_v12  ;;  %6897 = vmatmul.mubr.msk.bf16.gmra.mxu0 %vm28_vm3, %v8212_v51  ;;  %v786_v51 = vadd.f32 %v7902_v50, %v8239_v49  ;;  %5297 = vrot.lane.b32.xlu0 %v7999_v47, %s7539_s19 }
  0xed   :  { %849 = vst.msk [vmem:[#allocation2 + $0x261] sm:$0xff] %vm28_vm3, %v783_v38  ;;  %822 = vst.msk [vmem:[#allocation2 + $0xf1] sm:$0xff] %vm28_vm3, %v756_v13  ;;  %v1133_v34 = vsel %vm1105_vm6, %v1131_v37, %v1132_v15  ;;  %v930_v38 = vld [vmem:[#allocation2 + $0x1f0] sm:$0x3]  ;;  %v8241_v44 = vpop.f32.mrf.mxu0  ;;  %6900 = vmatprep.mubr.msk.bf16.mxu0 %vm28_vm3, %v8225_v61  ;;  %v1135_v13 = vsel %vm1105_vm6, %v1132_v15, %v1134_v17  ;;  %v11772_v37 = vrot.slane %v8038_v2, 1  ;;  %v8262_v15 = vld [vmem:[#allocation2 + $0xc0] sm:$0xff]  ;;  %v8264_v2 = vpop.f32.mrf.mxu1 }
  0xee   :  { %854 = vst.msk [vmem:[#allocation2 + $0x2a1] sm:$0xff] %vm28_vm3, %v788_v6  ;;  %820 = vst.msk [vmem:[#allocation2 + $0xd9] sm:$0xff] %vm28_vm3, %v754_v1  ;;  %v757_v61 = vadd.f32 %v8241_v44, %v7902_v50  ;;  %v8260_v6 = vpack.c.bf16 %v1135_v13, %v1133_v34  ;;  %v789_v34 = vadd.f32 %v8264_v2, %v7902_v50  ;;  %v1199_v13 = vrot.slane %v930_v38, 1 }
  0xef   :  { %v1193_v23 = vsel %vm1105_vm6, %v11772_v37, %v1192_v9  ;;  %11774 = vst [vmem:[#allocation36_spill] sm:$0xff] %v8262_v15  ;;  %v8269_v1 = vpop.f32.mrf.mxu0  ;;  %11775 = vst [vmem:[#allocation37_spill] sm:$0xff] %v8271_v57  ;;  %v8273_v37 = vld [vmem:[#allocation2 + $0xa8] sm:$0xff]  ;;  %v8288_v22 = vpop.f32.mrf.mxu1  ;;  %v1146_v52 = vrot.slane %v8262_v15, 1  ;;  %5231 = vrot.lane.b32.xlu1 %v8057_v16, %s7539_s19 }
  0xf0   :  { %11773 = vst [vmem:[#allocation35_spill] sm:$0xff] %v8260_v6  ;;  %11776 = vst [vmem:[#allocation38_spill] sm:$0xff] %v8273_v37  ;;  %v8275_v17 = vld [vmem:[#allocation2 + $0xc8] sm:$0xff]  ;;  %v8277_v11 = vld [vmem:[#allocation2 + $0xd0] sm:$0x3]  ;;  %v755_v47 = vadd.f32 %v7902_v50, %v8269_v1  ;;  %6831 = vmatmul.mubr.msk.bf16.gmra.mxu1 %vm28_vm3, %v8260_v6  ;;  %v8290_v9 = vpack.c.bf16 %v1195_v32, %v1193_v23  ;;  %v787_v23 = vadd.f32 %v7902_v50, %v8288_v22 }
  0xf1   :  { %11777 = vst [vmem:[#allocation39_spill] sm:$0xff] %v8275_v17  ;;  %11778 = vst [vmem:[#allocation40_spill] sm:$0xff] %v8277_v11  ;;  %v1147_v56 = vrot.slane %v8275_v17, 1  ;;  %6834 = vmatprep.mubr.msk.bf16.mxu1 %vm28_vm3, %v8271_v57  ;;  %v8295_v38 = vpop.f32.mrf.mxu0  ;;  %v1149_v6 = vrot.slane %v8277_v11, 1  ;;  %v11782_v32 = vrot.slane %v8081_v41, 1  ;;  %v1141_v11 = vrot.slane %v8273_v37, 1  ;;  %v8322_v58 = vpop.f32.mrf.mxu1  ;;  %5229 = vrot.lane.b32.xlu0 %v8002_v48, %s7539_s19 }
  0xf2   :  { %852 = vst.msk [vmem:[#allocation2 + $0x289] sm:$0xff] %vm28_vm3, %v786_v51  ;;  %823 = vst.msk [vmem:[#allocation2 + $0xf9] sm:$0xff] %vm28_vm3, %v757_v61  ;;  %v8297_v61 = vld [vmem:[#allocation2 + $0xb0] sm:$0xff]  ;;  %v8300_v25 = vld [vmem:[#allocation2 + $0xb8] sm:$0x3]  ;;  %v11783_v51 = vrot.slane %v8012_v54, 1  ;;  %v760_v62 = vadd.f32 %v8295_v38, %v7902_v50  ;;  %v8334_v16 = vpack.c.bf16 %v8275_v17, %v8262_v15  ;;  %v792_v28 = vadd.f32 %v8322_v58, %v7902_v50 }
  0xf3   :  { %11779 = vst [vmem:[#allocation41_spill] sm:$0xff] %v8290_v9  ;;  %11780 = vst [vmem:[#allocation42_spill] sm:$0xff] %v8297_v61  ;;  %v1142_v43 = vrot.slane %v8297_v61, 1  ;;  %v8324_v54 = vld [vmem:[#allocation2 + $0x1f8] sm:$0xff]  ;;  %v1200_v10 = vsel %vm1105_vm6, %v11788_v7, %v1199_v13  ;;  %v8351_v8 = vpop.f32.mrf.mxu1  ;;  %5295 = vrot.lane.b32.xlu1 %v8077_v36, %s7539_s19 }
  0xf4   :  { %11781 = vst [vmem:[#allocation43_spill] sm:$0xff] %v8300_v25  ;;  %855 = vst.msk [vmem:[#allocation2 + $0x2a9] sm:$0xff] %vm28_vm3, %v789_v34  ;;  %v1198_v57 = vsel %vm1105_vm6, %v11783_v51, %v11782_v32  ;;  %v8318_v34 = vpack.c.bf16 %v8297_v61, %v8273_v37  ;;  %v8326_v51 = vld [vmem:[#allocation2 + $0x200] sm:$0xff]  ;;  %v1144_v32 = vrot.slane %v8300_v25, 1  ;;  %v1148_v25 = vsel %vm1105_vm6, %v1146_v52, %v1147_v56  ;;  %v8434_v15 = vld [vmem:[#allocation2 + $0x218] sm:$0xff] }
  0xf5   :  { %821 = vst.msk [vmem:[#allocation2 + $0xe1] sm:$0xff] %vm28_vm3, %v755_v47  ;;  %11785 = vst [vmem:[#allocation45_spill] sm:$0xff] %v8324_v54  ;;  %v8330_v47 = vpop.f32.mrf.mxu0  ;;  %v1143_v18 = vsel %vm1105_vm6, %v1141_v11, %v1142_v43  ;;  %v790_v7 = vadd.f32 %v7902_v50, %v8351_v8  ;;  %v8364_v52 = vpack.c.bf16 %v8326_v51, %v8324_v54  ;;  %5293 = vrot.lane.b32.xlu0 %v8024_v59, %s7539_s19 }
  0xf6   :  { %11784 = vst [vmem:[#allocation44_spill] sm:$0xff] %v8318_v34  ;;  %11786 = vst [vmem:[#allocation46_spill] sm:$0xff] %v8326_v51  ;;  %v758_v48 = vadd.f32 %v7902_v50, %v8330_v47  ;;  %6901 = vmatmul.mubr.msk.bf16.gmra.mxu0 %vm28_vm3, %v8318_v34 }
  0xf7   :  { %11787 = vst [vmem:[#allocation47_spill] sm:$0xff] %v8334_v16  ;;  %853 = vst.msk [vmem:[#allocation2 + $0x291] sm:$0xff] %vm28_vm3, %v787_v23  ;;  %v1150_v23 = vsel %vm1105_vm6, %v1147_v56, %v1149_v6  ;;  %v8354_v46 = vpop.f32.mrf.mxu0  ;;  %6904 = vmatprep.mubr.msk.bf16.mxu0 %vm28_vm3, %v8334_v16  ;;  %v8377_v56 = vpop.f32.mrf.mxu1  ;;  %v8386_v6 = vld [vmem:[#allocation2 + $0xd8] sm:$0xff]  ;;  %5243 = vrot.lane.b32.xlu1 %v8137_v60, %s7539_s19 }
  0xf8   :  { %826 = vst.msk [vmem:[#allocation2 + $0x121] sm:$0xff] %vm28_vm3, %v760_v62  ;;  %v1145_v62 = vsel %vm1105_vm6, %v1142_v43, %v1144_v32  ;;  %858 = vst.msk [vmem:[#allocation2 + $0x2d1] sm:$0xff] %vm28_vm3, %v792_v28  ;;  %v761_v11 = vadd.f32 %v8354_v46, %v7902_v50  ;;  %v8375_v43 = vld [vmem:[#allocation2 + $0xf0] sm:$0xff]  ;;  %v8384_v41 = vpack.c.bf16 %v1150_v23, %v1148_v25 }
  0xf9   :  { %11789 = vst [vmem:[#allocation48_spill] sm:$0xff] %v8364_v52  ;;  %824 = vst.msk [vmem:[#allocation2 + $0x109] sm:$0xff] %vm28_vm3, %v758_v48  ;;  %v8373_v28 = vpack.c.bf16 %v1145_v62, %v1143_v18  ;;  %v8382_v48 = vpop.f32.mrf.mxu0  ;;  %v8388_v13 = vld [vmem:[#allocation2 + $0xf8] sm:$0xff]  ;;  %v8390_v36 = vld [vmem:[#allocation2 + $0x100] sm:$0x3]  ;;  %v793_v18 = vadd.f32 %v8377_v56, %v7902_v50  ;;  %v8395_v62 = vpack.c.bf16 %v1200_v10, %v1198_v57  ;;  %5241 = vrot.lane.b32.xlu0 %v8087_v45, %s7539_s19 }
  0xfa   :  { %11791 = vst [vmem:[#allocation50_spill] sm:$0xff] %v8375_v43  ;;  %11792 = vst [vmem:[#allocation51_spill] sm:$0xff] %v8384_v41  ;;  %v759_v59 = vadd.f32 %v7902_v50, %v8382_v48  ;;  %v1157_v25 = vrot.slane %v8388_v13, 1  ;;  %v1159_v34 = vrot.slane %v8390_v36, 1  ;;  %v8442_v60 = vpack.c.bf16 %v8388_v13, %v8375_v43 }
  0xfb   :  { %11790 = vst [vmem:[#allocation49_spill] sm:$0xff] %v8373_v28  ;;  %11793 = vst [vmem:[#allocation52_spill] sm:$0xff] %v8386_v6  ;;  %6835 = vmatmul.mubr.msk.bf16.gmra.mxu1 %vm28_vm3, %v8373_v28  ;;  %v8410_v10 = vpop.f32.mrf.mxu0  ;;  %5307 = vrot.lane.b32.xlu1 %v8156_v3, %s7539_s19 }
  0xfc   :  { %11794 = vst [vmem:[#allocation53_spill] sm:$0xff] %v8388_v13  ;;  %11795 = vst [vmem:[#allocation54_spill] sm:$0xff] %v8390_v36  ;;  %6838 = vmatprep.mubr.msk.bf16.mxu1 %vm28_vm3, %v8384_v41  ;;  %v8412_v57 = vld [vmem:[#allocation2 + $0xe0] sm:$0xff]  ;;  %v8415_v28 = vld [vmem:[#allocation2 + $0xe8] sm:$0x3]  ;;  %v764_v16 = vadd.f32 %v8410_v10, %v7902_v50  ;;  %v1151_v41 = vrot.slane %v8386_v6, 1  ;;  %v1160_v21 = vsel %vm1105_vm6, %v1157_v25, %v1159_v34 }
  0xfd   :  { %856 = vst.msk [vmem:[#allocation2 + $0x2b9] sm:$0xff] %vm28_vm3, %v790_v7  ;;  %11796 = vst [vmem:[#allocation55_spill] sm:$0xff] %v8395_v62  ;;  %v8405_v7 = vpop.f32.mrf.mxu1  ;;  %v8428_v32 = vpack.c.bf16 %v8412_v57, %v8386_v6  ;;  %v1152_v36 = vrot.slane %v8412_v57, 1  ;;  %v1154_v17 = vrot.slane %v8415_v28, 1  ;;  %5305 = vrot.lane.b32.xlu0 %v8106_v63, %s7539_s19 }
  0xfe   :  { %827 = vst.msk [vmem:[#allocation2 + $0x129] sm:$0xff] %vm28_vm3, %v761_v11  ;;  %11797 = vst [vmem:[#allocation56_spill] sm:$0xff] %v8410_v10  ;;  %v1156_v11 = vrot.slane %v8375_v43, 1  ;;  %v791_v23 = vadd.f32 %v7902_v50, %v8405_v7 }
  0xff   :  { %859 = vst.msk [vmem:[#allocation2 + $0x2d9] sm:$0xff] %vm28_vm3, %v793_v18  ;;  %825 = vst.msk [vmem:[#allocation2 + $0x111] sm:$0xff] %vm28_vm3, %v759_v59  ;;  %v8432_v18 = vld [vmem:[#allocation2 + $0x210] sm:$0xff]  ;;  %v8438_v59 = vpop.f32.mrf.mxu0  ;;  %6905 = vmatmul.mubr.msk.bf16.gmra.mxu0 %vm28_vm3, %v8428_v32  ;;  %v1153_v45 = vsel %vm1105_vm6, %v1151_v41, %v1152_v36  ;;  %v8456_v26 = vpop.f32.mrf.mxu1  ;;  %v8477_v37 = vld [vmem:[#allocation2 + $0x120] sm:$0xff]  ;;  %5239 = vrot.lane.b32.xlu1 %v8167_v53, %s7539_s19  ;;  %v11817_v53 = vrot.slane %v8326_v51, 1 }
 0x100   :  { %11798 = vst [vmem:[#allocation57_spill] sm:$0xff] %v8428_v32  ;;  %11799 = vst [vmem:[#allocation58_spill] sm:$0xff] %v8432_v18  ;;  %v762_v30 = vadd.f32 %v7902_v50, %v8438_v59  ;;  %v1158_v10 = vsel %vm1105_vm6, %v1156_v11, %v1157_v25  ;;  %6908 = vmatprep.mubr.msk.bf16.mxu0 %vm28_vm3, %v8442_v60  ;;  %v8467_v41 = vpack.c.bf16 %v8434_v15, %v8432_v18  ;;  %v8488_v34 = vld [vmem:[#allocation2 + $0x108] sm:$0xff] }
 0x101   :  { %11800 = vst [vmem:[#allocation59_spill] sm:$0xff] %v8434_v15  ;;  %11801 = vst [vmem:[#allocation60_spill] sm:$0xff] %v8438_v59  ;;  %v8459_v27 = vpop.f32.mrf.mxu0  ;;  %v1166_v59 = vrot.slane %v8477_v37, 1  ;;  %5237 = vrot.lane.b32.xlu0 %v8111_v0, %s7539_s19 }
 0x102   :  { %11802 = vst [vmem:[#allocation61_spill] sm:$0xff] %v8442_v60  ;;  %857 = vst.msk [vmem:[#allocation2 + $0x2c1] sm:$0xff] %vm28_vm3, %v791_v23  ;;  %v1155_v23 = vsel %vm1105_vm6, %v1152_v36, %v1154_v17  ;;  %v765_v25 = vadd.f32 %v8459_v27, %v7902_v50  ;;  %v8480_v36 = vld [vmem:[#allocation2 + $0x208] sm:$0x3]  ;;  %v796_v17 = vadd.f32 %v8456_v26, %v7902_v50 }
 0x103   :  { %830 = vst.msk [vmem:[#allocation2 + $0x151] sm:$0xff] %vm28_vm3, %v764_v16  ;;  %11803 = vst [vmem:[#allocation62_spill] sm:$0xff] %v8456_v26  ;;  %v8475_v11 = vpack.c.bf16 %v1155_v23, %v1153_v45  ;;  %v8486_v16 = vpack.c.bf16 %v1160_v21, %v1158_v10  ;;  %v8506_v45 = vld [vmem:[#allocation2 + $0x220] sm:$0x3]  ;;  %v8508_v23 = vpop.f32.mrf.mxu1  ;;  %v1204_v13 = vrot.slane %v8480_v36, 1  ;;  %5303 = vrot.lane.b32.xlu1 %v8187_v55, %s7539_s19 }
 0x104   :  { %11804 = vst [vmem:[#allocation63_spill] sm:$0xff] %v8459_v27  ;;  %11805 = vst [vmem:[#allocation64_spill] sm:$0xff] %v8467_v41  ;;  %v794_v32 = vadd.f32 %v7902_v50, %v8508_v23  ;;  %v1209_v26 = vrot.slane %v8506_v45, 1 }
 0x105   :  { %828 = vst.msk [vmem:[#allocation2 + $0x139] sm:$0xff] %vm28_vm3, %v762_v30  ;;  %11806 = vst [vmem:[#allocation65_spill] sm:$0xff] %v8475_v11  ;;  %v8484_v30 = vpop.f32.mrf.mxu0  ;;  %v8490_v60 = vld [vmem:[#allocation2 + $0x128] sm:$0xff]  ;;  %v8492_v3 = vld [vmem:[#allocation2 + $0x130] sm:$0x3]  ;;  %6839 = vmatmul.mubr.msk.bf16.gmra.mxu1 %vm28_vm3, %v8475_v11  ;;  %5301 = vrot.lane.b32.xlu0 %v8134_v14, %s7539_s19 }
 0x106   :  { %11807 = vst [vmem:[#allocation66_spill] sm:$0xff] %v8480_v36  ;;  %11808 = vst [vmem:[#allocation67_spill] sm:$0xff] %v8484_v30  ;;  %v763_v21 = vadd.f32 %v7902_v50, %v8484_v30  ;;  %v1167_v10 = vrot.slane %v8490_v60, 1  ;;  %6842 = vmatprep.mubr.msk.bf16.mxu1 %vm28_vm3, %v8486_v16  ;;  %v8514_v63 = vld [vmem:[#allocation2 + $0x110] sm:$0xff]  ;;  %v8517_v43 = vld [vmem:[#allocation2 + $0x118] sm:$0x3] }
 0x107   :  { %11809 = vst [vmem:[#allocation68_spill] sm:$0xff] %v8486_v16  ;;  %11810 = vst [vmem:[#allocation69_spill] sm:$0xff] %v8492_v3  ;;  %v1169_v11 = vrot.slane %v8492_v3, 1  ;;  %v8531_v30 = vpack.c.bf16 %v8514_v63, %v8488_v34  ;;  %v1161_v3 = vrot.slane %v8488_v34, 1  ;;  %v1162_v6 = vrot.slane %v8514_v63, 1  ;;  %5251 = vrot.lane.b32.xlu1 %v8241_v44, %s7539_s19 }
 0x108   :  { %831 = vst.msk [vmem:[#allocation2 + $0x159] sm:$0xff] %vm28_vm3, %v765_v25  ;;  %11811 = vst [vmem:[#allocation70_spill] sm:$0xff] %v8506_v45  ;;  %v8512_v25 = vpop.f32.mrf.mxu0  ;;  %v1168_v24 = vsel %vm1105_vm6, %v1166_v59, %v1167_v10 }
 0x109   :  { %11812 = vst [vmem:[#allocation71_spill] sm:$0xff] %v8508_v23  ;;  %11813 = vst [vmem:[#allocation72_spill] sm:$0xff] %v8512_v25  ;;  %v768_v16 = vadd.f32 %v8512_v25, %v7902_v50  ;;  %v1164_v25 = vrot.slane %v8517_v43, 1  ;;  %v11818_v23 = vrot.slane %v8324_v54, 1  ;;  %6909 = vmatmul.mubr.msk.bf16.gmra.mxu0 %vm28_vm3, %v8531_v30  ;;  %v1163_v27 = vsel %vm1105_vm6, %v1161_v3, %v1162_v6 }
 0x10a   :  { %862 = vst.msk [vmem:[#allocation2 + $0x301] sm:$0xff] %vm28_vm3, %v796_v17  ;;  %829 = vst.msk [vmem:[#allocation2 + $0x141] sm:$0xff] %vm28_vm3, %v763_v21  ;;  %v8537_v17 = vpop.f32.mrf.mxu0  ;;  %v8541_v21 = vpack.c.bf16 %v8490_v60, %v8477_v37  ;;  %v1170_v54 = vsel %vm1105_vm6, %v1167_v10, %v1169_v11  ;;  %v8574_v3 = vld [vmem:[#allocation2 + $0x150] sm:$0xff]  ;;  %v11822_v10 = vmov %v11817_v53  ;;  %5249 = vrot.lane.b32.xlu0 %v8193_v19, %s7539_s19  ;;  %v8656_v19 = vld [vmem:[#allocation2 + $0x240] sm:$0xff] }
 0x10b   :  { %11814 = vst [vmem:[#allocation73_spill] sm:$0xff] %v8531_v30  ;;  %11815 = vst [vmem:[#allocation74_spill] sm:$0xff] %v8537_v17  ;;  %v1203_v61 = vsel %vm1105_vm6, %v11818_v23, %v11817_v53  ;;  %v766_v0 = vadd.f32 %v7902_v50, %v8537_v17  ;;  %v1205_v53 = vsel %vm1105_vm6, %v11822_v10, %v1204_v13  ;;  %v8580_v23 = vpop.f32.mrf.mxu1  ;;  %v11828_v13 = vrot.slane %v8434_v15, 1 }
 0x10c   :  { %11816 = vst [vmem:[#allocation75_spill] sm:$0xff] %v8541_v21  ;;  %860 = vst.msk [vmem:[#allocation2 + $0x2e9] sm:$0xff] %vm28_vm3, %v794_v32  ;;  %v8561_v45 = vpop.f32.mrf.mxu0  ;;  %6912 = vmatprep.mubr.msk.bf16.mxu0 %vm28_vm3, %v8541_v21  ;;  %v8587_v55 = vpack.c.bf16 %v1170_v54, %v1168_v24  ;;  %v11829_v10 = vrot.slane %v8432_v18, 1  ;;  %5315 = vrot.lane.b32.xlu1 %v8264_v2, %s7539_s19 }
 0x10d   :  { %834 = vst.msk [vmem:[#allocation2 + $0x181] sm:$0xff] %vm28_vm3, %v768_v16  ;;  %11819 = vst [vmem:[#allocation76_spill] sm:$0xff] %v8561_v45  ;;  %v1165_v16 = vsel %vm1105_vm6, %v1162_v6, %v1164_v25  ;;  %v769_v59 = vadd.f32 %v8561_v45, %v7902_v50  ;;  %v797_v6 = vadd.f32 %v8580_v23, %v7902_v50  ;;  %v11830_v21 = vmov %v11828_v13  ;;  %v8658_v45 = vld [vmem:[#allocation2 + $0x248] sm:$0xff] }
 0x10e   :  { %832 = vst.msk [vmem:[#allocation2 + $0x169] sm:$0xff] %vm28_vm3, %v766_v0  ;;  %v8572_v11 = vpack.c.bf16 %v1165_v16, %v1163_v27  ;;  %11821 = vst [vmem:[#allocation78_spill] sm:$0xff] %v8574_v3  ;;  %v8585_v25 = vpop.f32.mrf.mxu0  ;;  %v8589_v27 = vld [vmem:[#allocation2 + $0x138] sm:$0xff]  ;;  %v1208_v32 = vsel %vm1105_vm6, %v11829_v10, %v11828_v13  ;;  %v1210_v30 = vsel %vm1105_vm6, %v11830_v21, %v1209_v26  ;;  %v1176_v10 = vrot.slane %v8574_v3, 1 }
 0x10f   :  { %11823 = vst [vmem:[#allocation79_spill] sm:$0xff] %v8585_v25  ;;  %11824 = vst [vmem:[#allocation80_spill] sm:$0xff] %v8587_v55  ;;  %v8591_v0 = vld [vmem:[#allocation2 + $0x158] sm:$0xff]  ;;  %v8593_v16 = vld [vmem:[#allocation2 + $0x160] sm:$0x3]  ;;  %v767_v54 = vadd.f32 %v7902_v50, %v8585_v25  ;;  %v1171_v21 = vrot.slane %v8589_v27, 1  ;;  %v8648_v18 = vpack.c.bf16 %v1210_v30, %v1208_v32  ;;  %5313 = vrot.lane.b32.xlu0 %v8216_v31, %s7539_s19 }
 0x110   :  { %11820 = vst [vmem:[#allocation77_spill] sm:$0xff] %v8572_v11  ;;  %11825 = vst [vmem:[#allocation81_spill] sm:$0xff] %v8589_v27  ;;  %6843 = vmatmul.mubr.msk.bf16.gmra.mxu1 %vm28_vm3, %v8572_v11  ;;  %v1177_v14 = vrot.slane %v8591_v0, 1  ;;  %v1179_v17 = vrot.slane %v8593_v16, 1  ;;  %v8621_v11 = vpack.c.bf16 %v1205_v53, %v1203_v61  ;;  %v8634_v25 = vld [vmem:[#allocation2 + $0x228] sm:$0xff]  ;;  %v8636_v61 = vld [vmem:[#allocation2 + $0x230] sm:$0xff]  ;;  %v8638_v53 = vpop.f32.mrf.mxu1  ;;  %v8645_v44 = vpack.c.bf16 %v8591_v0, %v8574_v3 }
 0x111   :  { %11826 = vst [vmem:[#allocation82_spill] sm:$0xff] %v8591_v0  ;;  %11827 = vst [vmem:[#allocation83_spill] sm:$0xff] %v8593_v16  ;;  %6846 = vmatprep.mubr.msk.bf16.mxu1 %vm28_vm3, %v8587_v55  ;;  %v8618_v24 = vld [vmem:[#allocation2 + $0x148] sm:$0x3]  ;;  %v8660_v16 = vld [vmem:[#allocation2 + $0x238] sm:$0x3]  ;;  %v8670_v32 = vpack.c.bf16 %v8636_v61, %v8634_v25  ;;  %v8697_v31 = vpack.c.bf16 %v8658_v45, %v8656_v19  ;;  %5247 = vrot.lane.b32.xlu1 %v8269_v1, %s7539_s19 }
 0x112   :  { %835 = vst.msk [vmem:[#allocation2 + $0x189] sm:$0xff] %vm28_vm3, %v769_v59  ;;  %v8615_v59 = vld [vmem:[#allocation2 + $0x140] sm:$0xff]  ;;  %11831 = vst [vmem:[#allocation84_spill] sm:$0xff] %v8618_v24  ;;  %v1174_v55 = vrot.slane %v8618_v24, 1  ;;  %v1180_v51 = vsel %vm1105_vm6, %v1177_v14, %v1179_v17  ;;  %v1212_v17 = vrot.slane %v8636_v61, 1 }
 0x113   :  { %11832 = vst [vmem:[#allocation85_spill] sm:$0xff] %v8621_v11  ;;  %863 = vst.msk [vmem:[#allocation2 + $0x309] sm:$0xff] %vm28_vm3, %v797_v6  ;;  %v8629_v26 = vpack.c.bf16 %v8615_v59, %v8589_v27  ;;  %v1172_v13 = vrot.slane %v8615_v59, 1  ;;  %v1178_v6 = vsel %vm1105_vm6, %v1176_v10, %v1177_v14  ;;  %v1216_v14 = vrot.slane %v8656_v19, 1  ;;  %v8713_v3 = vld [vmem:[#allocation2 + $0x260] sm:$0xff]  ;;  %5245 = vrot.lane.b32.xlu0 %v8221_v12, %s7539_s19 }
 0x114   :  { %833 = vst.msk [vmem:[#allocation2 + $0x171] sm:$0xff] %vm28_vm3, %v767_v54  ;;  %11834 = vst [vmem:[#allocation87_spill] sm:$0xff] %v8634_v25  ;;  %v8662_v54 = vpop.f32.mrf.mxu1  ;;  %v11863_v27 = vpack.c.bf16 %v7987_v42, %v7976_v33 }
 0x115   :  { %11833 = vst [vmem:[#allocation86_spill] sm:$0xff] %v8629_v26  ;;  %11835 = vst [vmem:[#allocation88_spill] sm:$0xff] %v8636_v61  ;;  %6913 = vmatmul.mubr.msk.bf16.gmra.mxu0 %vm28_vm3, %v8629_v26  ;;  %v1173_v15 = vsel %vm1105_vm6, %v1171_v21, %v1172_v13  ;;  %v1175_v36 = vsel %vm1105_vm6, %v1172_v13, %v1174_v55  ;;  %v1211_v55 = vrot.slane %v8634_v25, 1  ;;  %v1217_v13 = vrot.slane %v8658_v45, 1 }
 0x116   :  { %11836 = vst [vmem:[#allocation89_spill] sm:$0xff] %v8638_v53  ;;  %11837 = vst [vmem:[#allocation90_spill] sm:$0xff] %v8645_v44  ;;  %6916 = vmatprep.mubr.msk.bf16.mxu0 %vm28_vm3, %v8645_v44  ;;  %v8666_v30 = vpack.c.bf16 %v1175_v36, %v1173_v15  ;;  %v8680_v36 = vld [vmem:[#allocation2 + $0x250] sm:$0x3]  ;;  %v8684_v21 = vpack.c.bf16 %v1180_v51, %v1178_v6  ;;  %v8686_v44 = vld [vmem:[#allocation2 + $0x168] sm:$0xff]  ;;  %v1214_v26 = vrot.slane %v8660_v16, 1  ;;  %v8702_v15 = vpop.f32.mrf.mxu1  ;;  %5311 = vrot.lane.b32.xlu1 %v8288_v22, %s7539_s19 }
 0x117   :  { %11838 = vst [vmem:[#allocation91_spill] sm:$0xff] %v8648_v18  ;;  %11839 = vst [vmem:[#allocation92_spill] sm:$0xff] %v8656_v19  ;;  %v8700_v6 = vld [vmem:[#allocation2 + $0x258] sm:$0xff]  ;;  %v1213_v10 = vsel %vm1105_vm6, %v1211_v55, %v1212_v17  ;;  %v1219_v61 = vrot.slane %v8680_v36, 1  ;;  %v795_v51 = vadd.f32 %v7902_v50, %v8638_v53  ;;  %v1181_v19 = vrot.slane %v8686_v44, 1  ;;  %5309 = vrot.lane.b32.xlu0 %v8239_v49, %s7539_s19 }
 0x118   :  { %11840 = vst [vmem:[#allocation93_spill] sm:$0xff] %v8658_v45  ;;  %11841 = vst [vmem:[#allocation94_spill] sm:$0xff] %v8660_v16  ;;  %6847 = vmatmul.mubr.msk.bf16.gmra.mxu1 %vm28_vm3, %v8666_v30  ;;  %v8726_v45 = vld [vmem:[#allocation2 + $0x268] sm:$0x3]  ;;  %v1218_v53 = vsel %vm1105_vm6, %v1216_v14, %v1217_v13  ;;  %v8741_v12 = vpack.c.bf16 %v8713_v3, %v8700_v6  ;;  %v1221_v50 = vrot.slane %v8700_v6, 1 }
 0x119   :  { %11842 = vst [vmem:[#allocation95_spill] sm:$0xff] %v8662_v54  ;;  %11843 = vst [vmem:[#allocation96_spill] sm:$0xff] %v8666_v30  ;;  %6850 = vmatprep.mubr.msk.bf16.mxu1 %vm28_vm3, %v8684_v21  ;;  %v8748_v14 = vld [vmem:[#allocation2 + $0x280] sm:$0x3] }
 0x11a   :  { %11844 = vst [vmem:[#allocation97_spill] sm:$0xff] %v8670_v32  ;;  %11845 = vst [vmem:[#allocation98_spill] sm:$0xff] %v8680_v36  ;;  %v1215_v36 = vsel %vm1105_vm6, %v1212_v17, %v1214_v26  ;;  %v8744_v26 = vld [vmem:[#allocation2 + $0x270] sm:$0xff]  ;;  %v8746_v17 = vld [vmem:[#allocation2 + $0x278] sm:$0xff]  ;;  %5259 = vrot.lane.b32.xlu1 %v8354_v46, %s7539_s19 }
 0x11b   :  { %11846 = vst [vmem:[#allocation99_spill] sm:$0xff] %v8684_v21  ;;  %11847 = vst [vmem:[#allocation100_spill] sm:$0xff] %v8686_v44  ;;  %v8706_v25 = vld [vmem:[#allocation2 + $0x170] sm:$0xff]  ;;  %v8708_v2 = vld [vmem:[#allocation2 + $0x178] sm:$0x3]  ;;  %v8763_v16 = vpack.c.bf16 %v1215_v36, %v1213_v10  ;;  %v8781_v22 = vpack.c.bf16 %v8746_v17, %v8744_v26  ;;  %v1226_v10 = vrot.slane %v8744_v26, 1  ;;  %5257 = vrot.lane.b32.xlu0 %v8295_v38, %s7539_s19 }
 0x11c   :  { %11848 = vst [vmem:[#allocation101_spill] sm:$0xff] %v8697_v31  ;;  %11849 = vst [vmem:[#allocation102_spill] sm:$0xff] %v8700_v6  ;;  %v8721_v21 = vpack.c.bf16 %v8706_v25, %v8686_v44  ;;  %v1182_v30 = vrot.slane %v8706_v25, 1  ;;  %v1184_v55 = vrot.slane %v8708_v2, 1  ;;  %v1227_v36 = vrot.slane %v8746_v17, 1 }
 0x11d   :  { %11850 = vst [vmem:[#allocation103_spill] sm:$0xff] %v8702_v15  ;;  %11851 = vst [vmem:[#allocation104_spill] sm:$0xff] %v8713_v3  ;;  %v1229_v44 = vrot.slane %v8748_v14, 1 }
 0x11e   :  { %11852 = vst [vmem:[#allocation105_spill] sm:$0xff] %v8721_v21  ;;  %861 = vst.msk [vmem:[#allocation2 + $0x2f1] sm:$0xff] %vm28_vm3, %v795_v51  ;;  %6917 = vmatmul.mubr.msk.bf16.gmra.mxu0 %vm28_vm3, %v8721_v21  ;;  %v1183_v0 = vsel %vm1105_vm6, %v1181_v19, %v1182_v30  ;;  %v1185_v24 = vsel %vm1105_vm6, %v1182_v30, %v1184_v55  ;;  %v8750_v51 = vpop.f32.mrf.mxu1  ;;  %v11857_v19 = vpack.c.bf16 %v7924_v5, %v7922_v4  ;;  %v8775_v4 = vld [vmem:[#allocation2 + $0x2a0] sm:$0xff] }
 0x11f   :  { %11853 = vst [vmem:[#allocation106_spill] sm:$0xff] %v8741_v12  ;;  %11854 = vst [vmem:[#allocation107_spill] sm:$0xff] %v8748_v14  ;;  %v8752_v1 = vpack.c.bf16 %v1185_v24, %v1183_v0  ;;  %v1220_v30 = vsel %vm1105_vm6, %v1217_v13, %v1219_v61  ;;  %v1222_v55 = vrot.slane %v8713_v3, 1  ;;  %v1224_v21 = vrot.slane %v8726_v45, 1  ;;  %v7528_v24 = vld [vmem:[%s11497_s2] ss:$0 sm:$0xff]  ;;  %5323 = vrot.lane.b32.xlu1 %v8377_v56, %s7539_s19 }
 0x120   :  { %11855 = vst [vmem:[#allocation108_spill] sm:$0xff] %v8750_v51  ;;  %6920 = vmatprep.mubr.msk.bf16.mxu0 %vm28_vm3, %v11857_v19  ;;  %11858 = vst [vmem:[#allocation110_spill] sm:$0xff] %v8763_v16  ;;  %v800_v19 = vadd.f32 %v7528_v24, %v8662_v54  ;;  %v8771_v61 = vld [vmem:[#allocation2 + $0x288] sm:$0xff]  ;;  %v8773_v13 = vld [vmem:[#allocation2 + $0x290] sm:$0xff]  ;;  %v8794_v3 = vpack.c.bf16 %v1220_v30, %v1218_v53  ;;  %v798_v5 = vadd.f32 %v7528_v24, %v8702_v15  ;;  %v8800_v14 = vpop.f32.mrf.mxu1 }
 0x121   :  { %11856 = vst [vmem:[#allocation109_spill] sm:$0xff] %v8752_v1  ;;  %11859 = vst [vmem:[#allocation111_spill] sm:$0xff] %v8781_v22  ;;  %v8786_v0 = vld [vmem:[#allocation2 + $0x2a8] sm:$0xff]  ;;  %v8788_v54 = vld [vmem:[#allocation2 + $0x298] sm:$0x3]  ;;  %6851 = vmatmul.mubr.msk.bf16.gmra.mxu1 %vm28_vm3, %v8752_v1  ;;  %v1223_v6 = vsel %vm1105_vm6, %v1221_v50, %v1222_v55  ;;  %v1225_v1 = vsel %vm1105_vm6, %v1222_v55, %v1224_v21  ;;  %v1231_v53 = vrot.slane %v8771_v61, 1  ;;  %5321 = vrot.lane.b32.xlu0 %v8322_v58, %s7539_s19 }
 0x122   :  { %11860 = vst [vmem:[#allocation112_spill] sm:$0xff] %v8794_v3  ;;  %866 = vst.msk [vmem:[#allocation2 + $0x331] sm:$0xff] %vm28_vm3, %v800_v19  ;;  %v8798_v22 = vld [vmem:[#allocation2 + $0x2b0] sm:$0x3]  ;;  %6854 = vmatprep.mubr.msk.bf16.mxu1 %vm28_vm3, %v11863_v27  ;;  %v1232_v30 = vrot.slane %v8773_v13, 1  ;;  %v1236_v19 = vrot.slane %v8775_v4, 1  ;;  %v801_v33 = vadd.f32 %v7528_v24, %v8750_v51  ;;  %v1228_v27 = vsel %vm1105_vm6, %v1226_v10, %v1227_v36 }
 0x123   :  { %11861 = vst [vmem:[#allocation113_spill] sm:$0xff] %v8798_v22  ;;  %11862 = vst [vmem:[#allocation114_spill] sm:$0xff] %v8800_v14  ;;  %v1237_v49 = vrot.slane %v8786_v0, 1  ;;  %v1234_v42 = vrot.slane %v8788_v54, 1  ;;  %v1230_v21 = vsel %vm1105_vm6, %v1227_v36, %v1229_v44  ;;  %v1239_v50 = vrot.slane %v8798_v22, 1  ;;  %v8835_v44 = vld [vmem:[#allocation2 + $0x2c0] sm:$0xff]  ;;  %5255 = vrot.lane.b32.xlu1 %v8382_v48, %s7539_s19 }
 0x124   :  { %864 = vst.msk [vmem:[#allocation2 + $0x319] sm:$0xff] %vm28_vm3, %v798_v5  ;;  %v799_v46 = vadd.f32 %v7528_v24, %v8800_v14  ;;  %v8823_v5 = vld [vmem:[#allocation2 + $0x2b8] sm:$0xff]  ;;  %v8832_v38 = vpack.c.bf16 %v8773_v13, %v8771_v61  ;;  %867 = vst.msk [vmem:[#allocation2 + $0x339] sm:$0xff] %vm28_vm3, %v801_v33  ;;  %v8837_v24 = vld [vmem:[#allocation2 + $0x2c8] sm:$0x3]  ;;  %v8841_v10 = vpack.c.bf16 %v1225_v1, %v1223_v6  ;;  %v1242_v14 = vrot.slane %v8835_v44, 1 }
 0x125   :  { %v8847_v51 = vpack.c.bf16 %v8786_v0, %v8775_v4  ;;  %v8850_v33 = vld [vmem:[#allocation2 + $0x2d0] sm:$0xff]  ;;  %v8852_v15 = vld [vmem:[#allocation2 + $0x2d8] sm:$0xff]  ;;  %v8858_v6 = vpack.c.bf16 %v1230_v21, %v1228_v27  ;;  %v1233_v1 = vsel %vm1105_vm6, %v1231_v53, %v1232_v30  ;;  %v1235_v36 = vsel %vm1105_vm6, %v1232_v30, %v1234_v42  ;;  %5253 = vrot.lane.b32.xlu0 %v8330_v47, %s7539_s19 }
 0x126   :  { %6921 = vmatmul.mubr.msk.bf16.gmra.mxu0 %vm28_vm3, %v8160_v20  ;;  %11864 = vst [vmem:[#allocation115_spill] sm:$0xff] %v8832_v38  ;;  %11865 = vst [vmem:[#allocation116_spill] sm:$0xff] %v8841_v10  ;;  %v8854_v20 = vld [vmem:[#allocation2 + $0x2e0] sm:$0x3]  ;;  %v1238_v55 = vsel %vm1105_vm6, %v1236_v19, %v1237_v49  ;;  %v1244_v22 = vrot.slane %v8837_v24, 1  ;;  %v1246_v53 = vrot.slane %v8850_v33, 1  ;;  %v8882_v27 = vpack.c.bf16 %v1235_v36, %v1233_v1 }
 0x127   :  { %6924 = vmatprep.mubr.msk.bf16.mxu0 %vm28_vm3, %v8124_v29  ;;  %11866 = vst [vmem:[#allocation117_spill] sm:$0xff] %v8847_v51  ;;  %865 = vst.msk [vmem:[#allocation2 + $0x321] sm:$0xff] %vm28_vm3, %v799_v46  ;;  %v1240_v46 = vsel %vm1105_vm6, %v1237_v49, %v1239_v50  ;;  %v1241_v29 = vrot.slane %v8823_v5, 1  ;;  %v1247_v30 = vrot.slane %v8852_v15, 1  ;;  %v1249_v58 = vrot.slane %v8854_v20, 1  ;;  %v8875_v19 = vld [vmem:[#allocation2 + $0x2e8] sm:$0xff]  ;;  %5319 = vrot.lane.b32.xlu1 %v8405_v7, %s7539_s19 }
 0x128   :  { %11867 = vst [vmem:[#allocation118_spill] sm:$0xff] %v8854_v20  ;;  %11868 = vst [vmem:[#allocation119_spill] sm:$0xff] %v8858_v6  ;;  %v8877_v49 = vld [vmem:[#allocation2 + $0x2f0] sm:$0xff]  ;;  %v8887_v50 = vpack.c.bf16 %v8835_v44, %v8823_v5  ;;  %v8891_v56 = vpack.c.bf16 %v1240_v46, %v1238_v55  ;;  %v8897_v42 = vpack.c.bf16 %v8852_v15, %v8850_v33  ;;  %v8899_v36 = vld [vmem:[#allocation2 + $0x300] sm:$0xff]  ;;  %v1251_v55 = vrot.slane %v8875_v19, 1 }
 0x129   :  { %6855 = vmatmul.mubr.msk.bf16.gmra.mxu1 %vm28_vm3, %v8290_v9  ;;  %11869 = vst [vmem:[#allocation120_spill] sm:$0xff] %v8882_v27  ;;  %v8901_v1 = vld [vmem:[#allocation2 + $0x308] sm:$0xff]  ;;  %v1243_v21 = vsel %vm1105_vm6, %v1241_v29, %v1242_v14  ;;  %v1245_v48 = vsel %vm1105_vm6, %v1242_v14, %v1244_v22  ;;  %v8920_v47 = vpack.c.bf16 %v8877_v49, %v8875_v19  ;;  %v1256_v14 = vrot.slane %v8899_v36, 1  ;;  %v8924_v9 = vld [vmem:[#allocation2 + $0x2f8] sm:$0x3] }
 0x12a   :  { %6858 = vmatprep.mubr.msk.bf16.mxu1 %vm28_vm3, %v8395_v62  ;;  %11870 = vst [vmem:[#allocation121_spill] sm:$0xff] %v8887_v50  ;;  %11871 = vst [vmem:[#allocation122_spill] sm:$0xff] %v8891_v56  ;;  %v1248_v62 = vsel %vm1105_vm6, %v1246_v53, %v1247_v30  ;;  %v8928_v53 = vpack.c.bf16 %v1245_v48, %v1243_v21  ;;  %v8934_v20 = vpack.c.bf16 %v8901_v1, %v8899_v36  ;;  %v8947_v48 = vld [vmem:[#allocation2 + $0x310] sm:$0x3] }
 0x12b   :  { %11872 = vst [vmem:[#allocation123_spill] sm:$0xff] %v8897_v42  ;;  %v1250_v42 = vsel %vm1105_vm6, %v1247_v30, %v1249_v58  ;;  %11873 = vst [vmem:[#allocation124_spill] sm:$0xff] %v8920_v47  ;;  %5317 = vrot.lane.b32.xlu0 %v8351_v8, %s7539_s19  ;;  %v11877_v7 = vrot.slane %v8877_v49, 1  ;;  %v8949_v30 = vld [vmem:[#allocation2 + $0x318] sm:$0xff]  ;;  %v11883_v8 = vrot.slane %v8901_v1, 1 }
 0x12c   :  { %11874 = vst [vmem:[#allocation125_spill] sm:$0xff] %v8928_v53  ;;  %11875 = vst [vmem:[#allocation126_spill] sm:$0xff] %v8934_v20  ;;  %v8938_v29 = vpack.c.bf16 %v1250_v42, %v1248_v62  ;;  %v7529_v42 = vld [vmem:[%s11496_s3 + $0xc] sm:$0xf]  ;;  %v7530_v58 = vld [vmem:[#allocation2 + $0x10] sm:$0x3] }
 0x12d   :  { %v8945_v21 = vsel %vm1105_vm6, %v1251_v55, %v11877_v7  ;;  %11879 = vst [vmem:[#allocation129_spill] sm:$0xff] %v8949_v30  ;;  %v2863_v22 = vsel %vm1460_vm2, %v7529_v42, 0  ;;  %v11880_v55 = vrot.slane %v7882_v40, 2  ;;  %v11881_v7 = vrot.slane %v7880_v39, 2  ;;  %v7532_v47 = vld [vmem:[#allocation2 + $0x40] sm:$0x3] }
 0x12e   :  { %6925 = vmatmul.mubr.msk.bf16.gmra.mxu0 %vm28_vm3, %v8364_v52  ;;  %11876 = vst [vmem:[#allocation127_spill] sm:$0xff] %v8938_v29  ;;  %11878 = vst [vmem:[#allocation128_spill] sm:$0xff] %v8945_v21  ;;  %v8971_v62 = vsel %vm1105_vm6, %v1256_v14, %v11883_v8  ;;  %v11885_v42 = vrot.slane %v7980_v35, 2  ;;  %v7531_v21 = vld [vmem:[#allocation2 + $0x28] sm:$0x3]  ;;  %v11889_v14 = vld [vmem:[#allocation7_spill] sm:$0xff] }
 0x12f   :  { %6928 = vmatprep.mubr.msk.bf16.mxu0 %vm28_vm3, %v8467_v41  ;;  %v8964_v46 = vsel %vm2141_vm7, %v11881_v7, %v11880_v55  ;;  %11884 = vst [vmem:[#allocation131_spill] sm:$0xff] %v8971_v62  ;;  %7019 = vmatpush3.bf16.msra.mxu0 %v2863_v22  ;;  %v11886_v41 = vld [vmem:[#allocation6_spill] sm:$0xff]  ;;  %v2150_v55 = vrot.slane %v7531_v21, 2  ;;  %v11888_v7 = vld [vmem:[#allocation63_spill] sm:$0xff]  ;;  %v11890_v8 = vrot.slane %v11889_v14, 2  ;;  %v11891_v22 = vld [vmem:[#allocation5_spill] sm:$0xff] }
 0x130   :  { %11882 = vst [vmem:[#allocation130_spill] sm:$0xff] %v8964_v46  ;;  %v11887_v52 = vrot.slane %v11886_v41, 2  ;;  %5267 = vrot.lane.b32.xlu1 %v11888_v7, %s7539_s19  ;;  %v11892_v62 = vrot.slane %v11891_v22, 2  ;;  %v2155_v29 = vrot.slane %v7532_v47, 2  ;;  %v11893_v41 = vld [vmem:[#allocation56_spill] sm:$0xff]  ;;  %v11898_v30 = vld [vmem:[#allocation13_spill] sm:$0xff] }
 0x131   :  { %6859 = vmatmul.mubr.msk.bf16.gmra.mxu1 %vm28_vm3, %v8621_v11  ;;  %v2145_v11 = vrot.slane %v7530_v58, 2  ;;  %5265 = vrot.lane.b32.xlu0 %v11893_v41, %s7539_s19  ;;  %v2151_v7 = vsel %vm2141_vm7, %v11885_v42, %v2150_v55  ;;  %v11899_v22 = vrot.slane %v11898_v30, 2  ;;  %v11901_v35 = vrot.slane %v11889_v14, 2  ;;  %v11902_v41 = vld [vmem:[#allocation16_spill] sm:$0xff]  ;;  %v11908_v14 = vld [vmem:[#allocation31_spill] sm:$0xff] }
 0x132   :  { %6862 = vmatprep.mubr.msk.bf16.mxu1 %vm28_vm3, %v8648_v18  ;;  %v2149_v39 = vsel %vm2141_vm7, %v11887_v52, %v11885_v42  ;;  %v2154_v58 = vsel %vm2141_vm7, %v11892_v62, %v11890_v8  ;;  %v11894_v52 = vrot.slane %v7882_v40, 2  ;;  %v11896_v18 = vld [vmem:[#allocation18_spill] sm:$0xff] }
 0x133   :  { %v11897_v20 = vrot.slane %v11896_v18, 2  ;;  %v7533_v8 = vld [vmem:[#allocation2 + $0x58] sm:$0x3]  ;;  %v2156_v55 = vsel %vm2141_vm7, %v11901_v35, %v2155_v29  ;;  %v11910_v29 = vld [vmem:[#allocation28_spill] sm:$0xff] }
 0x134   :  { %v8992_v21 = vsel %vm2141_vm7, %v11894_v52, %v2145_v11  ;;  %v2160_v47 = vrot.slane %v7533_v8, 2  ;;  %v9006_v11 = vpack.c.bf16 %v2151_v7, %v2149_v39  ;;  %v11903_v52 = vrot.slane %v11902_v41, 2  ;;  %v11904_v42 = vld [vmem:[#allocation14_spill] sm:$0xff]  ;;  %v7534_v7 = vld [vmem:[#allocation2 + $0x70] sm:$0x3]  ;;  %5331 = vrot.lane.b32.xlu1 %v8580_v23, %s7539_s19 }
 0x135   :  { %11895 = vst [vmem:[#allocation6_spill] sm:$0xff] %v8992_v21  ;;  %v2159_v62 = vsel %vm2141_vm7, %v11899_v22, %v11897_v20  ;;  %v11905_v30 = vrot.slane %v11904_v42, 2  ;;  %v9018_v22 = vpack.c.bf16 %v2156_v55, %v2154_v58  ;;  %v11907_v8 = vrot.slane %v11896_v18, 2  ;;  %v11913_v42 = vld [vmem:[#allocation32_spill] sm:$0xff]  ;;  %v11914_v55 = vld [vmem:[#allocation29_spill] sm:$0xff]  ;;  %v11921_v23 = vld [vmem:[#allocation42_spill] sm:$0xff] }
 0x136   :  { %6929 = vmatmul.mubr.msk.bf16.gmra.mxu0 %vm28_vm3, %v8670_v32  ;;  %11900 = vst [vmem:[#allocation63_spill] sm:$0xff] %v9006_v11  ;;  %v2165_v40 = vrot.slane %v7534_v7, 2  ;;  %v11909_v32 = vrot.slane %v11908_v14, 2  ;;  %v11911_v35 = vrot.slane %v11910_v29, 2  ;;  %v2170_v58 = vrot.slane %v11913_v42, 2  ;;  %v11916_v18 = vld [vmem:[#allocation24_spill] sm:$0xff] }
 0x137   :  { %v2164_v20 = vsel %vm2141_vm7, %v11905_v30, %v11903_v52  ;;  %6932 = vmatprep.mubr.msk.bf16.mxu0 %vm28_vm3, %v8697_v31  ;;  %11906 = vst [vmem:[#allocation7_spill] sm:$0xff] %v9018_v22  ;;  %v2161_v39 = vsel %vm2141_vm7, %v11907_v8, %v2160_v47  ;;  %v11915_v30 = vrot.slane %v11914_v55, 2  ;;  %v11917_v31 = vrot.slane %v11916_v18, 2  ;;  %v11918_v8 = vld [vmem:[#allocation30_spill] sm:$0xff]  ;;  %v11926_v18 = vld [vmem:[#allocation39_spill] sm:$0xff] }
 0x138   :  { %v2169_v11 = vsel %vm2141_vm7, %v11911_v35, %v11909_v32  ;;  %v9030_v52 = vpack.c.bf16 %v2161_v39, %v2159_v62  ;;  %v2175_v7 = vrot.slane %v11918_v8, 2  ;;  %v11919_v22 = vld [vmem:[#allocation62_spill] sm:$0xff]  ;;  %v11920_v32 = vrot.slane %v11902_v41, 2 }
 0x139   :  { %v2174_v47 = vsel %vm2141_vm7, %v11917_v31, %v11915_v30  ;;  %5329 = vrot.lane.b32.xlu0 %v11919_v22, %s7539_s19  ;;  %v11922_v62 = vrot.slane %v11921_v23, 2  ;;  %v11923_v39 = vld [vmem:[#allocation38_spill] sm:$0xff]  ;;  %v11927_v21 = vrot.slane %v11926_v18, 2  ;;  %v11928_v31 = vld [vmem:[#allocation36_spill] sm:$0xff]  ;;  %6863 = vmatmul.mubr.msk.bf16.gmra.mxu1 %vm28_vm3, %v8763_v16 }
 0x13a   :  { %11912 = vst [vmem:[#allocation5_spill] sm:$0xff] %v9030_v52  ;;  %v2166_v29 = vsel %vm2141_vm7, %v11920_v32, %v2165_v40  ;;  %v11924_v35 = vrot.slane %v11923_v39, 2  ;;  %v11925_v52 = vld [vmem:[#allocation43_spill] sm:$0xff]  ;;  %v11929_v30 = vrot.slane %v11928_v31, 2  ;;  %v11931_v40 = vrot.slane %v11908_v14, 2  ;;  %6866 = vmatprep.mubr.msk.bf16.mxu1 %vm28_vm3, %v8794_v3  ;;  %v9150_v3 = vld [vmem:[#allocation2 + $0x188] sm:$0xff] }
 0x13b   :  { %v2180_v46 = vrot.slane %v11925_v52, 2  ;;  %v9057_v41 = vpack.c.bf16 %v2166_v29, %v2164_v20  ;;  %v11932_v32 = vrot.slane %v11914_v55, 2  ;;  %v11933_v52 = vld [vmem:[#allocation40_spill] sm:$0xff]  ;;  %v11936_v20 = vrot.slane %v11921_v23, 2  ;;  %v12017_v16 = vld [vmem:[#allocation70_spill] sm:$0xff] }
 0x13c   :  { %v2179_v42 = vsel %vm2141_vm7, %v11924_v35, %v11922_v62  ;;  %v2184_v8 = vsel %vm2141_vm7, %v11929_v30, %v11927_v21  ;;  %v2171_v22 = vsel %vm2141_vm7, %v11931_v40, %v2170_v58  ;;  %v2185_v39 = vrot.slane %v11933_v52, 2  ;;  %v11938_v58 = vld [vmem:[#allocation52_spill] sm:$0xff] }
 0x13d   :  { %11930 = vst [vmem:[#allocation56_spill] sm:$0xff] %v9057_v41  ;;  %v2176_v62 = vsel %vm2141_vm7, %v11932_v32, %v2175_v7  ;;  %v9068_v35 = vpack.c.bf16 %v2171_v22, %v2169_v11  ;;  %v2181_v29 = vsel %vm2141_vm7, %v11936_v20, %v2180_v46  ;;  %v11937_v14 = vrot.slane %v8412_v57, 2  ;;  %v11940_v7 = vld [vmem:[#allocation67_spill] sm:$0xff]  ;;  %v11945_v22 = vld [vmem:[#allocation53_spill] sm:$0xff] }
 0x13e   :  { %v9070_v21 = vpack.c.bf16 %v2176_v62, %v2174_v47  ;;  %v11939_v31 = vrot.slane %v11938_v58, 2  ;;  %5263 = vrot.lane.b32.xlu1 %v11940_v7, %s7539_s19  ;;  %v9082_v30 = vpack.c.bf16 %v2181_v29, %v2179_v42  ;;  %v11942_v11 = vrot.slane %v11926_v18, 2  ;;  %v11947_v62 = vld [vmem:[#allocation50_spill] sm:$0xff]  ;;  %6933 = vmatmul.mubr.msk.bf16.gmra.mxu0 %vm28_vm3, %v8741_v12  ;;  %v9113_v7 = vld [vmem:[#allocation2 + $0x328] sm:$0x3] }
 0x13f   :  { %11934 = vst [vmem:[#allocation18_spill] sm:$0xff] %v9068_v35  ;;  %v11943_v40 = vrot.slane %v8415_v28, 2  ;;  %v11944_v23 = vmov %v11937_v14  ;;  %v11946_v32 = vrot.slane %v11945_v22, 2  ;;  %v11948_v52 = vrot.slane %v11947_v62, 2  ;;  %v11961_v62 = vld [vmem:[#allocation81_spill] sm:$0xff] }
 0x140   :  { %11935 = vst [vmem:[#allocation13_spill] sm:$0xff] %v9070_v21  ;;  %v2189_v55 = vsel %vm2141_vm7, %v11939_v31, %v11937_v14  ;;  %11941 = vst [vmem:[#allocation16_spill] sm:$0xff] %v9082_v30  ;;  %v2186_v47 = vsel %vm2141_vm7, %v11942_v11, %v2185_v39  ;;  %v11949_v14 = vld [vmem:[#allocation60_spill] sm:$0xff]  ;;  %v11952_v39 = vld [vmem:[#allocation54_spill] sm:$0xff]  ;;  %v11953_v28 = vrot.slane %v8514_v63, 2  ;;  %v11954_v57 = vrot.slane %v8488_v34, 2 }
 0x141   :  { %v2191_v46 = vsel %vm2141_vm7, %v11944_v23, %v11943_v40  ;;  %v2194_v20 = vsel %vm2141_vm7, %v11948_v52, %v11946_v32  ;;  %5261 = vrot.lane.b32.xlu0 %v11949_v14, %s7539_s19  ;;  %v9099_v42 = vpack.c.bf16 %v2186_v47, %v2184_v8  ;;  %v2195_v29 = vrot.slane %v11952_v39, 2  ;;  %v9111_v31 = vld [vmem:[#allocation2 + $0x320] sm:$0xff]  ;;  %v11959_v23 = vld [vmem:[#allocation69_spill] sm:$0xff]  ;;  %6867 = vmatmul.mubr.msk.bf16.gmra.mxu1 %vm28_vm3, %v8841_v10 }
 0x142   :  { %v9101_v18 = vpack.c.bf16 %v2191_v46, %v2189_v55  ;;  %v2199_v58 = vsel %vm2141_vm7, %v11954_v57, %v11953_v28  ;;  %v11955_v8 = vrot.slane %v8517_v43, 2  ;;  %v11956_v55 = vmov %v11953_v28  ;;  %v9131_v39 = vld [vmem:[#allocation2 + $0x180] sm:$0xff]  ;;  %v11966_v57 = vld [vmem:[#allocation84_spill] sm:$0xff]  ;;  %6870 = vmatprep.mubr.msk.bf16.mxu1 %vm28_vm3, %v8858_v6 }
 0x143   :  { %11950 = vst [vmem:[#allocation14_spill] sm:$0xff] %v9099_v42  ;;  %v11957_v47 = vrot.slane %v8490_v60, 2  ;;  %v11958_v40 = vrot.slane %v8477_v37, 2  ;;  %v2205_v46 = vrot.slane %v11959_v23, 2  ;;  %v11960_v32 = vrot.slane %v8615_v59, 2  ;;  %v11963_v43 = vld [vmem:[#allocation111_spill] sm:$0xff] }
 0x144   :  { %11951 = vst [vmem:[#allocation31_spill] sm:$0xff] %v9101_v18  ;;  %v2201_v11 = vsel %vm2141_vm7, %v11956_v55, %v11955_v8  ;;  %v11962_v52 = vrot.slane %v11961_v62, 2  ;;  %6936 = vmatprep.mubr.msk.bf16.mxu0 %vm28_vm3, %v11963_v43  ;;  %v11964_v63 = vrot.slane %v11945_v22, 2  ;;  %v11967_v8 = vrot.slane %v11966_v57, 2  ;;  %v11973_v22 = vld [vmem:[#allocation89_spill] sm:$0xff] }
 0x145   :  { %v2204_v34 = vsel %vm2141_vm7, %v11958_v40, %v11957_v47  ;;  %v9138_v37 = vpack.c.bf16 %v2201_v11, %v2199_v58  ;;  %v11968_v55 = vmov %v11960_v32  ;;  %v11969_v40 = vld [vmem:[#allocation82_spill] sm:$0xff]  ;;  %5327 = vrot.lane.b32.xlu1 %v11973_v22, %s7539_s19  ;;  %v11975_v58 = vrot.slane %v8490_v60, 2 }
 0x146   :  { %v2209_v14 = vsel %vm2141_vm7, %v11962_v52, %v11960_v32  ;;  %v2196_v28 = vsel %vm2141_vm7, %v11964_v63, %v2195_v29  ;;  %v2211_v47 = vsel %vm2141_vm7, %v11968_v55, %v11967_v8  ;;  %v11970_v23 = vrot.slane %v11969_v40, 2  ;;  %v11971_v32 = vld [vmem:[#allocation78_spill] sm:$0xff]  ;;  %v11977_v63 = vld [vmem:[#allocation83_spill] sm:$0xff]  ;;  %6937 = vmatmul.mubr.msk.bf16.gmra.mxu0 %vm28_vm3, %v8832_v38 }
 0x147   :  { %11965 = vst [vmem:[#allocation28_spill] sm:$0xff] %v9138_v37  ;;  %v11972_v62 = vrot.slane %v11971_v32, 2  ;;  %v9154_v29 = vpack.c.bf16 %v2196_v28, %v2194_v20  ;;  %v2206_v11 = vsel %vm2141_vm7, %v11975_v58, %v2205_v46  ;;  %v9159_v59 = vpack.c.bf16 %v2211_v47, %v2209_v14  ;;  %v11978_v8 = vld [vmem:[#allocation71_spill] sm:$0xff]  ;;  %6940 = vmatprep.mubr.msk.bf16.mxu0 %vm28_vm3, %v8847_v51 }
 0x148   :  { %v2215_v57 = vrot.slane %v11977_v63, 2  ;;  %5325 = vrot.lane.b32.xlu0 %v11978_v8, %s7539_s19  ;;  %v9166_v32 = vpack.c.bf16 %v2206_v11, %v2204_v34  ;;  %v11980_v60 = vmov %v11970_v23  ;;  %v11981_v47 = vrot.slane %v8706_v25, 2  ;;  %v11995_v28 = vld [vmem:[#allocation11_spill] sm:$0xff] }
 0x149   :  { %v2214_v52 = vsel %vm2141_vm7, %v11972_v62, %v11970_v23  ;;  %11974 = vst [vmem:[#allocation32_spill] sm:$0xff] %v9154_v29  ;;  %11976 = vst [vmem:[#allocation29_spill] sm:$0xff] %v9159_v59  ;;  %v11982_v62 = vld [vmem:[#allocation100_spill] sm:$0xff]  ;;  %v11985_v11 = vrot.slane %v8708_v2, 2  ;;  %v11996_v25 = vrot.slane %v11995_v28, 2  ;;  %6871 = vmatmul.mubr.msk.bf16.gmra.mxu1 %vm28_vm3, %v8882_v27 }
 0x14a   :  { %11979 = vst [vmem:[#allocation24_spill] sm:$0xff] %v9166_v32  ;;  %v2216_v46 = vsel %vm2141_vm7, %v11980_v60, %v2215_v57  ;;  %v11983_v22 = vrot.slane %v11982_v62, 2  ;;  %v11986_v40 = vmov %v11981_v47  ;;  %v11987_v57 = vld [vmem:[#allocation4_spill] sm:$0xff]  ;;  %v11989_v60 = vld [vmem:[#allocation3_spill] sm:$0xff]  ;;  %6874 = vmatprep.mubr.msk.bf16.mxu1 %vm28_vm3, %v8891_v56 }
 0x14b   :  { %v9183_v58 = vpack.c.bf16 %v2216_v46, %v2214_v52  ;;  %v2221_v63 = vsel %vm2141_vm7, %v11986_v40, %v11985_v11  ;;  %v11988_v8 = vrot.slane %v11987_v57, 2  ;;  %v11990_v20 = vrot.slane %v11989_v60, 2  ;;  %v7535_v62 = vld [vmem:[#allocation2 + $0x1c0] sm:$0x3]  ;;  %v11993_v46 = vld [vmem:[#allocation21_spill] sm:$0xff]  ;;  %v11997_v40 = vld [vmem:[#allocation26_spill] sm:$0xff] }
 0x14c   :  { %v2219_v34 = vsel %vm2141_vm7, %v11983_v22, %v11981_v47  ;;  %v2225_v47 = vrot.slane %v7535_v62, 2  ;;  %v11991_v22 = vld [vmem:[#allocation76_spill] sm:$0xff]  ;;  %v11994_v2 = vrot.slane %v11993_v46, 2  ;;  %v11998_v23 = vrot.slane %v11997_v40, 2  ;;  %v12002_v62 = vld [vmem:[#allocation10_spill] sm:$0xff] }
 0x14d   :  { %11984 = vst [vmem:[#allocation30_spill] sm:$0xff] %v9183_v58  ;;  %v9195_v14 = vsel %vm2141_vm7, %v11990_v20, %v11988_v8  ;;  %5275 = vrot.lane.b32.xlu1 %v11991_v22, %s7539_s19  ;;  %v9199_v52 = vpack.c.bf16 %v2221_v63, %v2219_v34  ;;  %v12000_v8 = vld [vmem:[#allocation17_spill] sm:$0xff]  ;;  %v12003_v6 = vrot.slane %v12002_v62, 2  ;;  %v12004_v34 = vld [vmem:[#allocation72_spill] sm:$0xff]  ;;  %v12005_v63 = vrot.slane %v11987_v57, 2  ;;  %v12006_v40 = vld [vmem:[#allocation46_spill] sm:$0xff] }
 0x14e   :  { %v2229_v11 = vsel %vm2141_vm7, %v11996_v25, %v11994_v2  ;;  %v11999_v60 = vmov %v11994_v2  ;;  %v12001_v55 = vrot.slane %v12000_v8, 2  ;;  %5273 = vrot.lane.b32.xlu0 %v12004_v34, %s7539_s19  ;;  %v7536_v25 = vld [vmem:[#allocation2 + $0x1f0] sm:$0x3]  ;;  %6941 = vmatmul.mubr.msk.bf16.gmra.mxu0 %vm28_vm3, %v8887_v50 }
 0x14f   :  { %11992 = vst [vmem:[#allocation62_spill] sm:$0xff] %v9199_v52  ;;  %v2231_v20 = vsel %vm2141_vm7, %v11999_v60, %v11998_v23  ;;  %v9221_v28 = vsel %vm2141_vm7, %v12005_v63, %v2225_v47  ;;  %v2235_v46 = vrot.slane %v7536_v25, 2  ;;  %v12007_v23 = vrot.slane %v12006_v40, 2  ;;  %v12008_v60 = vld [vmem:[#allocation45_spill] sm:$0xff]  ;;  %v12015_v63 = vld [vmem:[#allocation58_spill] sm:$0xff]  ;;  %v12020_v40 = vld [vmem:[#allocation88_spill] sm:$0xff] }
 0x150   :  { %v2234_v22 = vsel %vm2141_vm7, %v12003_v6, %v12001_v55  ;;  %v9223_v2 = vpack.c.bf16 %v2231_v20, %v2229_v11  ;;  %v12009_v10 = vrot.slane %v12008_v60, 2  ;;  %v12010_v55 = vld [vmem:[#allocation66_spill] sm:$0xff]  ;;  %v12013_v20 = vld [vmem:[#allocation59_spill] sm:$0xff]  ;;  %v12016_v25 = vrot.slane %v12015_v63, 2 }
 0x151   :  { %v12011_v57 = vrot.slane %v12010_v55, 2  ;;  %v12012_v47 = vmov %v12007_v23  ;;  %v12014_v34 = vrot.slane %v12013_v20, 2  ;;  %v12021_v38 = vrot.slane %v12020_v40, 2  ;;  %v12024_v63 = vld [vmem:[#allocation94_spill] sm:$0xff]  ;;  %6875 = vmatmul.mubr.msk.bf16.gmra.mxu1 %vm28_vm3, %v8928_v53 }
 0x152   :  { %v2239_v62 = vsel %vm2141_vm7, %v12009_v10, %v12007_v23  ;;  %v2245_v10 = vrot.slane %v12017_v16, 2  ;;  %v12018_v23 = vrot.slane %v12000_v8, 2  ;;  %v12025_v12 = vrot.slane %v12024_v63, 2  ;;  %v12035_v40 = vld [vmem:[#allocation74_spill] sm:$0xff] }
 0x153   :  { %v2241_v11 = vsel %vm2141_vm7, %v12012_v47, %v12011_v57  ;;  %v2244_v60 = vsel %vm2141_vm7, %v12016_v25, %v12014_v34  ;;  %v12022_v57 = vld [vmem:[#allocation87_spill] sm:$0xff]  ;;  %v12026_v34 = vmov %v12021_v38  ;;  %5269 = vrot.lane.b32.xlu0 %v12035_v40, %s7539_s19 }
 0x154   :  { %v2236_v6 = vsel %vm2141_vm7, %v12018_v23, %v2235_v46  ;;  %v9250_v55 = vpack.c.bf16 %v2241_v11, %v2239_v62  ;;  %v12023_v47 = vrot.slane %v12022_v57, 2  ;;  %v2251_v16 = vsel %vm2141_vm7, %v12026_v34, %v12025_v12  ;;  %v12027_v25 = vld [vmem:[#allocation79_spill] sm:$0xff]  ;;  %v12031_v23 = vld [vmem:[#allocation93_spill] sm:$0xff]  ;;  %v12037_v34 = vld [vmem:[#allocation98_spill] sm:$0xff] }
 0x155   :  { %5271 = vrot.lane.b32.xlu1 %v12027_v25, %s7539_s19  ;;  %v9264_v8 = vpack.c.bf16 %v2236_v6, %v2234_v22  ;;  %v12029_v46 = vrot.slane %v12013_v20, 2  ;;  %v12032_v57 = vrot.slane %v12031_v23, 2  ;;  %v2255_v22 = vrot.slane %v12037_v34, 2  ;;  %v12038_v6 = vld [vmem:[#allocation104_spill] sm:$0xff]  ;;  %v12040_v20 = vld [vmem:[#allocation102_spill] sm:$0xff] }
 0x156   :  { %12019 = vst [vmem:[#allocation42_spill] sm:$0xff] %v9250_v55  ;;  %v2249_v43 = vsel %vm2141_vm7, %v12023_v47, %v12021_v38  ;;  %v12033_v38 = vld [vmem:[#allocation92_spill] sm:$0xff]  ;;  %v12039_v25 = vrot.slane %v12038_v6, 2  ;;  %v12041_v51 = vrot.slane %v12040_v20, 2  ;;  %v12050_v6 = vrot.slane %v12031_v23, 2 }
 0x157   :  { %12028 = vst [vmem:[#allocation38_spill] sm:$0xff] %v9264_v8  ;;  %v2246_v62 = vsel %vm2141_vm7, %v12029_v46, %v2245_v10  ;;  %v9269_v11 = vpack.c.bf16 %v2251_v16, %v2249_v43  ;;  %v12034_v47 = vrot.slane %v12033_v38, 2  ;;  %v12042_v10 = vrot.slane %v8726_v45, 2 }
 0x158   :  { %v9278_v12 = vpack.c.bf16 %v2246_v62, %v2244_v60  ;;  %v2259_v43 = vsel %vm2141_vm7, %v12041_v51, %v12039_v25  ;;  %v12043_v16 = vmov %v12039_v25  ;;  %v12045_v60 = vrot.slane %v8746_v17, 2 }
 0x159   :  { %12030 = vst [vmem:[#allocation43_spill] sm:$0xff] %v9269_v11  ;;  %v2254_v63 = vsel %vm2141_vm7, %v12034_v47, %v12032_v57  ;;  %v2261_v46 = vsel %vm2141_vm7, %v12043_v16, %v12042_v10  ;;  %v12046_v62 = vrot.slane %v8744_v26, 2  ;;  %v12047_v47 = vld [vmem:[#allocation107_spill] sm:$0xff]  ;;  %v12048_v51 = vrot.slane %v8773_v13, 2 }
 0x15a   :  { %12036 = vst [vmem:[#allocation39_spill] sm:$0xff] %v9278_v12  ;;  %v9293_v57 = vpack.c.bf16 %v2261_v46, %v2259_v43  ;;  %v2265_v40 = vrot.slane %v12047_v47, 2  ;;  %v12049_v45 = vrot.slane %v8771_v61, 2  ;;  %v2256_v25 = vsel %vm2141_vm7, %v12050_v6, %v2255_v22  ;;  %v12055_v46 = vld [vmem:[#allocation113_spill] sm:$0xff] }
 0x15b   :  { %v2264_v38 = vsel %vm2141_vm7, %v12046_v62, %v12045_v60  ;;  %v12051_v20 = vrot.slane %v8788_v54, 2  ;;  %v12052_v26 = vmov %v12048_v51  ;;  %v12053_v10 = vrot.slane %v8786_v0, 2  ;;  %v12056_v62 = vld [vmem:[#allocation114_spill] sm:$0xff] }
 0x15c   :  { %12044 = vst [vmem:[#allocation36_spill] sm:$0xff] %v9293_v57  ;;  %v2269_v34 = vsel %vm2141_vm7, %v12049_v45, %v12048_v51  ;;  %v12054_v16 = vrot.slane %v8775_v4, 2  ;;  %v2275_v60 = vrot.slane %v12055_v46, 2  ;;  %5335 = vrot.lane.b32.xlu1 %v12056_v62, %s7539_s19  ;;  %v9324_v23 = vpack.c.bf16 %v2256_v25, %v2254_v63  ;;  %v12062_v45 = vld [vmem:[#allocation103_spill] sm:$0xff] }
 0x15d   :  { %v2271_v43 = vsel %vm2141_vm7, %v12052_v26, %v12051_v20  ;;  %v12058_v22 = vrot.slane %v8746_v17, 2  ;;  %v12060_v47 = vrot.slane %v8835_v44, 2  ;;  %v12061_v51 = vrot.slane %v8823_v5, 2  ;;  %5333 = vrot.lane.b32.xlu0 %v12062_v45, %s7539_s19  ;;  %v12071_v44 = vld [vmem:[#allocation118_spill] sm:$0xff]  ;;  %v12079_v45 = vld [vmem:[#allocation108_spill] sm:$0xff] }
 0x15e   :  { %v2274_v61 = vsel %vm2141_vm7, %v12054_v16, %v12053_v10  ;;  %12057 = vst [vmem:[#allocation40_spill] sm:$0xff] %v9324_v23  ;;  %v9329_v13 = vpack.c.bf16 %v2271_v43, %v2269_v34  ;;  %v12064_v63 = vmov %v12053_v10  ;;  %v12065_v17 = vrot.slane %v8837_v24, 2  ;;  %v9353_v43 = vld [vmem:[#allocation2 + $0x330] sm:$0xff] }
 0x15f   :  { %v2266_v54 = vsel %vm2141_vm7, %v12058_v22, %v2265_v40  ;;  %v2279_v4 = vsel %vm2141_vm7, %v12061_v51, %v12060_v47  ;;  %v2276_v25 = vsel %vm2141_vm7, %v12064_v63, %v2275_v60  ;;  %v12066_v40 = vmov %v12060_v47  ;;  %v12074_v60 = vld [vmem:[#allocation123_spill] sm:$0xff] }
 0x160   :  { %12059 = vst [vmem:[#allocation52_spill] sm:$0xff] %v9329_v13  ;;  %v9338_v6 = vpack.c.bf16 %v2266_v54, %v2264_v38  ;;  %v2281_v34 = vsel %vm2141_vm7, %v12066_v40, %v12065_v17  ;;  %v12067_v20 = vrot.slane %v8852_v15, 2  ;;  %v12068_v5 = vrot.slane %v8850_v33, 2  ;;  %v9355_v38 = vld [vmem:[#allocation2 + $0x338] sm:$0xff]  ;;  %6944 = vmatprep.mubr.msk.bf16.mxu0 %vm28_vm3, %v12074_v60  ;;  %5339 = vrot.lane.b32.xlu1 %v12079_v45, %s7539_s19 }
 0x161   :  { %v9359_v0 = vpack.c.bf16 %v2276_v25, %v2274_v61  ;;  %v9361_v24 = vpack.c.bf16 %v2281_v34, %v2279_v4  ;;  %v2285_v10 = vrot.slane %v12071_v44, 2  ;;  %v12072_v16 = vrot.slane %v8877_v49, 2 }
 0x162   :  { %12063 = vst [vmem:[#allocation67_spill] sm:$0xff] %v9338_v6  ;;  %v2284_v26 = vsel %vm2141_vm7, %v12068_v5, %v12067_v20  ;;  %v12073_v46 = vrot.slane %v8875_v19, 2  ;;  %v3604_v62 = vrot.slane %v9131_v39, 2  ;;  %v12075_v22 = vrot.slane %v8924_v9, 2 }
 0x163   :  { %12069 = vst [vmem:[#allocation53_spill] sm:$0xff] %v9359_v0  ;;  %12070 = vst [vmem:[#allocation50_spill] sm:$0xff] %v9361_v24  ;;  %v12076_v61 = vmov %v12072_v16  ;;  %v12077_v47 = vrot.slane %v8901_v1, 2  ;;  %v12078_v51 = vrot.slane %v8899_v36, 2  ;;  %v2295_v19 = vrot.slane %v8947_v48, 2  ;;  %v12082_v36 = vld [vmem:[#allocation95_spill] sm:$0xff] }
 0x164   :  { %v2289_v33 = vsel %vm2141_vm7, %v12073_v46, %v12072_v16  ;;  %v2291_v54 = vsel %vm2141_vm7, %v12076_v61, %v12075_v22  ;;  %v12080_v63 = vmov %v12067_v20  ;;  %v3229_v40 = vrot.slane %v9353_v43, 1  ;;  %v918_v20 = vld [vmem:[#allocation2 + $0x190] sm:$0x3]  ;;  %5337 = vrot.lane.b32.xlu0 %v12082_v36, %s7539_s19  ;;  %v972_v46 = vld [vmem:[#allocation2 + $0x340] sm:$0x3] }
 0x165   :  { %v2294_v4 = vsel %vm2141_vm7, %v12078_v51, %v12077_v47  ;;  %v2286_v25 = vsel %vm2141_vm7, %v12080_v63, %v2285_v10  ;;  %v9388_v17 = vpack.c.bf16 %v2291_v54, %v2289_v33  ;;  %v3230_v34 = vrot.slane %v9355_v38, 1  ;;  %v12087_v61 = vld [vmem:[#allocation129_spill] sm:$0xff] }
 0x166   :  { %v9394_v5 = vpack.c.bf16 %v2286_v25, %v2284_v26  ;;  %v12084_v44 = vmov %v12077_v47  ;;  %v3609_v15 = vrot.slane %v9353_v43, 2  ;;  %v3610_v10 = vrot.slane %v9355_v38, 2  ;;  %v12092_v25 = vld [vmem:[#allocation127_spill] sm:$0xff] }
 0x167   :  { %12081 = vst [vmem:[#allocation60_spill] sm:$0xff] %v9388_v17  ;;  %v2296_v16 = vsel %vm2141_vm7, %v12084_v44, %v2295_v19  ;;  %v12086_v22 = vrot.slane %v9111_v31, 2  ;;  %v12088_v54 = vrot.slane %v12087_v61, 2  ;;  %v12089_v47 = vrot.slane %v9113_v7, 2  ;;  %6878 = vmatprep.mubr.msk.bf16.mxu1 %vm28_vm3, %v12092_v25 }
 0x168   :  { %12083 = vst [vmem:[#allocation54_spill] sm:$0xff] %v9394_v5  ;;  %v9403_v33 = vpack.c.bf16 %v2296_v16, %v2294_v4  ;;  %v12091_v45 = vrot.slane %v9150_v3, 2  ;;  %v3607_v36 = vrot.slane %v918_v20, 2  ;;  %v12094_v44 = vrot.slane %v9150_v3, 1 }
 0x169   :  { %v2299_v26 = vsel %vm2141_vm7, %v12088_v54, %v12086_v22  ;;  %v12090_v51 = vmov %v12086_v22  ;;  %v12095_v16 = vrot.slane %v9131_v39, 1  ;;  %v3227_v54 = vrot.slane %v918_v20, 1 }
 0x16a   :  { %12085 = vst [vmem:[#allocation69_spill] sm:$0xff] %v9403_v33  ;;  %v2301_v19 = vsel %vm2141_vm7, %v12090_v51, %v12089_v47  ;;  %v3606_v63 = vsel %vm2141_vm7, %v3604_v62, %v12091_v45  ;;  %v3611_v53 = vsel %vm2141_vm7, %v3609_v15, %v3610_v10  ;;  %v3612_v47 = vrot.slane %v972_v46, 2 }
 0x16b   :  { %v9420_v4 = vpack.c.bf16 %v2301_v19, %v2299_v26  ;;  %v3226_v22 = vsel %vm1105_vm6, %v12095_v16, %v12094_v44  ;;  %v3231_v51 = vsel %vm1105_vm6, %v3229_v40, %v3230_v34  ;;  %v3232_v56 = vrot.slane %v972_v46, 1  ;;  %v12101_v46 = vld [vmem:[#allocation124_spill] sm:$0xff] }
 0x16c   :  { %v12096_v62 = vrot.slane %v8924_v9, 1  ;;  %v12097_v45 = vrot.slane %v8877_v49, 1  ;;  %v12098_v19 = vrot.slane %v8947_v48, 1  ;;  %v12099_v25 = vrot.slane %v8901_v1, 1  ;;  %6945 = vmatmul.mubr.msk.bf16.gmra.mxu0 %vm28_vm3, %v12101_v46 }
 0x16d   :  { %12093 = vst [vmem:[#allocation81_spill] sm:$0xff] %v9420_v4  ;;  %v12100_v20 = vrot.slane %v9150_v3, 2  ;;  %v3228_v40 = vsel %vm1105_vm6, %v12094_v44, %v3227_v54  ;;  %v3613_v48 = vsel %vm2141_vm7, %v3610_v10, %v3612_v47  ;;  %v3233_v1 = vsel %vm1105_vm6, %v3230_v34, %v3232_v56  ;;  %v12111_v34 = vld [vmem:[#allocation8_spill] sm:$0xff]  ;;  %v12113_v47 = vld [vmem:[#allocation6_spill] sm:$0xff]  ;;  %v7537_v44 = vld [vmem:[%s11496_s3 + $0x10] sm:$0xf] }
 0x16e   :  { %v1255_v26 = vsel %vm1105_vm6, %v12097_v45, %v12096_v62  ;;  %v1260_v27 = vsel %vm1105_vm6, %v12099_v25, %v12098_v19  ;;  %v9449_v49 = vpack.c.bf16 %v3228_v40, %v3226_v22  ;;  %v12103_v25 = vld [vmem:[#allocation126_spill] sm:$0xff]  ;;  %v9455_v16 = vpack.c.bf16 %v3613_v48, %v3611_v53  ;;  %v12106_v62 = vld [vmem:[#allocation128_spill] sm:$0xff]  ;;  %v12108_v45 = vld [vmem:[#allocation131_spill] sm:$0xff] }
 0x16f   :  { %v3608_v15 = vsel %vm2141_vm7, %v12100_v20, %v3607_v36  ;;  %6948 = vmatprep.mubr.msk.bf16.mxu0 %vm28_vm3, %v12103_v25  ;;  %v9457_v36 = vpack.c.bf16 %v3233_v1, %v3231_v51  ;;  %v9460_v54 = vpack.c.bf16 %v1255_v26, %v12106_v62  ;;  %v9463_v19 = vpack.c.bf16 %v1260_v27, %v12108_v45  ;;  %v12114_v51 = vld [vmem:[#allocation130_spill] sm:$0xff]  ;;  %v12116_v20 = vld [vmem:[#allocation9_spill] sm:$0xff]  ;;  %v12118_v1 = vld [vmem:[#allocation63_spill] sm:$0xff] }
 0x170   :  { %v9447_v9 = vpack.c.bf16 %v3608_v15, %v3606_v63  ;;  %12104 = vst [vmem:[#allocation82_spill] sm:$0xff] %v9455_v16  ;;  %v1261_v63 = vrot.slane %v12087_v61, 1  ;;  %v1262_v22 = vrot.slane %v9111_v31, 1  ;;  %v1264_v10 = vrot.slane %v9113_v7, 1  ;;  %v12117_v15 = vld [vmem:[#allocation19_spill] sm:$0xff]  ;;  %v12120_v45 = vld [vmem:[#allocation20_spill] sm:$0xff] }
 0x171   :  { %12105 = vst [vmem:[#allocation78_spill] sm:$0xff] %v9457_v36  ;;  %12107 = vst [vmem:[#allocation89_spill] sm:$0xff] %v9460_v54  ;;  %6879 = vmatmul.mubr.msk.bf16.gmra.mxu1 %vm28_vm3, %v9460_v54  ;;  %v9474_v56 = vpack.c.bf16 %v9111_v31, %v12087_v61  ;;  %v12115_v26 = vpack.c.bf16 %v12113_v47, %v12114_v51  ;;  %v6226_v31 = vld [vmem:[%s11496_s3 + $0x14] sm:$0xf]  ;;  %v3249_v40 = vsel %vm1460_vm2, %v7537_v44, 0  ;;  %v12119_v62 = vld [vmem:[#allocation7_spill] sm:$0xff] }
 0x172   :  { %12102 = vst [vmem:[#allocation84_spill] sm:$0xff] %v9447_v9  ;;  %12109 = vst [vmem:[#allocation83_spill] sm:$0xff] %v9463_v19  ;;  %6882 = vmatprep.mubr.msk.bf16.mxu1 %vm28_vm3, %v9463_v19  ;;  %v1263_v53 = vsel %vm1105_vm6, %v1261_v63, %v1262_v22  ;;  %v1265_v27 = vsel %vm1105_vm6, %v1262_v22, %v1264_v10  ;;  %7489 = vmatprep.subr.msk.bf16.mxu0 %vm1460_vm2, %v6226_v31  ;;  %v3629_v61 = vsel %vm1460_vm2, %v6226_v31, 0  ;;  %v9506_v48 = vld [vmem:[%s11496_s3 + $0x18] sm:$0xf]  ;;  %v12121_v63 = vld [vmem:[#allocation33_spill] sm:$0xff] }
 0x173   :  { %12110 = vst [vmem:[#allocation71_spill] sm:$0xff] %v9474_v56  ;;  %v9482_v7 = vpack.c.bf16 %v1265_v27, %v1263_v53  ;;  %v12122_v22 = vld [vmem:[#allocation5_spill] sm:$0xff]  ;;  %v12123_v10 = vld [vmem:[#allocation34_spill] sm:$0xff]  ;;  %v12124_v53 = vld [vmem:[#allocation44_spill] sm:$0xff] }
 0x174   :  { %6949 = vmatmul.mubr.msk.bf16.gmra.mxu0 %vm28_vm3, %v9474_v56  ;;  %v12125_v27 = vld [vmem:[#allocation47_spill] sm:$0xff]  ;;  %v12127_v47 = vld [vmem:[#allocation61_spill] sm:$0xff]  ;;  %v12130_v31 = vld [vmem:[#allocation86_spill] sm:$0xff] }
 0x175   :  { %7020 = vmatprep.mubr.msk.bf16.mxu0 %vm28_vm3, %v12111_v34  ;;  %12112 = vst [vmem:[#allocation100_spill] sm:$0xff] %v9482_v7  ;;  %v12126_v34 = vld [vmem:[#allocation57_spill] sm:$0xff]  ;;  %v12143_v16 = vld [vmem:[#allocation115_spill] sm:$0xff] }
 0x176   :  { %v12128_v51 = vld [vmem:[#allocation73_spill] sm:$0xff] }
 0x177   :  { %v12132_v44 = vld [vmem:[#allocation105_spill] sm:$0xff] }
 0x179   :  { %6883 = vmatmul.mubr.msk.bf16.gmra.mxu1 %vm28_vm3, %v9482_v7 }
 0x17a   :  { %6954 = vmatprep.mubr.msk.bf16.mxu1 %vm28_vm3, %v12115_v26  ;;  %v12129_v26 = vld [vmem:[#allocation75_spill] sm:$0xff] }
 0x17c   :  { %7021 = vmatmul.mubr.msk.bf16.vlgmr.msra.gmra.mxu0 %vm28_vm3, %v12116_v20 }
 0x17d   :  { %7024 = vmatprep.mubr.msk.bf16.mxu0 %vm28_vm3, %v12117_v15  ;;  %7151 = vmatpush3.bf16.msra.mxu0 %v3629_v61  ;;  %v12131_v61 = vld [vmem:[#allocation90_spill] sm:$0xff] }
 0x181   :  { %6955 = vmatmul.mubr.msk.bf16.vlgmr.msra.gmra.mxu1 %vm28_vm3, %v12118_v1 }
 0x182   :  { %7085 = vmatpush3.bf16.msra.mxu1 %v3249_v40  ;;  %6958 = vmatprep.mubr.msk.bf16.mxu1 %vm28_vm3, %v12119_v62  ;;  %v9564_v40 = vpack.c.bf16 %v9150_v3, %v9131_v39  ;;  %v12137_v3 = vld [vmem:[#allocation48_spill] sm:$0xff] }
 0x183   :  { %7490 = vmatprep.subr.msk.bf16.mxu1 %vm1460_vm2, %v9506_v48 }
 0x184   :  { %7025 = vmatmul.mubr.msk.bf16.gmra.mxu0 %vm28_vm3, %v12120_v45  ;;  %12133 = vst [vmem:[#allocation4_spill] sm:$0xff] %v9564_v40  ;;  %v12141_v45 = vld [vmem:[#allocation106_spill] sm:$0xff] }
 0x185   :  { %7028 = vmatprep.mubr.msk.bf16.mxu0 %vm28_vm3, %v12121_v63 }
 0x189   :  { %6959 = vmatmul.mubr.msk.bf16.gmra.mxu1 %vm28_vm3, %v12122_v22 }
 0x18a   :  { %6962 = vmatprep.mubr.msk.bf16.mxu1 %vm28_vm3, %v9057_v41 }
 0x18c   :  { %7029 = vmatmul.mubr.msk.bf16.gmra.mxu0 %vm28_vm3, %v12123_v10 }
 0x18d   :  { %7032 = vmatprep.mubr.msk.bf16.mxu0 %vm28_vm3, %v12124_v53 }
 0x191   :  { %6963 = vmatmul.mubr.msk.bf16.gmra.mxu1 %vm28_vm3, %v9068_v35 }
 0x192   :  { %6966 = vmatprep.mubr.msk.bf16.mxu1 %vm28_vm3, %v9070_v21 }
 0x194   :  { %7033 = vmatmul.mubr.msk.bf16.gmra.mxu0 %vm28_vm3, %v12125_v27  ;;  %v12139_v27 = vld [vmem:[#allocation97_spill] sm:$0xff] }
 0x195   :  { %7036 = vmatprep.mubr.msk.bf16.mxu0 %vm28_vm3, %v12126_v34 }
 0x199   :  { %6967 = vmatmul.mubr.msk.bf16.gmra.mxu1 %vm28_vm3, %v9082_v30 }
 0x19a   :  { %6970 = vmatprep.mubr.msk.bf16.mxu1 %vm28_vm3, %v9099_v42 }
 0x19c   :  { %7037 = vmatmul.mubr.msk.bf16.gmra.mxu0 %vm28_vm3, %v12127_v47 }
 0x19d   :  { %7040 = vmatprep.mubr.msk.bf16.mxu0 %vm28_vm3, %v12128_v51 }
 0x1a1   :  { %6971 = vmatmul.mubr.msk.bf16.gmra.mxu1 %vm28_vm3, %v9101_v18 }
 0x1a2   :  { %6974 = vmatprep.mubr.msk.bf16.mxu1 %vm28_vm3, %v9154_v29 }
 0x1a4   :  { %7041 = vmatmul.mubr.msk.bf16.gmra.mxu0 %vm28_vm3, %v12129_v26  ;;  %v12136_v26 = vld [vmem:[#allocation22_spill] sm:$0xff] }
 0x1a5   :  { %7044 = vmatprep.mubr.msk.bf16.mxu0 %vm28_vm3, %v12130_v31  ;;  %v12134_v31 = vld [vmem:[#allocation25_spill] sm:$0xff] }
 0x1a9   :  { %6975 = vmatmul.mubr.msk.bf16.gmra.mxu1 %vm28_vm3, %v9138_v37 }
 0x1aa   :  { %6978 = vmatprep.mubr.msk.bf16.mxu1 %vm28_vm3, %v9166_v32 }
 0x1ac   :  { %7045 = vmatmul.mubr.msk.bf16.gmra.mxu0 %vm28_vm3, %v12131_v61  ;;  %v6890_v61 = vpop.f32.mrf.mxu0 }
 0x1ad   :  { %7048 = vmatprep.mubr.msk.bf16.mxu0 %vm28_vm3, %v12132_v44  ;;  %v12135_v44 = vpack.c.bf16 %v9221_v28, %v9195_v14 }
 0x1ae   :  { %v1886_v39 = vpop.f32.mrf.mxu0 }
 0x1b0   :  { %v6891_v51 = vpop.f32.mrf.mxu0 }
 0x1b1   :  { %6979 = vmatmul.mubr.msk.bf16.gmra.mxu1 %vm28_vm3, %v9159_v59 }
 0x1b2   :  { %6982 = vmatprep.mubr.msk.bf16.mxu1 %vm28_vm3, %v9183_v58 }
 0x1b4   :  { %7049 = vmatmul.mubr.msk.bf16.gmra.mxu0 %vm28_vm3, %v9564_v40  ;;  %v6824_v40 = vpop.f32.mrf.mxu1 }
 0x1b5   :  { %7052 = vmatprep.mubr.msk.bf16.mxu0 %vm28_vm3, %v12134_v31  ;;  %v9582_v31 = vadd.f32 %v6890_v61, %v6824_v40 }
 0x1b6   :  { %v1498_v14 = vpop.f32.mrf.mxu1 }
 0x1b7   :  { %v9586_v28 = vadd.f32 %v1886_v39, %v1498_v14 }
 0x1b8   :  { %v6825_v47 = vpop.f32.mrf.mxu1 }
 0x1b9   :  { %6983 = vmatmul.mubr.msk.bf16.gmra.mxu1 %vm28_vm3, %v9199_v52 }
 0x1ba   :  { %6986 = vmatprep.mubr.msk.bf16.mxu1 %vm28_vm3, %v12135_v44  ;;  %v1889_v44 = vpop.f32.mrf.mxu0  ;;  %v1501_v61 = vpop.f32.mrf.mxu1 }
 0x1bb   :  { %v9594_v40 = vadd.f32 %v1889_v44, %v1501_v61 }
 0x1bc   :  { %7053 = vmatmul.mubr.msk.bf16.gmra.mxu0 %vm28_vm3, %v12136_v26  ;;  %v12138_v26 = vld [vmem:[#allocation64_spill] sm:$0xff]  ;;  %v6894_v34 = vpop.f32.mrf.mxu0  ;;  %v6828_v10 = vpop.f32.mrf.mxu1 }
 0x1bd   :  { %7056 = vmatprep.mubr.msk.bf16.mxu0 %vm28_vm3, %v12137_v3  ;;  %v9590_v3 = vadd.f32 %v6891_v51, %v6825_v47  ;;  %v9598_v39 = vadd.f32 %v6894_v34, %v6828_v10 }
 0x1be   :  { %v1902_v53 = vpop.f32.mrf.mxu0  ;;  %v1514_v47 = vpop.f32.mrf.mxu1 }
 0x1bf   :  { %v9602_v51 = vadd.f32 %v1902_v53, %v1514_v47 }
 0x1c0   :  { %v6895_v14 = vpop.f32.mrf.mxu0  ;;  %v6829_v63 = vpop.f32.mrf.mxu1 }
 0x1c1   :  { %6987 = vmatmul.mubr.msk.bf16.gmra.mxu1 %vm28_vm3, %v9223_v2  ;;  %v9606_v44 = vadd.f32 %v6895_v14, %v6829_v63 }
 0x1c2   :  { %6990 = vmatprep.mubr.msk.bf16.mxu1 %vm28_vm3, %v9264_v8  ;;  %v1517_v10 = vpop.f32.mrf.mxu1 }
 0x1c4   :  { %7057 = vmatmul.mubr.msk.bf16.gmra.mxu0 %vm28_vm3, %v12138_v26  ;;  %v1905_v26 = vpop.f32.mrf.mxu0  ;;  %v6832_v20 = vpop.f32.mrf.mxu1 }
 0x1c5   :  { %7060 = vmatprep.mubr.msk.bf16.mxu0 %vm28_vm3, %v12139_v27  ;;  %v12140_v27 = vld [vmem:[#allocation101_spill] sm:$0xff]  ;;  %v9610_v34 = vadd.f32 %v1905_v26, %v1517_v10 }
 0x1c6   :  { %v6898_v61 = vpop.f32.mrf.mxu0  ;;  %v1530_v63 = vpop.f32.mrf.mxu1 }
 0x1c7   :  { %v9614_v53 = vadd.f32 %v6898_v61, %v6832_v20 }
 0x1c8   :  { %v1918_v15 = vpop.f32.mrf.mxu0  ;;  %v6833_v36 = vpop.f32.mrf.mxu1 }
 0x1c9   :  { %6991 = vmatmul.mubr.msk.bf16.gmra.mxu1 %vm28_vm3, %v9250_v55  ;;  %v9618_v14 = vadd.f32 %v1918_v15, %v1530_v63 }
 0x1ca   :  { %6994 = vmatprep.mubr.msk.bf16.mxu1 %vm28_vm3, %v9278_v12  ;;  %v6899_v47 = vpop.f32.mrf.mxu0  ;;  %v1533_v20 = vpop.f32.mrf.mxu1 }
 0x1cb   :  { %v9622_v26 = vadd.f32 %v6899_v47, %v6833_v36 }
 0x1cc   :  { %7061 = vmatmul.mubr.msk.bf16.gmra.mxu0 %vm28_vm3, %v12140_v27  ;;  %v1921_v27 = vpop.f32.mrf.mxu0  ;;  %v6836_v19 = vpop.f32.mrf.mxu1 }
 0x1cd   :  { %7064 = vmatprep.mubr.msk.bf16.mxu0 %vm28_vm3, %v12141_v45  ;;  %v12142_v45 = vld [vmem:[#allocation111_spill] sm:$0xff]  ;;  %v9626_v61 = vadd.f32 %v1921_v27, %v1533_v20 }
 0x1ce   :  { %v6902_v10 = vpop.f32.mrf.mxu0  ;;  %v1546_v36 = vpop.f32.mrf.mxu1 }
 0x1cf   :  { %12144 = vst [vmem:[#allocation3_spill] sm:$0xff] %v9626_v61  ;;  %v9630_v15 = vadd.f32 %v6902_v10, %v6836_v19 }
 0x1d0   :  { %v1934_v7 = vpop.f32.mrf.mxu0  ;;  %v6837_v54 = vpop.f32.mrf.mxu1 }
 0x1d1   :  { %6995 = vmatmul.mubr.msk.bf16.gmra.mxu1 %vm28_vm3, %v9269_v11  ;;  %12145 = vst [vmem:[#allocation76_spill] sm:$0xff] %v9630_v15  ;;  %v9634_v47 = vadd.f32 %v1934_v7, %v1546_v36 }
 0x1d2   :  { %6998 = vmatprep.mubr.msk.bf16.mxu1 %vm28_vm3, %v9324_v23  ;;  %v6903_v63 = vpop.f32.mrf.mxu0  ;;  %v1549_v19 = vpop.f32.mrf.mxu1 }
 0x1d3   :  { %v9638_v27 = vadd.f32 %v6903_v63, %v6837_v54 }
 0x1d4   :  { %7065 = vmatmul.mubr.msk.bf16.gmra.mxu0 %vm28_vm3, %v12142_v45  ;;  %v1937_v45 = vpop.f32.mrf.mxu0  ;;  %v6840_v61 = vpop.f32.mrf.mxu1 }
 0x1d5   :  { %7068 = vmatprep.mubr.msk.bf16.mxu0 %vm28_vm3, %v12143_v16  ;;  %v12146_v16 = vld [vmem:[#allocation117_spill] sm:$0xff]  ;;  %12147 = vst [vmem:[#allocation21_spill] sm:$0xff] %v9638_v27  ;;  %v9642_v10 = vadd.f32 %v1937_v45, %v1549_v19 }
 0x1d6   :  { %v6906_v20 = vpop.f32.mrf.mxu0  ;;  %v1562_v54 = vpop.f32.mrf.mxu1 }
 0x1d7   :  { %v9646_v7 = vadd.f32 %v6906_v20, %v6840_v61 }
 0x1d8   :  { %v1950_v15 = vpop.f32.mrf.mxu0  ;;  %v6841_v27 = vpop.f32.mrf.mxu1 }
 0x1d9   :  { %6999 = vmatmul.mubr.msk.bf16.gmra.mxu1 %vm28_vm3, %v9293_v57  ;;  %12148 = vst [vmem:[#allocation11_spill] sm:$0xff] %v9646_v7  ;;  %v9650_v63 = vadd.f32 %v1950_v15, %v1562_v54 }
 0x1da   :  { %7002 = vmatprep.mubr.msk.bf16.mxu1 %vm28_vm3, %v9338_v6  ;;  %v6907_v36 = vpop.f32.mrf.mxu0  ;;  %v1565_v61 = vpop.f32.mrf.mxu1 }
 0x1db   :  { %v9654_v45 = vadd.f32 %v6907_v36, %v6841_v27 }
 0x1dc   :  { %7069 = vmatmul.mubr.msk.bf16.gmra.mxu0 %vm28_vm3, %v12146_v16  ;;  %v1953_v16 = vpop.f32.mrf.mxu0  ;;  %v6844_v7 = vpop.f32.mrf.mxu1 }
 0x1dd   :  { %7072 = vmatprep.mubr.msk.bf16.mxu0 %vm28_vm3, %v8887_v50  ;;  %12149 = vst [vmem:[#allocation26_spill] sm:$0xff] %v9654_v45  ;;  %v9658_v20 = vadd.f32 %v1953_v16, %v1565_v61 }
 0x1de   :  { %v6910_v19 = vpop.f32.mrf.mxu0  ;;  %v1578_v27 = vpop.f32.mrf.mxu1 }
 0x1df   :  { %v9662_v15 = vadd.f32 %v6910_v19, %v6844_v7 }
 0x1e0   :  { %v1966_v50 = vpop.f32.mrf.mxu0  ;;  %v6845_v45 = vpop.f32.mrf.mxu1 }
 0x1e1   :  { %7003 = vmatmul.mubr.msk.bf16.gmra.mxu1 %vm28_vm3, %v9329_v13  ;;  %12150 = vst [vmem:[#allocation17_spill] sm:$0xff] %v9662_v15  ;;  %v9666_v36 = vadd.f32 %v1966_v50, %v1578_v27 }
 0x1e2   :  { %7006 = vmatprep.mubr.msk.bf16.mxu1 %vm28_vm3, %v9359_v0  ;;  %v6911_v54 = vpop.f32.mrf.mxu0  ;;  %v1581_v7 = vpop.f32.mrf.mxu1 }
 0x1e3   :  { %v9670_v16 = vadd.f32 %v6911_v54, %v6845_v45  ;;  %v9684_v54 = vpack.c.bf16 %v9355_v38, %v9353_v43 }
 0x1e4   :  { %7073 = vmatmul.mubr.msk.bf16.gmra.mxu0 %vm28_vm3, %v12074_v60  ;;  %v1969_v60 = vpop.f32.mrf.mxu0  ;;  %v6848_v15 = vpop.f32.mrf.mxu1 }
 0x1e5   :  { %7076 = vmatprep.mubr.msk.bf16.mxu0 %vm28_vm3, %v12101_v46  ;;  %12151 = vst [vmem:[#allocation10_spill] sm:$0xff] %v9670_v16  ;;  %v9674_v19 = vadd.f32 %v1969_v60, %v1581_v7  ;;  %12154 = vst [vmem:[#allocation45_spill] sm:$0xff] %v9684_v54 }
 0x1e6   :  { %v6914_v61 = vpop.f32.mrf.mxu0  ;;  %v1594_v45 = vpop.f32.mrf.mxu1 }
 0x1e7   :  { %12152 = vst [vmem:[#allocation72_spill] sm:$0xff] %v9674_v19  ;;  %v9678_v50 = vadd.f32 %v6914_v61, %v6848_v15 }
 0x1e8   :  { %v1982_v46 = vpop.f32.mrf.mxu0  ;;  %v6849_v7 = vpop.f32.mrf.mxu1 }
 0x1e9   :  { %7007 = vmatmul.mubr.msk.bf16.gmra.mxu1 %vm28_vm3, %v9361_v24  ;;  %12153 = vst [vmem:[#allocation46_spill] sm:$0xff] %v9678_v50 }
 0x1ea   :  { %7010 = vmatprep.mubr.msk.bf16.mxu1 %vm28_vm3, %v9394_v5  ;;  %v6915_v27 = vpop.f32.mrf.mxu0  ;;  %v1597_v61 = vpop.f32.mrf.mxu1 }
 0x1ec   :  { %7077 = vmatmul.mubr.msk.bf16.gmra.mxu0 %vm28_vm3, %v12103_v25  ;;  %v1985_v60 = vpop.f32.mrf.mxu0  ;;  %v9690_v25 = vadd.f32 %v6915_v27, %v6849_v7  ;;  %v6852_v16 = vpop.f32.mrf.mxu1  ;;  %v6292_v27 = vld [vmem:[%s11496_s3 + $0x1c] sm:$0xf] }
 0x1ed   :  { %7080 = vmatprep.mubr.msk.bf16.mxu0 %vm28_vm3, %v9474_v56  ;;  %v9686_v56 = vadd.f32 %v1982_v46, %v1594_v45  ;;  %v9694_v50 = vadd.f32 %v1985_v60, %v1597_v61  ;;  %v12155_v46 = vld [vmem:[#allocation12_spill] sm:$0xff]  ;;  %7491 = vmatprep.subr.msk.bf16.mxu0 %vm1460_vm2, %v6292_v27  ;;  %v4381_v7 = vsel %vm1460_vm2, %v6292_v27, 0  ;;  %v9722_v27 = vld [vmem:[%s11496_s3 + $0x20] sm:$0xf] }
 0x1ee   :  { %v6918_v15 = vpop.f32.mrf.mxu0  ;;  %v1610_v45 = vpop.f32.mrf.mxu1 }
 0x1ef   :  { %v9698_v43 = vadd.f32 %v6918_v15, %v6852_v16 }
 0x1f0   :  { %v1998_v19 = vpop.f32.mrf.mxu0  ;;  %v6853_v61 = vpop.f32.mrf.mxu1 }
 0x1f1   :  { %7011 = vmatmul.mubr.msk.bf16.gmra.mxu1 %vm28_vm3, %v9388_v17 }
 0x1f2   :  { %7014 = vmatprep.mubr.msk.bf16.mxu1 %vm28_vm3, %v9403_v33  ;;  %v6919_v38 = vpop.f32.mrf.mxu0 }
 0x1f3   :  { %v9711_v16 = vadd.f32 %v6919_v38, %v6853_v61  ;;  %v12159_v38 = vld [vmem:[#allocation15_spill] sm:$0xff] }
 0x1f4   :  { %7081 = vmatmul.mubr.msk.bf16.gmra.mxu0 %vm28_vm3, %v9684_v54  ;;  %v2001_v60 = vpop.f32.mrf.mxu0  ;;  %v3995_v54 = vsel %vm1460_vm2, %v9506_v48, 0 }
 0x1f5   :  { %7152 = vmatprep.mubr.msk.bf16.mxu0 %vm28_vm3, %v12118_v1  ;;  %v9706_v1 = vadd.f32 %v1998_v19, %v1610_v45  ;;  %12157 = vst [vmem:[#allocation59_spill] sm:$0xff] %v9711_v16 }
 0x1f6   :  { %v6922_v15 = vpop.f32.mrf.mxu0 }
 0x1f7   :  { %12156 = vst [vmem:[#allocation66_spill] sm:$0xff] %v9706_v1  ;;  %v12165_v1 = vld [vmem:[#allocation27_spill] sm:$0xff] }
 0x1f8   :  { %v2014_v45 = vpop.f32.mrf.mxu0 }
 0x1f9   :  { %7015 = vmatmul.mubr.msk.bf16.gmra.mxu1 %vm28_vm3, %v9420_v4 }
 0x1fa   :  { %7086 = vmatprep.mubr.msk.bf16.mxu1 %vm28_vm3, %v12155_v46  ;;  %v1613_v46 = vpop.f32.mrf.mxu1 }
 0x1fb   :  { %v9717_v19 = vadd.f32 %v2001_v60, %v1613_v46 }
 0x1fc   :  { %7153 = vmatmul.mubr.msk.bf16.vlgmr.msra.gmra.mxu0 %vm28_vm3, %v12119_v62  ;;  %v6856_v62 = vpop.f32.mrf.mxu1 }
 0x1fd   :  { %7156 = vmatprep.mubr.msk.bf16.mxu0 %vm28_vm3, %v12122_v22  ;;  %7283 = vmatpush3.bf16.msra.mxu0 %v4381_v7  ;;  %12158 = vst [vmem:[#allocation58_spill] sm:$0xff] %v9717_v19  ;;  %v9726_v61 = vadd.f32 %v6922_v15, %v6856_v62  ;;  %v6923_v7 = vpop.f32.mrf.mxu0  ;;  %v12161_v22 = vld [vmem:[#allocation23_spill] sm:$0xff] }
 0x1fe   :  { %v1626_v48 = vpop.f32.mrf.mxu1 }
 0x1ff   :  { %12160 = vst [vmem:[#allocation70_spill] sm:$0xff] %v9726_v61  ;;  %v9732_v60 = vadd.f32 %v2014_v45, %v1626_v48  ;;  %v2017_v46 = vpop.f32.mrf.mxu0 }
 0x200   :  { %v6857_v19 = vpop.f32.mrf.mxu1 }
 0x201   :  { %7087 = vmatmul.mubr.msk.bf16.vlgmr.msra.gmra.mxu1 %vm28_vm3, %v12159_v38  ;;  %12162 = vst [vmem:[#allocation88_spill] sm:$0xff] %v9732_v60  ;;  %v9736_v16 = vadd.f32 %v6923_v7, %v6857_v19  ;;  %v6926_v62 = vpop.f32.mrf.mxu0  ;;  %v12167_v60 = vld [vmem:[#allocation35_spill] sm:$0xff] }
 0x202   :  { %7217 = vmatpush3.bf16.msra.mxu1 %v3995_v54  ;;  %7090 = vmatprep.mubr.msk.bf16.mxu1 %vm28_vm3, %v12161_v22  ;;  %v1629_v54 = vpop.f32.mrf.mxu1 }
 0x203   :  { %7492 = vmatprep.subr.msk.bf16.mxu1 %vm1460_vm2, %v9722_v27  ;;  %12163 = vst [vmem:[#allocation87_spill] sm:$0xff] %v9736_v16  ;;  %v9740_v15 = vadd.f32 %v2017_v46, %v1629_v54  ;;  %v2030_v61 = vpop.f32.mrf.mxu0 }
 0x204   :  { %7157 = vmatmul.mubr.msk.bf16.gmra.mxu0 %vm28_vm3, %v9057_v41  ;;  %v6860_v22 = vpop.f32.mrf.mxu1 }
 0x205   :  { %7160 = vmatprep.mubr.msk.bf16.mxu0 %vm28_vm3, %v9068_v35  ;;  %12164 = vst [vmem:[#allocation94_spill] sm:$0xff] %v9740_v15  ;;  %v9744_v45 = vadd.f32 %v6926_v62, %v6860_v22  ;;  %v6927_v48 = vpop.f32.mrf.mxu0  ;;  %v12171_v15 = vld [vmem:[#allocation37_spill] sm:$0xff] }
 0x206   :  { %v1642_v19 = vpop.f32.mrf.mxu1 }
 0x207   :  { %12166 = vst [vmem:[#allocation79_spill] sm:$0xff] %v9744_v45  ;;  %v9748_v7 = vadd.f32 %v2030_v61, %v1642_v19  ;;  %v2033_v41 = vpop.f32.mrf.mxu0 }
 0x208   :  { %v6861_v16 = vpop.f32.mrf.mxu1 }
 0x209   :  { %7091 = vmatmul.mubr.msk.bf16.gmra.mxu1 %vm28_vm3, %v12165_v1  ;;  %12168 = vst [vmem:[#allocation93_spill] sm:$0xff] %v9748_v7  ;;  %v9752_v46 = vadd.f32 %v6927_v48, %v6861_v16  ;;  %v6930_v54 = vpop.f32.mrf.mxu0  ;;  %v12173_v7 = vld [vmem:[#allocation49_spill] sm:$0xff] }
 0x20a   :  { %7094 = vmatprep.mubr.msk.bf16.mxu1 %vm28_vm3, %v12167_v60  ;;  %v1645_v22 = vpop.f32.mrf.mxu1 }
 0x20b   :  { %12169 = vst [vmem:[#allocation92_spill] sm:$0xff] %v9752_v46  ;;  %v9756_v62 = vadd.f32 %v2033_v41, %v1645_v22  ;;  %v2046_v35 = vpop.f32.mrf.mxu0 }
 0x20c   :  { %7161 = vmatmul.mubr.msk.bf16.gmra.mxu0 %vm28_vm3, %v9070_v21  ;;  %v6864_v45 = vpop.f32.mrf.mxu1 }
 0x20d   :  { %7164 = vmatprep.mubr.msk.bf16.mxu0 %vm28_vm3, %v9082_v30  ;;  %12170 = vst [vmem:[#allocation74_spill] sm:$0xff] %v9756_v62  ;;  %v9760_v61 = vadd.f32 %v6930_v54, %v6864_v45  ;;  %v6931_v19 = vpop.f32.mrf.mxu0  ;;  %v12177_v62 = vld [vmem:[#allocation51_spill] sm:$0xff] }
 0x20e   :  { %v1658_v16 = vpop.f32.mrf.mxu1 }
 0x20f   :  { %12172 = vst [vmem:[#allocation98_spill] sm:$0xff] %v9760_v61  ;;  %v9764_v48 = vadd.f32 %v2046_v35, %v1658_v16  ;;  %v2049_v21 = vpop.f32.mrf.mxu0 }
 0x210   :  { %v6865_v46 = vpop.f32.mrf.mxu1 }
 0x211   :  { %7095 = vmatmul.mubr.msk.bf16.gmra.mxu1 %vm28_vm3, %v12171_v15  ;;  %12174 = vst [vmem:[#allocation104_spill] sm:$0xff] %v9764_v48  ;;  %v9768_v41 = vadd.f32 %v6931_v19, %v6865_v46  ;;  %v6934_v22 = vpop.f32.mrf.mxu0  ;;  %v12179_v48 = vld [vmem:[#allocation65_spill] sm:$0xff] }
 0x212   :  { %7098 = vmatprep.mubr.msk.bf16.mxu1 %vm28_vm3, %v12173_v7  ;;  %v1661_v45 = vpop.f32.mrf.mxu1 }
 0x213   :  { %12175 = vst [vmem:[#allocation102_spill] sm:$0xff] %v9768_v41  ;;  %v9772_v54 = vadd.f32 %v2049_v21, %v1661_v45  ;;  %v2062_v30 = vpop.f32.mrf.mxu0 }
 0x214   :  { %7165 = vmatmul.mubr.msk.bf16.gmra.mxu0 %vm28_vm3, %v9099_v42  ;;  %v6868_v61 = vpop.f32.mrf.mxu1 }
 0x215   :  { %7168 = vmatprep.mubr.msk.bf16.mxu0 %vm28_vm3, %v9101_v18  ;;  %12176 = vst [vmem:[#allocation107_spill] sm:$0xff] %v9772_v54  ;;  %v9776_v35 = vadd.f32 %v6934_v22, %v6868_v61  ;;  %v6935_v16 = vpop.f32.mrf.mxu0  ;;  %v12183_v54 = vld [vmem:[#allocation68_spill] sm:$0xff] }
 0x216   :  { %v1674_v46 = vpop.f32.mrf.mxu1 }
 0x217   :  { %12178 = vst [vmem:[#allocation113_spill] sm:$0xff] %v9776_v35  ;;  %v9780_v19 = vadd.f32 %v2062_v30, %v1674_v46  ;;  %v2065_v42 = vpop.f32.mrf.mxu0 }
 0x218   :  { %v6869_v41 = vpop.f32.mrf.mxu1 }
 0x219   :  { %7099 = vmatmul.mubr.msk.bf16.gmra.mxu1 %vm28_vm3, %v12177_v62  ;;  %12180 = vst [vmem:[#allocation114_spill] sm:$0xff] %v9780_v19  ;;  %v9784_v21 = vadd.f32 %v6935_v16, %v6869_v41  ;;  %v6938_v45 = vpop.f32.mrf.mxu0  ;;  %v12185_v19 = vld [vmem:[#allocation77_spill] sm:$0xff] }
 0x21a   :  { %7102 = vmatprep.mubr.msk.bf16.mxu1 %vm28_vm3, %v12179_v48  ;;  %v1677_v61 = vpop.f32.mrf.mxu1 }
 0x21b   :  { %12181 = vst [vmem:[#allocation103_spill] sm:$0xff] %v9784_v21  ;;  %v9788_v22 = vadd.f32 %v2065_v42, %v1677_v61  ;;  %v2078_v18 = vpop.f32.mrf.mxu0 }
 0x21c   :  { %7169 = vmatmul.mubr.msk.bf16.gmra.mxu0 %vm28_vm3, %v9154_v29  ;;  %v6872_v35 = vpop.f32.mrf.mxu1 }
 0x21d   :  { %7172 = vmatprep.mubr.msk.bf16.mxu0 %vm28_vm3, %v9138_v37  ;;  %12182 = vst [vmem:[#allocation118_spill] sm:$0xff] %v9788_v22  ;;  %v9792_v30 = vadd.f32 %v6938_v45, %v6872_v35  ;;  %v6939_v46 = vpop.f32.mrf.mxu0  ;;  %v12189_v22 = vld [vmem:[#allocation80_spill] sm:$0xff] }
 0x21e   :  { %v1690_v41 = vpop.f32.mrf.mxu1 }
 0x21f   :  { %12184 = vst [vmem:[#allocation108_spill] sm:$0xff] %v9792_v30  ;;  %v9796_v16 = vadd.f32 %v2078_v18, %v1690_v41  ;;  %v2081_v29 = vpop.f32.mrf.mxu0 }
 0x220   :  { %v6873_v21 = vpop.f32.mrf.mxu1 }
 0x221   :  { %7103 = vmatmul.mubr.msk.bf16.gmra.mxu1 %vm28_vm3, %v12183_v54  ;;  %12186 = vst [vmem:[#allocation95_spill] sm:$0xff] %v9796_v16  ;;  %v9800_v42 = vadd.f32 %v6939_v46, %v6873_v21  ;;  %v6942_v61 = vpop.f32.mrf.mxu0  ;;  %v12191_v16 = vld [vmem:[#allocation96_spill] sm:$0xff] }
 0x222   :  { %7106 = vmatprep.mubr.msk.bf16.mxu1 %vm28_vm3, %v12185_v19  ;;  %v1693_v35 = vpop.f32.mrf.mxu1 }
 0x223   :  { %12187 = vst [vmem:[#allocation129_spill] sm:$0xff] %v9800_v42  ;;  %v9804_v45 = vadd.f32 %v2081_v29, %v1693_v35  ;;  %v2094_v37 = vpop.f32.mrf.mxu0 }
 0x224   :  { %7173 = vmatmul.mubr.msk.bf16.gmra.mxu0 %vm28_vm3, %v9166_v32  ;;  %v6876_v30 = vpop.f32.mrf.mxu1 }
 0x225   :  { %7176 = vmatprep.mubr.msk.bf16.mxu0 %vm28_vm3, %v9159_v59  ;;  %12188 = vst [vmem:[#allocation128_spill] sm:$0xff] %v9804_v45  ;;  %v9808_v18 = vadd.f32 %v6942_v61, %v6876_v30  ;;  %v6943_v41 = vpop.f32.mrf.mxu0  ;;  %v12194_v45 = vld [vmem:[#allocation99_spill] sm:$0xff] }
 0x226   :  { %v1706_v21 = vpop.f32.mrf.mxu1 }
 0x227   :  { %12190 = vst [vmem:[#allocation131_spill] sm:$0xff] %v9808_v18  ;;  %v9812_v46 = vadd.f32 %v2094_v37, %v1706_v21  ;;  %v2097_v32 = vpop.f32.mrf.mxu0 }
 0x228   :  { %v6877_v42 = vpop.f32.mrf.mxu1 }
 0x229   :  { %7107 = vmatmul.mubr.msk.bf16.gmra.mxu1 %vm28_vm3, %v12189_v22  ;;  %12192 = vst [vmem:[#allocation8_spill] sm:$0xff] %v9812_v46  ;;  %v9816_v29 = vadd.f32 %v6943_v41, %v6877_v42  ;;  %v12196_v46 = vld [vmem:[#allocation109_spill] sm:$0xff] }
 0x22a   :  { %7110 = vmatprep.mubr.msk.bf16.mxu1 %vm28_vm3, %v12191_v16  ;;  %v1709_v30 = vpop.f32.mrf.mxu1 }
 0x22b   :  { %12193 = vst [vmem:[#allocation6_spill] sm:$0xff] %v9816_v29  ;;  %v9820_v61 = vadd.f32 %v2097_v32, %v1709_v30 }
 0x22c   :  { %7177 = vmatmul.mubr.msk.bf16.gmra.mxu0 %vm28_vm3, %v9183_v58  ;;  %v6946_v35 = vpop.f32.mrf.mxu0 }
 0x22d   :  { %7180 = vmatprep.mubr.msk.bf16.mxu0 %vm28_vm3, %v9199_v52 }
 0x22e   :  { %v2110_v59 = vpop.f32.mrf.mxu0 }
 0x230   :  { %v6947_v21 = vpop.f32.mrf.mxu0 }
 0x231   :  { %v6880_v18 = vpop.f32.mrf.mxu1  ;;  %7111 = vmatmul.mubr.msk.bf16.gmra.mxu1 %vm28_vm3, %v12194_v45 }
 0x232   :  { %v9824_v37 = vadd.f32 %v6946_v35, %v6880_v18  ;;  %7114 = vmatprep.mubr.msk.bf16.mxu1 %vm28_vm3, %v12196_v46  ;;  %v2113_v58 = vpop.f32.mrf.mxu0 }
 0x233   :  { %v1722_v42 = vpop.f32.mrf.mxu1 }
 0x234   :  { %12195 = vst [vmem:[#allocation130_spill] sm:$0xff] %v9824_v37  ;;  %v9828_v41 = vadd.f32 %v2110_v59, %v1722_v42  ;;  %7181 = vmatmul.mubr.msk.bf16.gmra.mxu0 %vm28_vm3, %v9447_v9  ;;  %v6950_v30 = vpop.f32.mrf.mxu0 }
 0x235   :  { %v6881_v29 = vpop.f32.mrf.mxu1  ;;  %7184 = vmatprep.mubr.msk.bf16.mxu0 %vm28_vm3, %v9223_v2 }
 0x236   :  { %12197 = vst [vmem:[#allocation63_spill] sm:$0xff] %v9828_v41  ;;  %v9832_v32 = vadd.f32 %v6947_v21, %v6881_v29  ;;  %v2126_v52 = vpop.f32.mrf.mxu0  ;;  %v12200_v41 = vld [vmem:[#allocation41_spill] sm:$0xff] }
 0x237   :  { %v1725_v18 = vpop.f32.mrf.mxu1 }
 0x238   :  { %12198 = vst [vmem:[#allocation25_spill] sm:$0xff] %v9832_v32  ;;  %v9836_v35 = vadd.f32 %v2113_v58, %v1725_v18  ;;  %v6951_v42 = vpop.f32.mrf.mxu0 }
 0x239   :  { %v6884_v37 = vpop.f32.mrf.mxu1  ;;  %7115 = vmatmul.mubr.msk.bf16.gmra.mxu1 %vm28_vm3, %v9449_v49 }
 0x23a   :  { %v9840_v59 = vadd.f32 %v6950_v30, %v6884_v37  ;;  %7118 = vmatprep.mubr.msk.bf16.mxu1 %vm28_vm3, %v12200_v41  ;;  %v2129_v9 = vpop.f32.mrf.mxu0  ;;  %v12204_v41 = vld [vmem:[#allocation55_spill] sm:$0xff] }
 0x23b   :  { %v1738_v29 = vpop.f32.mrf.mxu1 }
 0x23c   :  { %12199 = vst [vmem:[#allocation12_spill] sm:$0xff] %v9840_v59  ;;  %v9844_v21 = vadd.f32 %v2126_v52, %v1738_v29  ;;  %7185 = vmatmul.mubr.msk.bf16.gmra.mxu0 %vm28_vm3, %v9264_v8  ;;  %v7022_v2 = vpop.f32.mrf.mxu0 }
 0x23d   :  { %v6885_v32 = vpop.f32.mrf.mxu1  ;;  %7188 = vmatprep.mubr.msk.bf16.mxu0 %vm28_vm3, %v9250_v55 }
 0x23e   :  { %12201 = vst [vmem:[#allocation15_spill] sm:$0xff] %v9844_v21  ;;  %v9848_v58 = vadd.f32 %v6951_v42, %v6885_v32  ;;  %v2899_v18 = vpop.f32.mrf.mxu0  ;;  %v12205_v21 = vld [vmem:[#allocation85_spill] sm:$0xff] }
 0x23f   :  { %v1741_v37 = vpop.f32.mrf.mxu1 }
 0x240   :  { %12202 = vst [vmem:[#allocation27_spill] sm:$0xff] %v9848_v58  ;;  %v9852_v30 = vadd.f32 %v2129_v9, %v1741_v37  ;;  %v7023_v29 = vpop.f32.mrf.mxu0 }
 0x241   :  { %v6956_v59 = vpop.f32.mrf.mxu1  ;;  %7119 = vmatmul.mubr.msk.bf16.gmra.mxu1 %vm28_vm3, %v12204_v41 }
 0x242   :  { %12203 = vst [vmem:[#allocation35_spill] sm:$0xff] %v9852_v30  ;;  %v2790_v52 = vadd.f32 %v6956_v59, %v9582_v31  ;;  %7122 = vmatprep.mubr.msk.bf16.mxu1 %vm28_vm3, %v12205_v21  ;;  %v2902_v8 = vpop.f32.mrf.mxu0 }
 0x243   :  { %v2533_v32 = vpop.f32.mrf.mxu1 }
 0x244   :  { %v2788_v42 = vadd.f32 %v2533_v32, %v9586_v28  ;;  %v9860_v58 = vadd.f32 %v7022_v2, %v2790_v52  ;;  %7189 = vmatmul.mubr.msk.bf16.gmra.mxu0 %vm28_vm3, %v9278_v12  ;;  %v7026_v37 = vpop.f32.mrf.mxu0  ;;  %v12206_v52 = vld [vmem:[#allocation91_spill] sm:$0xff] }
 0x245   :  { %v6957_v55 = vpop.f32.mrf.mxu1  ;;  %7192 = vmatprep.mubr.msk.bf16.mxu0 %vm28_vm3, %v9269_v11 }
 0x246   :  { %v2791_v9 = vadd.f32 %v6957_v55, %v9590_v3  ;;  %v9867_v31 = vadd.f32 %v2899_v18, %v2788_v42  ;;  %v2915_v21 = vpop.f32.mrf.mxu0  ;;  %v12207_v55 = vld [vmem:[#allocation110_spill] sm:$0xff] }
 0x247   :  { %v2536_v59 = vpop.f32.mrf.mxu1 }
 0x248   :  { %v2789_v30 = vadd.f32 %v2536_v59, %v9594_v40  ;;  %v9870_v28 = vadd.f32 %v7023_v29, %v2791_v9  ;;  %v7027_v12 = vpop.f32.mrf.mxu0 }
 0x249   :  { %v6960_v2 = vpop.f32.mrf.mxu1  ;;  %7123 = vmatmul.mubr.msk.bf16.gmra.mxu1 %vm28_vm3, %v12206_v52 }
 0x24a   :  { %v2794_v32 = vadd.f32 %v6960_v2, %v9598_v39  ;;  %7126 = vmatprep.mubr.msk.bf16.mxu1 %vm28_vm3, %v12207_v55  ;;  %v9877_v3 = vadd.f32 %v2902_v8, %v2789_v30  ;;  %v2918_v11 = vpop.f32.mrf.mxu0 }
 0x24b   :  { %v2549_v18 = vpop.f32.mrf.mxu1 }
 0x24c   :  { %v2792_v42 = vadd.f32 %v2549_v18, %v9602_v51  ;;  %v9880_v40 = vadd.f32 %v7026_v37, %v2794_v32  ;;  %7193 = vmatmul.mubr.msk.bf16.gmra.mxu0 %vm28_vm3, %v9324_v23  ;;  %v7030_v59 = vpop.f32.mrf.mxu0  ;;  %v12208_v32 = vld [vmem:[#allocation112_spill] sm:$0xff] }
 0x24d   :  { %v6961_v29 = vpop.f32.mrf.mxu1  ;;  %7196 = vmatprep.mubr.msk.bf16.mxu0 %vm28_vm3, %v9293_v57 }
 0x24e   :  { %v2795_v9 = vadd.f32 %v6961_v29, %v9606_v44  ;;  %v9887_v39 = vadd.f32 %v2915_v21, %v2792_v42  ;;  %v2931_v2 = vpop.f32.mrf.mxu0  ;;  %v12209_v44 = vld [vmem:[#allocation116_spill] sm:$0xff] }
 0x24f   :  { %v2552_v8 = vpop.f32.mrf.mxu1 }
 0x250   :  { %v2793_v30 = vadd.f32 %v2552_v8, %v9610_v34  ;;  %v9890_v51 = vadd.f32 %v7027_v12, %v2795_v9  ;;  %v7031_v23 = vpop.f32.mrf.mxu0 }
 0x251   :  { %v6964_v37 = vpop.f32.mrf.mxu1  ;;  %7127 = vmatmul.mubr.msk.bf16.gmra.mxu1 %vm28_vm3, %v12208_v32 }
 0x252   :  { %v2798_v18 = vadd.f32 %v6964_v37, %v9614_v53  ;;  %7130 = vmatprep.mubr.msk.bf16.mxu1 %vm28_vm3, %v12209_v44  ;;  %v9897_v29 = vadd.f32 %v2918_v11, %v2793_v30  ;;  %v2934_v57 = vpop.f32.mrf.mxu0  ;;  %v12212_v30 = vld [vmem:[#allocation3_spill] sm:$0xff] }
 0x253   :  { %v2565_v21 = vpop.f32.mrf.mxu1 }
 0x254   :  { %12210 = vst [vmem:[#allocation37_spill] sm:$0xff] %v9897_v29  ;;  %v2796_v42 = vadd.f32 %v2565_v21, %v9618_v14  ;;  %v9900_v34 = vadd.f32 %v7030_v59, %v2798_v18  ;;  %7197 = vmatmul.mubr.msk.bf16.gmra.mxu0 %vm28_vm3, %v9338_v6  ;;  %v7034_v8 = vpop.f32.mrf.mxu0  ;;  %v12214_v18 = vld [vmem:[#allocation119_spill] sm:$0xff]  ;;  %v12215_v21 = vld [vmem:[#allocation76_spill] sm:$0xff] }
 0x255   :  { %v6965_v12 = vpop.f32.mrf.mxu1  ;;  %7200 = vmatprep.mubr.msk.bf16.mxu0 %vm28_vm3, %v9329_v13 }
 0x256   :  { %12211 = vst [vmem:[#allocation49_spill] sm:$0xff] %v9900_v34  ;;  %v2799_v9 = vadd.f32 %v6965_v12, %v9622_v26  ;;  %v9907_v53 = vadd.f32 %v2931_v2, %v2796_v42  ;;  %v2947_v29 = vpop.f32.mrf.mxu0  ;;  %v12216_v26 = vld [vmem:[#allocation120_spill] sm:$0xff] }
 0x257   :  { %v2568_v11 = vpop.f32.mrf.mxu1 }
 0x258   :  { %v2797_v37 = vadd.f32 %v2568_v11, %v12212_v30  ;;  %v9910_v14 = vadd.f32 %v7031_v23, %v2799_v9  ;;  %v7035_v34 = vpop.f32.mrf.mxu0  ;;  %v12218_v9 = vld [vmem:[#allocation21_spill] sm:$0xff] }
 0x259   :  { %v6968_v59 = vpop.f32.mrf.mxu1  ;;  %7131 = vmatmul.mubr.msk.bf16.gmra.mxu1 %vm28_vm3, %v12214_v18 }
 0x25a   :  { %12213 = vst [vmem:[#allocation51_spill] sm:$0xff] %v9910_v14  ;;  %v2802_v6 = vadd.f32 %v6968_v59, %v12215_v21  ;;  %7134 = vmatprep.mubr.msk.bf16.mxu1 %vm28_vm3, %v12216_v26  ;;  %v9917_v12 = vadd.f32 %v2934_v57, %v2797_v37  ;;  %v2950_v13 = vpop.f32.mrf.mxu0 }
 0x25b   :  { %v2581_v2 = vpop.f32.mrf.mxu1 }
 0x25c   :  { %v2800_v42 = vadd.f32 %v2581_v2, %v9634_v47  ;;  %v9920_v11 = vadd.f32 %v7034_v8, %v2802_v6  ;;  %7201 = vmatmul.mubr.msk.bf16.gmra.mxu0 %vm28_vm3, %v9359_v0  ;;  %v7038_v14 = vpop.f32.mrf.mxu0  ;;  %v12220_v8 = vld [vmem:[#allocation122_spill] sm:$0xff]  ;;  %v12221_v2 = vld [vmem:[#allocation11_spill] sm:$0xff] }
 0x25d   :  { %v6969_v23 = vpop.f32.mrf.mxu1  ;;  %7204 = vmatprep.mubr.msk.bf16.mxu0 %vm28_vm3, %v9361_v24 }
 0x25e   :  { %12217 = vst [vmem:[#allocation65_spill] sm:$0xff] %v9920_v11  ;;  %v2803_v30 = vadd.f32 %v6969_v23, %v12218_v9  ;;  %v9927_v59 = vadd.f32 %v2947_v29, %v2800_v42  ;;  %v2963_v21 = vpop.f32.mrf.mxu0  ;;  %v12222_v23 = vld [vmem:[#allocation125_spill] sm:$0xff] }
 0x25f   :  { %v2584_v57 = vpop.f32.mrf.mxu1 }
 0x260   :  { %v2801_v37 = vadd.f32 %v2584_v57, %v9642_v10  ;;  %v9930_v47 = vadd.f32 %v7035_v34, %v2803_v30  ;;  %v7039_v11 = vpop.f32.mrf.mxu0  ;;  %v12224_v30 = vld [vmem:[#allocation26_spill] sm:$0xff] }
 0x261   :  { %v6972_v6 = vpop.f32.mrf.mxu1  ;;  %7135 = vmatmul.mubr.msk.bf16.gmra.mxu1 %vm28_vm3, %v12220_v8 }
 0x262   :  { %12219 = vst [vmem:[#allocation68_spill] sm:$0xff] %v9930_v47  ;;  %v2806_v0 = vadd.f32 %v6972_v6, %v12221_v2  ;;  %7138 = vmatprep.mubr.msk.bf16.mxu1 %vm28_vm3, %v12222_v23  ;;  %v9937_v9 = vadd.f32 %v2950_v13, %v2801_v37  ;;  %v2966_v24 = vpop.f32.mrf.mxu0 }
 0x263   :  { %v2597_v29 = vpop.f32.mrf.mxu1 }
 0x264   :  { %v2804_v42 = vadd.f32 %v2597_v29, %v9650_v63  ;;  %v9940_v10 = vadd.f32 %v7038_v14, %v2806_v0  ;;  %7205 = vmatmul.mubr.msk.bf16.gmra.mxu0 %vm28_vm3, %v9394_v5  ;;  %v7042_v47 = vpop.f32.mrf.mxu0  ;;  %v12226_v14 = vld [vmem:[#allocation127_spill] sm:$0xff]  ;;  %v12227_v29 = vld [vmem:[#allocation17_spill] sm:$0xff] }
 0x265   :  { %v6973_v34 = vpop.f32.mrf.mxu1  ;;  %7208 = vmatprep.mubr.msk.bf16.mxu0 %vm28_vm3, %v9388_v17 }
 0x266   :  { %12223 = vst [vmem:[#allocation77_spill] sm:$0xff] %v9940_v10  ;;  %v2807_v57 = vadd.f32 %v6973_v34, %v12224_v30  ;;  %v9947_v6 = vadd.f32 %v2963_v21, %v2804_v42  ;;  %v2979_v2 = vpop.f32.mrf.mxu0  ;;  %v12228_v34 = vld [vmem:[#allocation89_spill] sm:$0xff] }
 0x267   :  { %v2600_v13 = vpop.f32.mrf.mxu1 }
 0x268   :  { %v2805_v37 = vadd.f32 %v2600_v13, %v9658_v20  ;;  %v9950_v63 = vadd.f32 %v7039_v11, %v2807_v57  ;;  %v7043_v10 = vpop.f32.mrf.mxu0  ;;  %v12231_v57 = vld [vmem:[#allocation10_spill] sm:$0xff] }
 0x269   :  { %v6976_v0 = vpop.f32.mrf.mxu1  ;;  %7139 = vmatmul.mubr.msk.bf16.gmra.mxu1 %vm28_vm3, %v12226_v14 }
 0x26a   :  { %12225 = vst [vmem:[#allocation80_spill] sm:$0xff] %v9950_v63  ;;  %v2810_v5 = vadd.f32 %v6976_v0, %v12227_v29  ;;  %7142 = vmatprep.mubr.msk.bf16.mxu1 %vm28_vm3, %v12228_v34  ;;  %v9957_v30 = vadd.f32 %v2966_v24, %v2805_v37  ;;  %v2982_v17 = vpop.f32.mrf.mxu0  ;;  %v12232_v37 = vld [vmem:[#allocation72_spill] sm:$0xff] }
 0x26b   :  { %v2613_v21 = vpop.f32.mrf.mxu1 }
 0x26c   :  { %12229 = vst [vmem:[#allocation96_spill] sm:$0xff] %v9957_v30  ;;  %v2808_v42 = vadd.f32 %v2613_v21, %v9666_v36  ;;  %v9960_v20 = vadd.f32 %v7042_v47, %v2810_v5  ;;  %7209 = vmatmul.mubr.msk.bf16.gmra.mxu0 %vm28_vm3, %v9403_v33  ;;  %v7046_v63 = vpop.f32.mrf.mxu0  ;;  %v12234_v47 = vld [vmem:[#allocation83_spill] sm:$0xff]  ;;  %v12235_v21 = vld [vmem:[#allocation46_spill] sm:$0xff] }
 0x26d   :  { %v6977_v11 = vpop.f32.mrf.mxu1  ;;  %7212 = vmatprep.mubr.msk.bf16.mxu0 %vm28_vm3, %v9420_v4 }
 0x26e   :  { %12230 = vst [vmem:[#allocation99_spill] sm:$0xff] %v9960_v20  ;;  %v2811_v13 = vadd.f32 %v6977_v11, %v12231_v57  ;;  %v9967_v0 = vadd.f32 %v2979_v2, %v2808_v42  ;;  %v2995_v30 = vpop.f32.mrf.mxu0  ;;  %v12236_v11 = vld [vmem:[#allocation100_spill] sm:$0xff] }
 0x26f   :  { %v2616_v24 = vpop.f32.mrf.mxu1 }
 0x270   :  { %v2809_v29 = vadd.f32 %v2616_v24, %v12232_v37  ;;  %v9970_v36 = vadd.f32 %v7043_v10, %v2811_v13  ;;  %v7047_v20 = vpop.f32.mrf.mxu0  ;;  %v12238_v13 = vld [vmem:[#allocation82_spill] sm:$0xff] }
 0x271   :  { %v6980_v5 = vpop.f32.mrf.mxu1  ;;  %7143 = vmatmul.mubr.msk.bf16.gmra.mxu1 %vm28_vm3, %v12234_v47 }
 0x272   :  { %12233 = vst [vmem:[#allocation109_spill] sm:$0xff] %v9970_v36  ;;  %v2814_v33 = vadd.f32 %v6980_v5, %v12235_v21  ;;  %7146 = vmatprep.mubr.msk.bf16.mxu1 %vm28_vm3, %v12236_v11  ;;  %v9977_v57 = vadd.f32 %v2982_v17, %v2809_v29  ;;  %v2998_v4 = vpop.f32.mrf.mxu0 }
 0x273   :  { %v2629_v2 = vpop.f32.mrf.mxu1 }
 0x274   :  { %v2812_v42 = vadd.f32 %v2629_v2, %v9686_v56  ;;  %v9980_v24 = vadd.f32 %v7046_v63, %v2814_v33  ;;  %7213 = vmatmul.mubr.msk.bf16.gmra.mxu0 %vm28_vm3, %v12238_v13  ;;  %v7050_v36 = vpop.f32.mrf.mxu0  ;;  %v12241_v63 = vld [vmem:[#allocation78_spill] sm:$0xff] }
 0x275   :  { %v6981_v10 = vpop.f32.mrf.mxu1  ;;  %7284 = vmatprep.mubr.msk.bf16.mxu0 %vm28_vm3, %v12159_v38 }
 0x276   :  { %12237 = vst [vmem:[#allocation41_spill] sm:$0xff] %v9980_v24  ;;  %v2815_v37 = vadd.f32 %v6981_v10, %v9690_v25  ;;  %v9987_v5 = vadd.f32 %v2995_v30, %v2812_v42  ;;  %v3011_v21 = vpop.f32.mrf.mxu0  ;;  %v12242_v25 = vld [vmem:[#allocation9_spill] sm:$0xff]  ;;  %v12243_v30 = vld [vmem:[#allocation66_spill] sm:$0xff] }
 0x277   :  { %v2632_v17 = vpop.f32.mrf.mxu1 }
 0x278   :  { %12239 = vst [vmem:[#allocation55_spill] sm:$0xff] %v9987_v5  ;;  %v2813_v29 = vadd.f32 %v2632_v17, %v9694_v50  ;;  %v9990_v56 = vadd.f32 %v7047_v20, %v2815_v37  ;;  %v7051_v13 = vpop.f32.mrf.mxu0  ;;  %v12244_v37 = vld [vmem:[#allocation23_spill] sm:$0xff] }
 0x279   :  { %v6984_v33 = vpop.f32.mrf.mxu1  ;;  %7147 = vmatmul.mubr.msk.bf16.gmra.mxu1 %vm28_vm3, %v12241_v63  ;;  %v12245_v17 = vld [vmem:[#allocation59_spill] sm:$0xff] }
 0x27a   :  { %12240 = vst [vmem:[#allocation91_spill] sm:$0xff] %v9990_v56  ;;  %v2818_v2 = vadd.f32 %v6984_v33, %v9698_v43  ;;  %7218 = vmatprep.mubr.msk.bf16.mxu1 %vm28_vm3, %v12242_v25  ;;  %v9997_v10 = vadd.f32 %v2998_v4, %v2813_v29  ;;  %v3014_v5 = vpop.f32.mrf.mxu0  ;;  %v4761_v29 = vsel %vm1460_vm2, %v9722_v27, 0  ;;  %v12247_v33 = vld [vmem:[#allocation58_spill] sm:$0xff]  ;;  %v12251_v27 = vld [vmem:[#allocation88_spill] sm:$0xff] }
 0x27b   :  { %v2645_v38 = vpop.f32.mrf.mxu1 }
 0x27c   :  { %v2816_v42 = vadd.f32 %v2645_v38, %v12243_v30  ;;  %v10000_v50 = vadd.f32 %v7050_v36, %v2818_v2  ;;  %7285 = vmatmul.mubr.msk.bf16.vlgmr.msra.gmra.mxu0 %vm28_vm3, %v12244_v37  ;;  %v7054_v24 = vpop.f32.mrf.mxu0  ;;  %v12248_v30 = vld [vmem:[#allocation19_spill] sm:$0xff] }
 0x27d   :  { %v6985_v20 = vpop.f32.mrf.mxu1  ;;  %7288 = vmatprep.mubr.msk.bf16.mxu0 %vm28_vm3, %v12165_v1  ;;  %v12250_v1 = vld [vmem:[#allocation20_spill] sm:$0xff] }
 0x27e   :  { %v2819_v56 = vadd.f32 %v6985_v20, %v12245_v17  ;;  %v10007_v43 = vadd.f32 %v3011_v21, %v2816_v42  ;;  %v3027_v36 = vpop.f32.mrf.mxu0  ;;  %v12249_v20 = vld [vmem:[#allocation70_spill] sm:$0xff] }
 0x27f   :  { %v2648_v4 = vpop.f32.mrf.mxu1 }
 0x280   :  { %12246 = vst [vmem:[#allocation110_spill] sm:$0xff] %v10007_v43  ;;  %v2817_v25 = vadd.f32 %v2648_v4, %v12247_v33  ;;  %v10012_v2 = vadd.f32 %v7051_v13, %v2819_v56  ;;  %v7055_v17 = vpop.f32.mrf.mxu0  ;;  %v12253_v56 = vld [vmem:[#allocation87_spill] sm:$0xff] }
 0x281   :  { %v6988_v38 = vpop.f32.mrf.mxu1  ;;  %7219 = vmatmul.mubr.msk.bf16.vlgmr.msra.gmra.mxu1 %vm28_vm3, %v12248_v30 }
 0x282   :  { %v2822_v37 = vadd.f32 %v6988_v38, %v12249_v20  ;;  %7349 = vmatpush3.bf16.msra.mxu1 %v4761_v29  ;;  %7222 = vmatprep.mubr.msk.bf16.mxu1 %vm28_vm3, %v12250_v1  ;;  %v10019_v21 = vadd.f32 %v3014_v5, %v2817_v25  ;;  %v3030_v4 = vpop.f32.mrf.mxu0  ;;  %v12255_v25 = vld [vmem:[#allocation94_spill] sm:$0xff] }
 0x283   :  { %v2661_v42 = vpop.f32.mrf.mxu1 }
 0x284   :  { %v2820_v43 = vadd.f32 %v2661_v42, %v12251_v27  ;;  %v10022_v33 = vadd.f32 %v7054_v24, %v2822_v37  ;;  %7289 = vmatmul.mubr.msk.bf16.gmra.mxu0 %vm28_vm3, %v12167_v60  ;;  %v7058_v38 = vpop.f32.mrf.mxu0  ;;  %v12256_v37 = vld [vmem:[#allocation33_spill] sm:$0xff]  ;;  %v12257_v27 = vld [vmem:[#allocation79_spill] sm:$0xff] }
 0x285   :  { %v6989_v13 = vpop.f32.mrf.mxu1  ;;  %7292 = vmatprep.mubr.msk.bf16.mxu0 %vm28_vm3, %v12171_v15 }
 0x286   :  { %12252 = vst [vmem:[#allocation112_spill] sm:$0xff] %v10022_v33  ;;  %v2823_v30 = vadd.f32 %v6989_v13, %v12253_v56  ;;  %v10029_v29 = vadd.f32 %v3027_v36, %v2820_v43  ;;  %v3043_v1 = vpop.f32.mrf.mxu0  ;;  %v12258_v13 = vld [vmem:[#allocation34_spill] sm:$0xff]  ;;  %v12259_v43 = vld [vmem:[#allocation93_spill] sm:$0xff] }
 0x287   :  { %v2664_v5 = vpop.f32.mrf.mxu1 }
 0x288   :  { %12254 = vst [vmem:[#allocation116_spill] sm:$0xff] %v10029_v29  ;;  %v2821_v20 = vadd.f32 %v2664_v5, %v12255_v25  ;;  %v10032_v42 = vadd.f32 %v7055_v17, %v2823_v30  ;;  %v7059_v33 = vpop.f32.mrf.mxu0  ;;  %v12261_v30 = vld [vmem:[#allocation92_spill] sm:$0xff] }
 0x289   :  { %v6992_v24 = vpop.f32.mrf.mxu1  ;;  %7223 = vmatmul.mubr.msk.bf16.gmra.mxu1 %vm28_vm3, %v12256_v37 }
 0x28a   :  { %v2826_v60 = vadd.f32 %v6992_v24, %v12257_v27  ;;  %7226 = vmatprep.mubr.msk.bf16.mxu1 %vm28_vm3, %v12258_v13  ;;  %v10039_v56 = vadd.f32 %v3030_v4, %v2821_v20  ;;  %v3046_v29 = vpop.f32.mrf.mxu0  ;;  %v12263_v20 = vld [vmem:[#allocation74_spill] sm:$0xff] }
 0x28b   :  { %v2677_v15 = vpop.f32.mrf.mxu1 }
 0x28c   :  { %v2824_v36 = vadd.f32 %v2677_v15, %v12259_v43  ;;  %v10042_v5 = vadd.f32 %v7058_v38, %v2826_v60  ;;  %7293 = vmatmul.mubr.msk.bf16.gmra.mxu0 %vm28_vm3, %v12173_v7  ;;  %v7062_v37 = vpop.f32.mrf.mxu0  ;;  %v12264_v60 = vld [vmem:[#allocation44_spill] sm:$0xff]  ;;  %v12265_v43 = vld [vmem:[#allocation98_spill] sm:$0xff] }
 0x28d   :  { %v6993_v17 = vpop.f32.mrf.mxu1  ;;  %7296 = vmatprep.mubr.msk.bf16.mxu0 %vm28_vm3, %v12177_v62 }
 0x28e   :  { %12260 = vst [vmem:[#allocation3_spill] sm:$0xff] %v10042_v5  ;;  %v2827_v25 = vadd.f32 %v6993_v17, %v12261_v30  ;;  %v10049_v24 = vadd.f32 %v3043_v1, %v2824_v36  ;;  %v3059_v13 = vpop.f32.mrf.mxu0  ;;  %v12266_v17 = vld [vmem:[#allocation47_spill] sm:$0xff]  ;;  %v12267_v1 = vld [vmem:[#allocation104_spill] sm:$0xff] }
 0x28f   :  { %v2680_v4 = vpop.f32.mrf.mxu1 }
 0x290   :  { %12262 = vst [vmem:[#allocation119_spill] sm:$0xff] %v10049_v24  ;;  %v2825_v27 = vadd.f32 %v2680_v4, %v12263_v20  ;;  %v10052_v15 = vadd.f32 %v7059_v33, %v2827_v25  ;;  %v7063_v5 = vpop.f32.mrf.mxu0  ;;  %v12269_v25 = vld [vmem:[#allocation102_spill] sm:$0xff] }
 0x291   :  { %v6996_v38 = vpop.f32.mrf.mxu1  ;;  %7227 = vmatmul.mubr.msk.bf16.gmra.mxu1 %vm28_vm3, %v12264_v60 }
 0x292   :  { %v2830_v7 = vadd.f32 %v6996_v38, %v12265_v43  ;;  %7230 = vmatprep.mubr.msk.bf16.mxu1 %vm28_vm3, %v12266_v17  ;;  %v10059_v30 = vadd.f32 %v3046_v29, %v2825_v27  ;;  %v3062_v24 = vpop.f32.mrf.mxu0  ;;  %v12271_v27 = vld [vmem:[#allocation107_spill] sm:$0xff] }
 0x293   :  { %v2693_v62 = vpop.f32.mrf.mxu1 }
 0x294   :  { %v2828_v36 = vadd.f32 %v2693_v62, %v12267_v1  ;;  %v10062_v4 = vadd.f32 %v7062_v37, %v2830_v7  ;;  %7297 = vmatmul.mubr.msk.bf16.gmra.mxu0 %vm28_vm3, %v12179_v48  ;;  %v7066_v60 = vpop.f32.mrf.mxu0  ;;  %v12272_v7 = vld [vmem:[#allocation57_spill] sm:$0xff] }
 0x295   :  { %v6997_v33 = vpop.f32.mrf.mxu1  ;;  %7300 = vmatprep.mubr.msk.bf16.mxu0 %vm28_vm3, %v12183_v54  ;;  %v12273_v1 = vld [vmem:[#allocation113_spill] sm:$0xff] }
 0x296   :  { %12268 = vst [vmem:[#allocation76_spill] sm:$0xff] %v10062_v4  ;;  %v2831_v20 = vadd.f32 %v6997_v33, %v12269_v25  ;;  %v10069_v38 = vadd.f32 %v3059_v13, %v2828_v36  ;;  %v3075_v17 = vpop.f32.mrf.mxu0  ;;  %v12274_v33 = vld [vmem:[#allocation61_spill] sm:$0xff]  ;;  %v12276_v13 = vld [vmem:[#allocation114_spill] sm:$0xff] }
 0x297   :  { %v2696_v29 = vpop.f32.mrf.mxu1 }
 0x298   :  { %12270 = vst [vmem:[#allocation120_spill] sm:$0xff] %v10069_v38  ;;  %v2829_v43 = vadd.f32 %v2696_v29, %v12271_v27  ;;  %v10072_v62 = vadd.f32 %v7063_v5, %v2831_v20  ;;  %v7067_v4 = vpop.f32.mrf.mxu0  ;;  %v12278_v20 = vld [vmem:[#allocation103_spill] sm:$0xff] }
 0x299   :  { %v7000_v37 = vpop.f32.mrf.mxu1  ;;  %7231 = vmatmul.mubr.msk.bf16.gmra.mxu1 %vm28_vm3, %v12272_v7 }
 0x29a   :  { %v2834_v48 = vadd.f32 %v7000_v37, %v12273_v1  ;;  %7234 = vmatprep.mubr.msk.bf16.mxu1 %vm28_vm3, %v12274_v33  ;;  %v10079_v25 = vadd.f32 %v3062_v24, %v2829_v43  ;;  %v3078_v38 = vpop.f32.mrf.mxu0  ;;  %v12280_v43 = vld [vmem:[#allocation118_spill] sm:$0xff] }
 0x29b   :  { %v2709_v54 = vpop.f32.mrf.mxu1 }
 0x29c   :  { %12275 = vst [vmem:[#allocation21_spill] sm:$0xff] %v10079_v25  ;;  %v2832_v36 = vadd.f32 %v2709_v54, %v12276_v13  ;;  %v10082_v29 = vadd.f32 %v7066_v60, %v2834_v48  ;;  %7301 = vmatmul.mubr.msk.bf16.gmra.mxu0 %vm28_vm3, %v12185_v19  ;;  %v7070_v7 = vpop.f32.mrf.mxu0  ;;  %v12282_v48 = vld [vmem:[#allocation73_spill] sm:$0xff]  ;;  %v12283_v13 = vld [vmem:[#allocation108_spill] sm:$0xff] }
 0x29d   :  { %v7001_v5 = vpop.f32.mrf.mxu1  ;;  %7304 = vmatprep.mubr.msk.bf16.mxu0 %vm28_vm3, %v12189_v22 }
 0x29e   :  { %12277 = vst [vmem:[#allocation122_spill] sm:$0xff] %v10082_v29  ;;  %v2835_v27 = vadd.f32 %v7001_v5, %v12278_v20  ;;  %v10089_v37 = vadd.f32 %v3075_v17, %v2832_v36  ;;  %v3091_v33 = vpop.f32.mrf.mxu0  ;;  %v12284_v5 = vld [vmem:[#allocation75_spill] sm:$0xff] }
 0x29f   :  { %v2712_v24 = vpop.f32.mrf.mxu1  ;;  %v12286_v17 = vld [vmem:[#allocation95_spill] sm:$0xff] }
 0x2a0   :  { %12279 = vst [vmem:[#allocation11_spill] sm:$0xff] %v10089_v37  ;;  %v2833_v1 = vadd.f32 %v2712_v24, %v12280_v43  ;;  %v10092_v54 = vadd.f32 %v7067_v4, %v2835_v27  ;;  %v7071_v29 = vpop.f32.mrf.mxu0  ;;  %v12288_v27 = vld [vmem:[#allocation129_spill] sm:$0xff] }
 0x2a1   :  { %v7004_v60 = vpop.f32.mrf.mxu1  ;;  %7235 = vmatmul.mubr.msk.bf16.gmra.mxu1 %vm28_vm3, %v12282_v48 }
 0x2a2   :  { %12281 = vst [vmem:[#allocation125_spill] sm:$0xff] %v10092_v54  ;;  %v2838_v19 = vadd.f32 %v7004_v60, %v12283_v13  ;;  %7238 = vmatprep.mubr.msk.bf16.mxu1 %vm28_vm3, %v12284_v5  ;;  %v10099_v20 = vadd.f32 %v3078_v38, %v2833_v1  ;;  %v3094_v37 = vpop.f32.mrf.mxu0  ;;  %v10109_v60 = vld [vmem:[#allocation2 + $0x198] sm:$0xff]  ;;  %v10113_v13 = vld [vmem:[#allocation2 + $0x1a0] sm:$0xff]  ;;  %v10115_v5 = vld [vmem:[#allocation2 + $0x1a8] sm:$0x3] }
 0x2a3   :  { %v2725_v22 = vpop.f32.mrf.mxu1  ;;  %12290 = vst [vmem:[#allocation89_spill] sm:$0xff] %v10115_v5 }
 0x2a4   :  { %12285 = vst [vmem:[#allocation26_spill] sm:$0xff] %v10099_v20  ;;  %v2836_v36 = vadd.f32 %v2725_v22, %v12286_v17  ;;  %v10102_v24 = vadd.f32 %v7070_v7, %v2838_v19  ;;  %7305 = vmatmul.mubr.msk.bf16.gmra.mxu0 %vm28_vm3, %v12191_v16  ;;  %v7074_v48 = vpop.f32.mrf.mxu0  ;;  %v12291_v7 = vld [vmem:[#allocation128_spill] sm:$0xff]  ;;  %v4359_v20 = vrot.slane %v10115_v5, 1 }
 0x2a5   :  { %v7005_v4 = vpop.f32.mrf.mxu1  ;;  %7308 = vmatprep.mubr.msk.bf16.mxu0 %vm28_vm3, %v12194_v45  ;;  %v4356_v45 = vrot.slane %v10109_v60, 1 }
 0x2a6   :  { %12287 = vst [vmem:[#allocation127_spill] sm:$0xff] %v10102_v24  ;;  %v2839_v43 = vadd.f32 %v7005_v4, %v12288_v27  ;;  %v10111_v38 = vadd.f32 %v3091_v33, %v2836_v36  ;;  %v3107_v22 = vpop.f32.mrf.mxu0  ;;  %v12293_v4 = vld [vmem:[#allocation86_spill] sm:$0xff]  ;;  %v12294_v27 = vld [vmem:[#allocation131_spill] sm:$0xff] }
 0x2a7   :  { %v2728_v1 = vpop.f32.mrf.mxu1  ;;  %v12295_v36 = vld [vmem:[#allocation90_spill] sm:$0xff] }
 0x2a8   :  { %12289 = vst [vmem:[#allocation17_spill] sm:$0xff] %v10111_v38  ;;  %v2837_v19 = vadd.f32 %v2728_v1, %v12291_v7  ;;  %v10118_v17 = vadd.f32 %v7071_v29, %v2839_v43  ;;  %v7075_v33 = vpop.f32.mrf.mxu0  ;;  %v4357_v38 = vrot.slane %v10113_v13, 1  ;;  %v12297_v43 = vld [vmem:[#allocation8_spill] sm:$0xff] }
 0x2a9   :  { %v7008_v16 = vpop.f32.mrf.mxu1  ;;  %7239 = vmatmul.mubr.msk.bf16.gmra.mxu1 %vm28_vm3, %v12293_v4 }
 0x2aa   :  { %12292 = vst [vmem:[#allocation10_spill] sm:$0xff] %v10118_v17  ;;  %v2842_v24 = vadd.f32 %v7008_v16, %v12294_v27  ;;  %7242 = vmatprep.mubr.msk.bf16.mxu1 %vm28_vm3, %v12295_v36  ;;  %v10128_v1 = vadd.f32 %v3094_v37, %v2837_v19  ;;  %v3110_v17 = vpop.f32.mrf.mxu0  ;;  %v12299_v16 = vld [vmem:[#allocation6_spill] sm:$0xff]  ;;  %v4358_v36 = vsel %vm1105_vm6, %v4356_v45, %v4357_v38 }
 0x2ab   :  { %v2741_v29 = vpop.f32.mrf.mxu1  ;;  %v4360_v37 = vsel %vm1105_vm6, %v4357_v38, %v4359_v20 }
 0x2ac   :  { %12296 = vst [vmem:[#allocation72_spill] sm:$0xff] %v10128_v1  ;;  %v2840_v7 = vadd.f32 %v2741_v29, %v12297_v43  ;;  %v10131_v54 = vadd.f32 %v7074_v48, %v2842_v24  ;;  %7309 = vmatmul.mubr.msk.bf16.gmra.mxu0 %vm28_vm3, %v12196_v46  ;;  %v7078_v25 = vpop.f32.mrf.mxu0  ;;  %v12300_v46 = vld [vmem:[#allocation105_spill] sm:$0xff]  ;;  %v12302_v1 = vld [vmem:[#allocation4_spill] sm:$0xff] }
 0x2ad   :  { %v7009_v4 = vpop.f32.mrf.mxu1  ;;  %7312 = vmatprep.mubr.msk.bf16.mxu0 %vm28_vm3, %v9449_v49 }
 0x2ae   :  { %12298 = vst [vmem:[#allocation83_spill] sm:$0xff] %v10131_v54  ;;  %v2843_v27 = vadd.f32 %v7009_v4, %v12299_v16  ;;  %v10140_v19 = vadd.f32 %v3107_v22, %v2840_v7  ;;  %v3123_v48 = vpop.f32.mrf.mxu0  ;;  %v4370_v4 = vpack.c.bf16 %v4360_v37, %v4358_v36  ;;  %v12301_v16 = vld [vmem:[#allocation130_spill] sm:$0xff]  ;;  %v12303_v22 = vld [vmem:[#allocation63_spill] sm:$0xff]  ;;  %v12304_v36 = vld [vmem:[#allocation25_spill] sm:$0xff] }
 0x2af   :  { %v2744_v29 = vpop.f32.mrf.mxu1 }
 0x2b0   :  { %v2841_v24 = vadd.f32 %v2744_v29, %v9820_v61  ;;  %v10143_v43 = vadd.f32 %v7075_v33, %v2843_v27  ;;  %v7079_v49 = vpop.f32.mrf.mxu0  ;;  %v3984_v27 = vpack.c.bf16 %v10113_v13, %v10109_v60 }
 0x2b1   :  { %v7012_v5 = vpop.f32.mrf.mxu1  ;;  %7243 = vmatmul.mubr.msk.bf16.gmra.mxu1 %vm28_vm3, %v12300_v46  ;;  %v12305_v46 = vld [vmem:[#allocation12_spill] sm:$0xff] }
 0x2b2   :  { %v2846_v54 = vadd.f32 %v7012_v5, %v12301_v16  ;;  %7246 = vmatprep.mubr.msk.bf16.mxu1 %vm28_vm3, %v12302_v1  ;;  %v10150_v20 = vadd.f32 %v3110_v17, %v2841_v24  ;;  %v3126_v61 = vpop.f32.mrf.mxu0 }
 0x2b3   :  { %v2757_v38 = vpop.f32.mrf.mxu1 }
 0x2b4   :  { %v2844_v45 = vadd.f32 %v2757_v38, %v12303_v22  ;;  %v10153_v7 = vadd.f32 %v7078_v25, %v2846_v54  ;;  %7313 = vmatmul.mubr.msk.bf16.gmra.mxu0 %vm28_vm3, %v4370_v4  ;;  %v7082_v37 = vpop.f32.mrf.mxu0  ;;  %v12306_v38 = vld [vmem:[#allocation22_spill] sm:$0xff] }
 0x2b5   :  { %v7013_v33 = vpop.f32.mrf.mxu1  ;;  %7316 = vmatprep.mubr.msk.bf16.mxu0 %vm28_vm3, %v12204_v41 }
 0x2b6   :  { %v2847_v5 = vadd.f32 %v7013_v33, %v12304_v36  ;;  %v10161_v17 = vadd.f32 %v3123_v48, %v2844_v45  ;;  %v3139_v24 = vpop.f32.mrf.mxu0  ;;  %v12307_v48 = vld [vmem:[#allocation15_spill] sm:$0xff] }
 0x2b7   :  { %v2760_v1 = vpop.f32.mrf.mxu1 }
 0x2b8   :  { %v2845_v29 = vadd.f32 %v2760_v1, %v9836_v35  ;;  %v10164_v25 = vadd.f32 %v7079_v49, %v2847_v5  ;;  %v7083_v16 = vpop.f32.mrf.mxu0  ;;  %v12308_v49 = vld [vmem:[#allocation85_spill] sm:$0xff]  ;;  %v12309_v5 = vld [vmem:[#allocation27_spill] sm:$0xff] }
 0x2b9   :  { %v7016_v54 = vpop.f32.mrf.mxu1  ;;  %7247 = vmatmul.mubr.msk.bf16.gmra.mxu1 %vm28_vm3, %v3984_v27 }
 0x2ba   :  { %v2850_v4 = vadd.f32 %v7016_v54, %v12305_v46  ;;  %7250 = vmatprep.mubr.msk.bf16.mxu1 %vm28_vm3, %v12306_v38  ;;  %v10170_v22 = vadd.f32 %v3126_v61, %v2845_v29  ;;  %v3142_v33 = vpop.f32.mrf.mxu0  ;;  %v12310_v29 = vld [vmem:[#allocation35_spill] sm:$0xff] }
 0x2bb   :  { %v2773_v41 = vpop.f32.mrf.mxu1 }
 0x2bc   :  { %v2848_v45 = vadd.f32 %v2773_v41, %v12307_v48  ;;  %v10173_v36 = vadd.f32 %v7082_v37, %v2850_v4  ;;  %7317 = vmatmul.mubr.msk.bf16.gmra.mxu0 %vm28_vm3, %v12308_v49  ;;  %v7154_v1 = vpop.f32.mrf.mxu0  ;;  %v12311_v4 = vld [vmem:[#allocation48_spill] sm:$0xff] }
 0x2bd   :  { %v7017_v35 = vpop.f32.mrf.mxu1  ;;  %7320 = vmatprep.mubr.msk.bf16.mxu0 %vm28_vm3, %v12206_v52 }
 0x2be   :  { %v2851_v27 = vadd.f32 %v7017_v35, %v12309_v5  ;;  %v10180_v54 = vadd.f32 %v3139_v24, %v2848_v45  ;;  %v3665_v38 = vpop.f32.mrf.mxu0  ;;  %v12312_v35 = vld [vmem:[#allocation64_spill] sm:$0xff] }
 0x2bf   :  { %v2776_v61 = vpop.f32.mrf.mxu1 }
 0x2c0   :  { %v2849_v46 = vadd.f32 %v2776_v61, %v12310_v29  ;;  %v10183_v41 = vadd.f32 %v7083_v16, %v2851_v27  ;;  %v7155_v49 = vpop.f32.mrf.mxu0 }
 0x2c1   :  { %v7088_v37 = vpop.f32.mrf.mxu1  ;;  %7251 = vmatmul.mubr.msk.bf16.gmra.mxu1 %vm28_vm3, %v12311_v4  ;;  %v12313_v4 = vld [vmem:[#allocation97_spill] sm:$0xff] }
 0x2c2   :  { %v3542_v48 = vadd.f32 %v7088_v37, %v9860_v58  ;;  %7254 = vmatprep.mubr.msk.bf16.mxu1 %vm28_vm3, %v12312_v35  ;;  %v10190_v5 = vadd.f32 %v3142_v33, %v2849_v46  ;;  %v3668_v45 = vpop.f32.mrf.mxu0 }
 0x2c3   :  { %v3285_v52 = vpop.f32.mrf.mxu1 }
 0x2c4   :  { %v3540_v24 = vadd.f32 %v3285_v52, %v9867_v31  ;;  %v10193_v61 = vadd.f32 %v7154_v1, %v3542_v48  ;;  %7321 = vmatmul.mubr.msk.bf16.gmra.mxu0 %vm28_vm3, %v12207_v55  ;;  %v7158_v29 = vpop.f32.mrf.mxu0 }
 0x2c5   :  { %v7089_v16 = vpop.f32.mrf.mxu1  ;;  %7324 = vmatprep.mubr.msk.bf16.mxu0 %vm28_vm3, %v12208_v32 }
 0x2c6   :  { %v3543_v27 = vadd.f32 %v7089_v16, %v9870_v28  ;;  %v10200_v58 = vadd.f32 %v3665_v38, %v3540_v24  ;;  %v3681_v37 = vpop.f32.mrf.mxu0  ;;  %v12314_v28 = vld [vmem:[#allocation101_spill] sm:$0xff] }
 0x2c7   :  { %v3288_v33 = vpop.f32.mrf.mxu1 }
 0x2c8   :  { %v3541_v46 = vadd.f32 %v3288_v33, %v9877_v3  ;;  %v10203_v31 = vadd.f32 %v7155_v49, %v3543_v27  ;;  %v7159_v48 = vpop.f32.mrf.mxu0 }
 0x2c9   :  { %v7092_v1 = vpop.f32.mrf.mxu1  ;;  %7255 = vmatmul.mubr.msk.bf16.gmra.mxu1 %vm28_vm3, %v12313_v4  ;;  %v12316_v4 = vld [vmem:[#allocation106_spill] sm:$0xff] }
 0x2ca   :  { %v3546_v55 = vadd.f32 %v7092_v1, %v9880_v40  ;;  %7258 = vmatprep.mubr.msk.bf16.mxu1 %vm28_vm3, %v12314_v28  ;;  %v10210_v35 = vadd.f32 %v3668_v45, %v3541_v46  ;;  %v3684_v52 = vpop.f32.mrf.mxu0  ;;  %v5148_v40 = vld [vmem:[%s11498_s4] sm:$0xf] }
 0x2cb   :  { %v3301_v32 = vpop.f32.mrf.mxu1  ;;  %7493 = vmatprep.subr.msk.bf16.mxu0 %vm1460_vm2, %v5148_v40 }
 0x2cc   :  { %v3544_v38 = vadd.f32 %v3301_v32, %v9887_v39  ;;  %v10213_v3 = vadd.f32 %v7158_v29, %v3546_v55  ;;  %7325 = vmatmul.mubr.msk.bf16.gmra.mxu0 %vm28_vm3, %v12209_v44  ;;  %v7162_v16 = vpop.f32.mrf.mxu0  ;;  %v5502_v39 = vsel %vm1460_vm2, %v5148_v40, 0  ;;  %v12315_v29 = vld [vmem:[#allocation37_spill] sm:$0xff] }
 0x2cd   :  { %v7093_v49 = vpop.f32.mrf.mxu1  ;;  %7328 = vmatprep.mubr.msk.bf16.mxu0 %vm28_vm3, %v12214_v18  ;;  %7415 = vmatpush3.bf16.msra.mxu0 %v5502_v39 }
 0x2ce   :  { %v3547_v24 = vadd.f32 %v7093_v49, %v9890_v51  ;;  %v10223_v45 = vadd.f32 %v3681_v37, %v3544_v38  ;;  %v3697_v33 = vpop.f32.mrf.mxu0  ;;  %v12317_v51 = vld [vmem:[#allocation49_spill] sm:$0xff]  ;;  %v12318_v37 = vld [vmem:[#allocation111_spill] sm:$0xff] }
 0x2cf   :  { %v3304_v27 = vpop.f32.mrf.mxu1 }
 0x2d0   :  { %v3545_v44 = vadd.f32 %v3304_v27, %v12315_v29  ;;  %v10228_v46 = vadd.f32 %v7159_v48, %v3547_v24  ;;  %v7163_v18 = vpop.f32.mrf.mxu0  ;;  %v12319_v24 = vld [vmem:[#allocation51_spill] sm:$0xff] }
 0x2d1   :  { %v7096_v1 = vpop.f32.mrf.mxu1  ;;  %7259 = vmatmul.mubr.msk.bf16.gmra.mxu1 %vm28_vm3, %v12316_v4  ;;  %v12320_v4 = vld [vmem:[#allocation115_spill] sm:$0xff] }
 0x2d2   :  { %v3550_v55 = vadd.f32 %v7096_v1, %v12317_v51  ;;  %7262 = vmatprep.mubr.msk.bf16.mxu1 %vm28_vm3, %v12318_v37  ;;  %v10235_v28 = vadd.f32 %v3684_v52, %v3545_v44  ;;  %v3700_v49 = vpop.f32.mrf.mxu0  ;;  %v12321_v51 = vld [vmem:[#allocation65_spill] sm:$0xff] }
 0x2d3   :  { %v3317_v32 = vpop.f32.mrf.mxu1  ;;  %v12322_v37 = vld [vmem:[#allocation117_spill] sm:$0xff] }
 0x2d4   :  { %v3548_v38 = vadd.f32 %v3317_v32, %v9907_v53  ;;  %v10238_v40 = vadd.f32 %v7162_v16, %v3550_v55  ;;  %7329 = vmatmul.mubr.msk.bf16.gmra.mxu0 %vm28_vm3, %v12216_v26  ;;  %v7166_v27 = vpop.f32.mrf.mxu0 }
 0x2d5   :  { %v7097_v48 = vpop.f32.mrf.mxu1  ;;  %7332 = vmatprep.mubr.msk.bf16.mxu0 %vm28_vm3, %v12220_v8 }
 0x2d6   :  { %v3551_v39 = vadd.f32 %v7097_v48, %v12319_v24  ;;  %v10245_v29 = vadd.f32 %v3697_v33, %v3548_v38  ;;  %v3713_v1 = vpop.f32.mrf.mxu0  ;;  %v12323_v48 = vld [vmem:[#allocation68_spill] sm:$0xff] }
 0x2d7   :  { %v3320_v52 = vpop.f32.mrf.mxu1 }
 0x2d8   :  { %v3549_v44 = vadd.f32 %v3320_v52, %v9917_v12  ;;  %v10248_v53 = vadd.f32 %v7163_v18, %v3551_v39  ;;  %v7167_v55 = vpop.f32.mrf.mxu0 }
 0x2d9   :  { %v7100_v16 = vpop.f32.mrf.mxu1  ;;  %7263 = vmatmul.mubr.msk.bf16.gmra.mxu1 %vm28_vm3, %v12320_v4  ;;  %v12324_v4 = vld [vmem:[#allocation121_spill] sm:$0xff] }
 0x2da   :  { %v3554_v26 = vadd.f32 %v7100_v16, %v12321_v51  ;;  %7266 = vmatprep.mubr.msk.bf16.mxu1 %vm28_vm3, %v12322_v37  ;;  %v10255_v32 = vadd.f32 %v3700_v49, %v3549_v44  ;;  %v3716_v38 = vpop.f32.mrf.mxu0  ;;  %v12325_v51 = vld [vmem:[#allocation77_spill] sm:$0xff]  ;;  %v12326_v37 = vld [vmem:[#allocation123_spill] sm:$0xff] }
 0x2db   :  { %v3333_v8 = vpop.f32.mrf.mxu1 }
 0x2dc   :  { %v3552_v33 = vadd.f32 %v3333_v8, %v9927_v59  ;;  %v10258_v12 = vadd.f32 %v7166_v27, %v3554_v26  ;;  %7333 = vmatmul.mubr.msk.bf16.gmra.mxu0 %vm28_vm3, %v12222_v23  ;;  %v7170_v39 = vpop.f32.mrf.mxu0 }
 0x2dd   :  { %v7101_v18 = vpop.f32.mrf.mxu1  ;;  %7336 = vmatprep.mubr.msk.bf16.mxu0 %vm28_vm3, %v12226_v14 }
 0x2de   :  { %v3555_v24 = vadd.f32 %v7101_v18, %v12323_v48  ;;  %v10265_v52 = vadd.f32 %v3713_v1, %v3552_v33  ;;  %v3729_v16 = vpop.f32.mrf.mxu0  ;;  %v12328_v18 = vld [vmem:[#allocation80_spill] sm:$0xff] }
 0x2df   :  { %v3336_v49 = vpop.f32.mrf.mxu1 }
 0x2e0   :  { %v3553_v44 = vadd.f32 %v3336_v49, %v9937_v9  ;;  %v10268_v59 = vadd.f32 %v7167_v55, %v3555_v24  ;;  %v7171_v26 = vpop.f32.mrf.mxu0 }
 0x2e1   :  { %v7104_v27 = vpop.f32.mrf.mxu1  ;;  %7267 = vmatmul.mubr.msk.bf16.gmra.mxu1 %vm28_vm3, %v12324_v4 }
 0x2e2   :  { %v3558_v23 = vadd.f32 %v7104_v27, %v12325_v51  ;;  %7270 = vmatprep.mubr.msk.bf16.mxu1 %vm28_vm3, %v12326_v37  ;;  %v10275_v8 = vadd.f32 %v3716_v38, %v3553_v44  ;;  %v10278_v33 = vpop.f32.mrf.mxu0  ;;  %v973_v44 = vld [vmem:[#allocation2 + $0x348] sm:$0xff]  ;;  %v10289_v27 = vld [vmem:[#allocation2 + $0x350] sm:$0xff] }
 0x2e3   :  { %v3349_v14 = vpop.f32.mrf.mxu1  ;;  %12327 = vst [vmem:[#allocation46_spill] sm:$0xff] %v10278_v33  ;;  %v12333_v37 = vld [vmem:[#allocation124_spill] sm:$0xff] }
 0x2e4   :  { %v3556_v1 = vadd.f32 %v3349_v14, %v9947_v6  ;;  %v10280_v9 = vadd.f32 %v7170_v39, %v3558_v23  ;;  %7337 = vmatmul.mubr.msk.bf16.gmra.mxu0 %vm28_vm3, %v12228_v34  ;;  %v7174_v24 = vpop.f32.mrf.mxu0  ;;  %v10291_v6 = vld [vmem:[#allocation2 + $0x358] sm:$0x3]  ;;  %v12330_v39 = vld [vmem:[#allocation96_spill] sm:$0xff]  ;;  %v12334_v14 = vld [vmem:[#allocation99_spill] sm:$0xff] }
 0x2e5   :  { %v7105_v55 = vpop.f32.mrf.mxu1  ;;  %7340 = vmatprep.mubr.msk.bf16.mxu0 %vm28_vm3, %v12234_v47  ;;  %v4364_v33 = vrot.slane %v10291_v6, 1 }
 0x2e6   :  { %v3559_v48 = vadd.f32 %v7105_v55, %v12328_v18  ;;  %v10287_v49 = vadd.f32 %v3729_v16, %v3556_v1  ;;  %v3745_v51 = vpop.f32.mrf.mxu0  ;;  %v12335_v1 = vld [vmem:[#allocation126_spill] sm:$0xff]  ;;  %v4361_v55 = vrot.slane %v973_v44, 1  ;;  %v4362_v18 = vrot.slane %v10289_v27, 1 }
 0x2e7   :  { %v3352_v38 = vpop.f32.mrf.mxu1 }
 0x2e8   :  { %12329 = vst [vmem:[#allocation100_spill] sm:$0xff] %v10287_v49  ;;  %v10294_v4 = vadd.f32 %v3352_v38, %v12330_v39  ;;  %v10296_v23 = vadd.f32 %v7171_v26, %v3559_v48  ;;  %v7175_v16 = vpop.f32.mrf.mxu0 }
 0x2e9   :  { %v7108_v34 = vpop.f32.mrf.mxu1  ;;  %7271 = vmatmul.mubr.msk.bf16.gmra.mxu1 %vm28_vm3, %v12333_v37 }
 0x2ea   :  { %12331 = vst [vmem:[#allocation78_spill] sm:$0xff] %v10294_v4  ;;  %12332 = vst [vmem:[#allocation9_spill] sm:$0xff] %v10296_v23  ;;  %v3562_v47 = vadd.f32 %v7108_v34, %v12334_v14  ;;  %7274 = vmatprep.mubr.msk.bf16.mxu1 %vm28_vm3, %v12335_v1  ;;  %v10306_v26 = vpop.f32.mrf.mxu0  ;;  %v12338_v34 = vld [vmem:[#allocation109_spill] sm:$0xff]  ;;  %v4363_v1 = vsel %vm1105_vm6, %v4361_v55, %v4362_v18  ;;  %v4365_v23 = vsel %vm1105_vm6, %v4362_v18, %v4364_v33 }
 0x2eb   :  { %v3365_v38 = vpop.f32.mrf.mxu1  ;;  %12336 = vst [vmem:[#allocation66_spill] sm:$0xff] %v10306_v26  ;;  %v12339_v26 = vld [vmem:[#allocation71_spill] sm:$0xff]  ;;  %v12341_v55 = vld [vmem:[#allocation45_spill] sm:$0xff] }
 0x2ec   :  { %v3560_v39 = vadd.f32 %v3365_v38, %v9967_v0  ;;  %v10308_v48 = vadd.f32 %v7174_v24, %v3562_v47  ;;  %7341 = vmatmul.mubr.msk.bf16.gmra.mxu0 %vm28_vm3, %v12236_v11  ;;  %v7178_v14 = vpop.f32.mrf.mxu0 }
 0x2ed   :  { %v7109_v4 = vpop.f32.mrf.mxu1  ;;  %7344 = vmatprep.mubr.msk.bf16.mxu0 %vm28_vm3, %v12241_v63 }
 0x2ee   :  { %12337 = vst [vmem:[#allocation23_spill] sm:$0xff] %v10308_v48  ;;  %v3563_v37 = vadd.f32 %v7109_v4, %v12338_v34  ;;  %v10317_v49 = vadd.f32 %v3745_v51, %v3560_v39  ;;  %v3761_v47 = vpop.f32.mrf.mxu0  ;;  %v4371_v4 = vpack.c.bf16 %v4365_v23, %v4363_v1  ;;  %v12340_v34 = vld [vmem:[#allocation41_spill] sm:$0xff]  ;;  %v12342_v51 = vld [vmem:[#allocation55_spill] sm:$0xff] }
 0x2ef   :  { %v3368_v0 = vpop.f32.mrf.mxu1 }
 0x2f0   :  { %v10320_v24 = vadd.f32 %v3368_v0, %v9977_v57  ;;  %v10322_v38 = vadd.f32 %v7175_v16, %v3563_v37  ;;  %v7179_v48 = vpop.f32.mrf.mxu0  ;;  %v3985_v37 = vpack.c.bf16 %v10289_v27, %v973_v44  ;;  %v4741_v0 = vrot.slane %v973_v44, 2 }
 0x2f1   :  { %v7112_v11 = vpop.f32.mrf.mxu1  ;;  %7275 = vmatmul.mubr.msk.bf16.gmra.mxu1 %vm28_vm3, %v12339_v26  ;;  %v12344_v26 = vld [vmem:[#allocation91_spill] sm:$0xff] }
 0x2f2   :  { %v3566_v63 = vadd.f32 %v7112_v11, %v12340_v34  ;;  %7278 = vmatprep.mubr.msk.bf16.mxu1 %vm28_vm3, %v12341_v55  ;;  %v10330_v39 = vpop.f32.mrf.mxu0  ;;  %v4742_v11 = vrot.slane %v10289_v27, 2  ;;  %v4744_v27 = vrot.slane %v10291_v6, 2 }
 0x2f3   :  { %v3381_v33 = vpop.f32.mrf.mxu1  ;;  %12343 = vst [vmem:[#allocation59_spill] sm:$0xff] %v10330_v39 }
 0x2f4   :  { %v3564_v18 = vadd.f32 %v3381_v33, %v12342_v51  ;;  %v10332_v57 = vadd.f32 %v7178_v14, %v3566_v63  ;;  %7345 = vmatmul.mubr.msk.bf16.gmra.mxu0 %vm28_vm3, %v4371_v4  ;;  %v7182_v1 = vpop.f32.mrf.mxu0  ;;  %v10350_v44 = vsel %vm2141_vm7, %v4741_v0, %v4742_v11 }
 0x2f5   :  { %v7113_v16 = vpop.f32.mrf.mxu1 }
 0x2f6   :  { %v3567_v23 = vadd.f32 %v7113_v16, %v12344_v26  ;;  %v10338_v34 = vadd.f32 %v3761_v47, %v3564_v18  ;;  %v3777_v51 = vpop.f32.mrf.mxu0  ;;  %v12345_v16 = vld [vmem:[#allocation7_spill] sm:$0xff] }
 0x2f7   :  { %v3384_v55 = vpop.f32.mrf.mxu1 }
 0x2f8   :  { %v10341_v33 = vadd.f32 %v3384_v55, %v9997_v10  ;;  %v10343_v14 = vadd.f32 %v7179_v48, %v3567_v23  ;;  %v7183_v39 = vpop.f32.mrf.mxu0  ;;  %v12346_v10 = vld [vmem:[#allocation110_spill] sm:$0xff]  ;;  %v12353_v23 = vld [vmem:[#allocation56_spill] sm:$0xff] }
 0x2f9   :  { %v7116_v63 = vpop.f32.mrf.mxu1  ;;  %7279 = vmatmul.mubr.msk.bf16.gmra.mxu1 %vm28_vm3, %v3985_v37  ;;  %v10359_v37 = vsel %vm2141_vm7, %v4742_v11, %v4744_v27  ;;  %v12352_v11 = vld [vmem:[#allocation112_spill] sm:$0xff] }
 0x2fa   :  { %v3570_v4 = vadd.f32 %v7116_v63, %v10000_v50  ;;  %7350 = vmatprep.mubr.msk.bf16.mxu1 %vm28_vm3, %v12345_v16  ;;  %v10354_v26 = vpop.f32.mrf.mxu0 }
 0x2fb   :  { %v3397_v47 = vpop.f32.mrf.mxu1  ;;  %12347 = vst [vmem:[#allocation58_spill] sm:$0xff] %v10354_v26 }
 0x2fc   :  { %v3568_v18 = vadd.f32 %v3397_v47, %v12346_v10  ;;  %v10356_v48 = vadd.f32 %v7182_v1, %v3570_v4  ;;  %v7186_v0 = vpop.f32.mrf.mxu0  ;;  %v12351_v4 = vld [vmem:[#allocation5_spill] sm:$0xff] }
 0x2fd   :  { %v7117_v50 = vpop.f32.mrf.mxu1 }
 0x2fe   :  { %v3571_v55 = vadd.f32 %v7117_v50, %v10012_v2  ;;  %v10364_v63 = vadd.f32 %v3777_v51, %v3568_v18  ;;  %v3793_v47 = vpop.f32.mrf.mxu0  ;;  %v12354_v51 = vld [vmem:[#allocation116_spill] sm:$0xff] }
 0x2ff   :  { %v3400_v6 = vpop.f32.mrf.mxu1 }
 0x300   :  { %12348 = vst [vmem:[#allocation19_spill] sm:$0xff] %v10364_v63  ;;  %v10367_v16 = vadd.f32 %v3400_v6, %v10019_v21  ;;  %v10369_v10 = vadd.f32 %v7183_v39, %v3571_v55  ;;  %v7187_v26 = vpop.f32.mrf.mxu0  ;;  %v12358_v63 = vld [vmem:[#allocation18_spill] sm:$0xff] }
 0x301   :  { %v7120_v1 = vpop.f32.mrf.mxu1  ;;  %7351 = vmatmul.mubr.msk.bf16.vlgmr.msra.gmra.mxu1 %vm28_vm3, %v12351_v4 }
 0x302   :  { %12349 = vst [vmem:[#allocation70_spill] sm:$0xff] %v10367_v16  ;;  %12350 = vst [vmem:[#allocation20_spill] sm:$0xff] %v10369_v10  ;;  %v3574_v27 = vadd.f32 %v7120_v1, %v12352_v11  ;;  %7354 = vmatprep.mubr.msk.bf16.mxu1 %vm28_vm3, %v12353_v23  ;;  %v10377_v50 = vpop.f32.mrf.mxu0 }
 0x303   :  { %v3413_v2 = vpop.f32.mrf.mxu1  ;;  %12355 = vst [vmem:[#allocation88_spill] sm:$0xff] %v10377_v50 }
 0x304   :  { %v3572_v18 = vadd.f32 %v3413_v2, %v12354_v51  ;;  %v10379_v21 = vadd.f32 %v7186_v0, %v3574_v27  ;;  %v7190_v55 = vpop.f32.mrf.mxu0  ;;  %v12359_v2 = vld [vmem:[#allocation3_spill] sm:$0xff]  ;;  %v12360_v51 = vld [vmem:[#allocation13_spill] sm:$0xff] }
 0x305   :  { %v7121_v6 = vpop.f32.mrf.mxu1 }
 0x306   :  { %v3575_v39 = vadd.f32 %v7121_v6, %v10032_v42  ;;  %v10382_v16 = vadd.f32 %v3793_v47, %v3572_v18  ;;  %v3809_v11 = vpop.f32.mrf.mxu0  ;;  %v12361_v47 = vld [vmem:[#allocation119_spill] sm:$0xff] }
 0x307   :  { %v3416_v4 = vpop.f32.mrf.mxu1 }
 0x308   :  { %v10385_v1 = vadd.f32 %v3416_v4, %v10039_v56  ;;  %v10387_v10 = vadd.f32 %v7187_v26, %v3575_v39  ;;  %v7191_v27 = vpop.f32.mrf.mxu0 }
 0x309   :  { %v7124_v23 = vpop.f32.mrf.mxu1  ;;  %7355 = vmatmul.mubr.msk.bf16.gmra.mxu1 %vm28_vm3, %v12358_v63 }
 0x30a   :  { %12356 = vst [vmem:[#allocation87_spill] sm:$0xff] %v10385_v1  ;;  %12357 = vst [vmem:[#allocation94_spill] sm:$0xff] %v10387_v10  ;;  %v3578_v0 = vadd.f32 %v7124_v23, %v12359_v2  ;;  %7358 = vmatprep.mubr.msk.bf16.mxu1 %vm28_vm3, %v12360_v51  ;;  %v10395_v6 = vpop.f32.mrf.mxu0  ;;  %v12366_v10 = vld [vmem:[#allocation16_spill] sm:$0xff] }
 0x30b   :  { %v3429_v42 = vpop.f32.mrf.mxu1  ;;  %12362 = vst [vmem:[#allocation33_spill] sm:$0xff] %v10395_v6 }
 0x30c   :  { %v3576_v18 = vadd.f32 %v3429_v42, %v12361_v47  ;;  %v10397_v56 = vadd.f32 %v7190_v55, %v3578_v0  ;;  %v7194_v39 = vpop.f32.mrf.mxu0  ;;  %v12367_v42 = vld [vmem:[#allocation76_spill] sm:$0xff]  ;;  %v12368_v47 = vld [vmem:[#allocation14_spill] sm:$0xff] }
 0x30d   :  { %v7125_v4 = vpop.f32.mrf.mxu1 }
 0x30e   :  { %v3579_v26 = vadd.f32 %v7125_v4, %v10052_v15  ;;  %v10400_v50 = vadd.f32 %v3809_v11, %v3576_v18  ;;  %v3825_v2 = vpop.f32.mrf.mxu0  ;;  %v12369_v11 = vld [vmem:[#allocation120_spill] sm:$0xff] }
 0x30f   :  { %v3432_v63 = vpop.f32.mrf.mxu1 }
 0x310   :  { %12363 = vst [vmem:[#allocation79_spill] sm:$0xff] %v10400_v50  ;;  %v10403_v23 = vadd.f32 %v3432_v63, %v10059_v30  ;;  %v10405_v1 = vadd.f32 %v7191_v27, %v3579_v26  ;;  %v7195_v0 = vpop.f32.mrf.mxu0  ;;  %v12376_v50 = vld [vmem:[#allocation31_spill] sm:$0xff] }
 0x311   :  { %v7128_v51 = vpop.f32.mrf.mxu1  ;;  %7359 = vmatmul.mubr.msk.bf16.gmra.mxu1 %vm28_vm3, %v12366_v10 }
 0x312   :  { %12364 = vst [vmem:[#allocation34_spill] sm:$0xff] %v10403_v23  ;;  %12365 = vst [vmem:[#allocation93_spill] sm:$0xff] %v10405_v1  ;;  %v3582_v55 = vadd.f32 %v7128_v51, %v12367_v42  ;;  %7362 = vmatprep.mubr.msk.bf16.mxu1 %vm28_vm3, %v12368_v47  ;;  %v10413_v4 = vpop.f32.mrf.mxu0  ;;  %v12373_v23 = vld [vmem:[#allocation21_spill] sm:$0xff] }
 0x313   :  { %v3445_v15 = vpop.f32.mrf.mxu1  ;;  %12370 = vst [vmem:[#allocation92_spill] sm:$0xff] %v10413_v4 }
 0x314   :  { %v3580_v18 = vadd.f32 %v3445_v15, %v12369_v11  ;;  %v10415_v30 = vadd.f32 %v7194_v39, %v3582_v55  ;;  %v7198_v26 = vpop.f32.mrf.mxu0  ;;  %v12377_v15 = vld [vmem:[#allocation122_spill] sm:$0xff]  ;;  %v12378_v11 = vld [vmem:[#allocation32_spill] sm:$0xff] }
 0x315   :  { %v7129_v63 = vpop.f32.mrf.mxu1 }
 0x316   :  { %12371 = vst [vmem:[#allocation74_spill] sm:$0xff] %v10415_v30  ;;  %v3583_v27 = vadd.f32 %v7129_v63, %v10072_v62  ;;  %v10418_v6 = vadd.f32 %v3825_v2, %v3580_v18  ;;  %v3841_v42 = vpop.f32.mrf.mxu0  ;;  %v12379_v2 = vld [vmem:[#allocation11_spill] sm:$0xff]  ;;  %v12387_v30 = vld [vmem:[#allocation28_spill] sm:$0xff] }
 0x317   :  { %v3448_v10 = vpop.f32.mrf.mxu1 }
 0x318   :  { %12372 = vst [vmem:[#allocation44_spill] sm:$0xff] %v10418_v6  ;;  %v10421_v51 = vadd.f32 %v3448_v10, %v12373_v23  ;;  %v10423_v1 = vadd.f32 %v7195_v0, %v3583_v27  ;;  %v7199_v55 = vpop.f32.mrf.mxu0  ;;  %v12382_v0 = vld [vmem:[#allocation125_spill] sm:$0xff] }
 0x319   :  { %v7132_v47 = vpop.f32.mrf.mxu1  ;;  %7363 = vmatmul.mubr.msk.bf16.gmra.mxu1 %vm28_vm3, %v12376_v50 }
 0x31a   :  { %12374 = vst [vmem:[#allocation98_spill] sm:$0xff] %v10421_v51  ;;  %12375 = vst [vmem:[#allocation47_spill] sm:$0xff] %v10423_v1  ;;  %v3586_v39 = vadd.f32 %v7132_v47, %v12377_v15  ;;  %7366 = vmatprep.mubr.msk.bf16.mxu1 %vm28_vm3, %v12378_v11  ;;  %v10431_v63 = vpop.f32.mrf.mxu0  ;;  %v12384_v1 = vld [vmem:[#allocation26_spill] sm:$0xff] }
 0x31b   :  { %v3461_v62 = vpop.f32.mrf.mxu1  ;;  %12380 = vst [vmem:[#allocation104_spill] sm:$0xff] %v10431_v63 }
 0x31c   :  { %v3584_v18 = vadd.f32 %v3461_v62, %v12379_v2  ;;  %v10433_v23 = vadd.f32 %v7198_v26, %v3586_v39  ;;  %v7202_v4 = vpop.f32.mrf.mxu0  ;;  %v12388_v62 = vld [vmem:[#allocation127_spill] sm:$0xff]  ;;  %v12389_v2 = vld [vmem:[#allocation24_spill] sm:$0xff] }
 0x31d   :  { %v7133_v10 = vpop.f32.mrf.mxu1 }
 0x31e   :  { %12381 = vst [vmem:[#allocation102_spill] sm:$0xff] %v10433_v23  ;;  %v3587_v27 = vadd.f32 %v7133_v10, %v12382_v0  ;;  %v10436_v51 = vadd.f32 %v3841_v42, %v3584_v18  ;;  %v3857_v15 = vpop.f32.mrf.mxu0  ;;  %v12390_v42 = vld [vmem:[#allocation17_spill] sm:$0xff] }
 0x31f   :  { %v3464_v50 = vpop.f32.mrf.mxu1  ;;  %v12395_v23 = vld [vmem:[#allocation29_spill] sm:$0xff] }
 0x320   :  { %12383 = vst [vmem:[#allocation107_spill] sm:$0xff] %v10436_v51  ;;  %v10439_v47 = vadd.f32 %v3464_v50, %v12384_v1  ;;  %v10441_v6 = vadd.f32 %v7199_v55, %v3587_v27  ;;  %v7203_v39 = vpop.f32.mrf.mxu0  ;;  %v12392_v55 = vld [vmem:[#allocation10_spill] sm:$0xff] }
 0x321   :  { %v7136_v11 = vpop.f32.mrf.mxu1  ;;  %7367 = vmatmul.mubr.msk.bf16.gmra.mxu1 %vm28_vm3, %v12387_v30 }
 0x322   :  { %12385 = vst [vmem:[#allocation57_spill] sm:$0xff] %v10439_v47  ;;  %12386 = vst [vmem:[#allocation113_spill] sm:$0xff] %v10441_v6  ;;  %v3590_v26 = vadd.f32 %v7136_v11, %v12388_v62  ;;  %7370 = vmatprep.mubr.msk.bf16.mxu1 %vm28_vm3, %v12389_v2  ;;  %v10449_v0 = vpop.f32.mrf.mxu0  ;;  %v12393_v6 = vld [vmem:[#allocation72_spill] sm:$0xff] }
 0x323   :  { %v3477_v10 = vpop.f32.mrf.mxu1  ;;  %12391 = vst [vmem:[#allocation61_spill] sm:$0xff] %v10449_v0 }
 0x324   :  { %v3588_v18 = vadd.f32 %v3477_v10, %v12390_v42  ;;  %v10451_v1 = vadd.f32 %v7202_v4, %v3590_v26  ;;  %v7206_v63 = vpop.f32.mrf.mxu0  ;;  %v12396_v10 = vld [vmem:[#allocation83_spill] sm:$0xff]  ;;  %v12397_v42 = vld [vmem:[#allocation30_spill] sm:$0xff] }
 0x325   :  { %v7137_v50 = vpop.f32.mrf.mxu1 }
 0x326   :  { %v3591_v27 = vadd.f32 %v7137_v50, %v12392_v55  ;;  %v10454_v47 = vadd.f32 %v3857_v15, %v3588_v18  ;;  %v3873_v62 = vpop.f32.mrf.mxu0 }
 0x327   :  { %v3480_v30 = vpop.f32.mrf.mxu1 }
 0x328   :  { %v10457_v11 = vadd.f32 %v3480_v30, %v12393_v6  ;;  %v10459_v51 = vadd.f32 %v7203_v39, %v3591_v27  ;;  %v7207_v26 = vpop.f32.mrf.mxu0  ;;  %v4736_v39 = vrot.slane %v10109_v60, 2 }
 0x329   :  { %v7140_v2 = vpop.f32.mrf.mxu1  ;;  %7371 = vmatmul.mubr.msk.bf16.gmra.mxu1 %vm28_vm3, %v12395_v23  ;;  %v4737_v23 = vrot.slane %v10113_v13, 2 }
 0x32a   :  { %12394 = vst [vmem:[#allocation114_spill] sm:$0xff] %v10457_v11  ;;  %v3594_v4 = vadd.f32 %v7140_v2, %v12396_v10  ;;  %7374 = vmatprep.mubr.msk.bf16.mxu1 %vm28_vm3, %v12397_v42  ;;  %v10467_v18 = vpop.f32.mrf.mxu0  ;;  %v12399_v2 = vld [vmem:[#allocation89_spill] sm:$0xff] }
 0x32b   :  { %v3493_v50 = vpop.f32.mrf.mxu1  ;;  %12398 = vst [vmem:[#allocation103_spill] sm:$0xff] %v10467_v18  ;;  %v4739_v10 = vrot.slane %v12399_v2, 2  ;;  %v4738_v13 = vsel %vm2141_vm7, %v4736_v39, %v4737_v23 }
 0x32c   :  { %v3592_v15 = vadd.f32 %v3493_v50, %v10140_v19  ;;  %v10469_v6 = vadd.f32 %v7206_v63, %v3594_v4  ;;  %v7210_v30 = vpop.f32.mrf.mxu0  ;;  %v12400_v4 = vld [vmem:[#allocation62_spill] sm:$0xff] }
 0x32d   :  { %v7141_v55 = vpop.f32.mrf.mxu1 }
 0x32e   :  { %v3595_v27 = vadd.f32 %v7141_v55, %v10143_v43  ;;  %v10475_v0 = vadd.f32 %v3873_v62, %v3592_v15  ;;  %v3889_v19 = vpop.f32.mrf.mxu0  ;;  %v12401_v55 = vld [vmem:[#allocation84_spill] sm:$0xff]  ;;  %v4740_v62 = vsel %vm2141_vm7, %v4737_v23, %v4739_v10 }
 0x32f   :  { %v3496_v42 = vpop.f32.mrf.mxu1 }
 0x330   :  { %v10478_v11 = vadd.f32 %v3496_v42, %v10150_v20  ;;  %v10480_v50 = vadd.f32 %v7207_v26, %v3595_v27  ;;  %v7211_v43 = vpop.f32.mrf.mxu0  ;;  %v4750_v42 = vpack.c.bf16 %v4740_v62, %v4738_v13 }
 0x331   :  { %v7144_v63 = vpop.f32.mrf.mxu1  ;;  %7375 = vmatmul.mubr.msk.bf16.gmra.mxu1 %vm28_vm3, %v12400_v4 }
 0x332   :  { %v3598_v60 = vadd.f32 %v7144_v63, %v10153_v7  ;;  %7378 = vmatprep.mubr.msk.bf16.mxu1 %vm28_vm3, %v12401_v55  ;;  %v10490_v2 = vpop.f32.mrf.mxu0 }
 0x333   :  { %v3509_v15 = vpop.f32.mrf.mxu1 }
 0x334   :  { %v3596_v20 = vadd.f32 %v3509_v15, %v10161_v17  ;;  %v10492_v26 = vadd.f32 %v7210_v30, %v3598_v60  ;;  %v7214_v7 = vpop.f32.mrf.mxu0  ;;  %v12402_v60 = vld [vmem:[#allocation38_spill] sm:$0xff] }
 0x335   :  { %v7145_v27 = vpop.f32.mrf.mxu1 }
 0x336   :  { %v3599_v4 = vadd.f32 %v7145_v27, %v10164_v25  ;;  %v10495_v63 = vadd.f32 %v3889_v19, %v3596_v20  ;;  %v3905_v39 = vpop.f32.mrf.mxu0 }
 0x337   :  { %v3512_v18 = vpop.f32.mrf.mxu1 }
 0x338   :  { %v10498_v55 = vadd.f32 %v3512_v18, %v10170_v22  ;;  %v10500_v23 = vadd.f32 %v7211_v43, %v3599_v4  ;;  %v7215_v30 = vpop.f32.mrf.mxu0  ;;  %v12403_v4 = vld [vmem:[#allocation42_spill] sm:$0xff] }
 0x339   :  { %v7148_v10 = vpop.f32.mrf.mxu1  ;;  %7379 = vmatmul.mubr.msk.bf16.gmra.mxu1 %vm28_vm3, %v4750_v42 }
 0x33a   :  { %v3602_v17 = vadd.f32 %v7148_v10, %v10173_v36  ;;  %7382 = vmatprep.mubr.msk.bf16.mxu1 %vm28_vm3, %v12402_v60  ;;  %v10509_v62 = vpop.f32.mrf.mxu0 }
 0x33b   :  { %v3525_v25 = vpop.f32.mrf.mxu1 }
 0x33c   :  { %v3600_v19 = vadd.f32 %v3525_v25, %v10180_v54  ;;  %v10507_v13 = vadd.f32 %v7214_v7, %v3602_v17  ;;  %v10519_v27 = vpop.f32.mrf.mxu0  ;;  %v12404_v7 = vld [vmem:[#allocation39_spill] sm:$0xff] }
 0x33d   :  { %v7149_v22 = vpop.f32.mrf.mxu1 }
 0x33e   :  { %v3603_v18 = vadd.f32 %v7149_v22, %v10183_v41  ;;  %v10512_v43 = vadd.f32 %v3905_v39, %v3600_v19  ;;  %v12405_v19 = vld [vmem:[#allocation43_spill] sm:$0xff] }
 0x33f   :  { %v3528_v15 = vpop.f32.mrf.mxu1 }
 0x340   :  { %v10515_v20 = vadd.f32 %v3528_v15, %v10190_v5  ;;  %v10517_v36 = vadd.f32 %v7215_v30, %v3603_v18  ;;  %v10531_v5 = vpop.f32.mrf.mxu0 }
 0x341   :  { %v7220_v42 = vpop.f32.mrf.mxu1  ;;  %7383 = vmatmul.mubr.msk.bf16.gmra.mxu1 %vm28_vm3, %v12403_v4 }
 0x342   :  { %v10524_v54 = vadd.f32 %v7220_v42, %v10193_v61  ;;  %7386 = vmatprep.mubr.msk.bf16.mxu1 %vm28_vm3, %v12404_v7  ;;  %v10539_v25 = vpop.f32.mrf.mxu0 }
 0x343   :  { %v4031_v41 = vpop.f32.mrf.mxu1 }
 0x344   :  { %v10529_v39 = vadd.f32 %v4031_v41, %v10200_v58  ;;  %v12406_v58 = vld [vmem:[#allocation40_spill] sm:$0xff]  ;;  %v10551_v15 = vpop.f32.mrf.mxu0 }
 0x345   :  { %v7221_v10 = vpop.f32.mrf.mxu1 }
 0x346   :  { %v10534_v17 = vadd.f32 %v7221_v10, %v10203_v31  ;;  %v10559_v41 = vpop.f32.mrf.mxu0  ;;  %v12407_v10 = vld [vmem:[#allocation36_spill] sm:$0xff] }
 0x347   :  { %v4034_v30 = vpop.f32.mrf.mxu1 }
 0x348   :  { %v10537_v60 = vadd.f32 %v4034_v30, %v10210_v35 }
 0x349   :  { %v7224_v61 = vpop.f32.mrf.mxu1  ;;  %7387 = vmatmul.mubr.msk.bf16.gmra.mxu1 %vm28_vm3, %v12405_v19  ;;  %v10571_v19 = vpop.f32.mrf.mxu0 }
 0x34a   :  { %v10544_v22 = vadd.f32 %v7224_v61, %v10213_v3  ;;  %7390 = vmatprep.mubr.msk.bf16.mxu1 %vm28_vm3, %v12406_v58 }
 0x34b   :  { %v4047_v18 = vpop.f32.mrf.mxu1 }
 0x34c   :  { %v10549_v31 = vadd.f32 %v4047_v18, %v10223_v45  ;;  %v12408_v45 = vld [vmem:[#allocation67_spill] sm:$0xff] }
 0x34d   :  { %v7225_v35 = vpop.f32.mrf.mxu1 }
 0x34e   :  { %v10554_v42 = vadd.f32 %v7225_v35, %v10228_v46 }
 0x34f   :  { %v4050_v4 = vpop.f32.mrf.mxu1 }
 0x350   :  { %v10557_v7 = vadd.f32 %v4050_v4, %v10235_v28  ;;  %v10579_v4 = vpop.f32.mrf.mxu0 }
 0x351   :  { %v7228_v3 = vpop.f32.mrf.mxu1  ;;  %7391 = vmatmul.mubr.msk.bf16.gmra.mxu1 %vm28_vm3, %v12407_v10 }
 0x352   :  { %v10564_v30 = vadd.f32 %v7228_v3, %v10238_v40  ;;  %7394 = vmatprep.mubr.msk.bf16.mxu1 %vm28_vm3, %v12408_v45  ;;  %v12412_v3 = vld [vmem:[#allocation52_spill] sm:$0xff] }
 0x353   :  { %v4063_v61 = vpop.f32.mrf.mxu1 }
 0x354   :  { %v10569_v46 = vadd.f32 %v4063_v61, %v10245_v29  ;;  %v12414_v29 = vld [vmem:[#allocation53_spill] sm:$0xff]  ;;  %v10591_v61 = vpop.f32.mrf.mxu0 }
 0x355   :  { %v7229_v28 = vpop.f32.mrf.mxu1 }
 0x356   :  { %12409 = vst [vmem:[#allocation118_spill] sm:$0xff] %v10569_v46  ;;  %v10574_v58 = vadd.f32 %v7229_v28, %v10248_v53 }
 0x357   :  { %v4066_v18 = vpop.f32.mrf.mxu1 }
 0x358   :  { %12410 = vst [vmem:[#allocation73_spill] sm:$0xff] %v10574_v58  ;;  %v10577_v35 = vadd.f32 %v4066_v18, %v10255_v32 }
 0x359   :  { %v7232_v40 = vpop.f32.mrf.mxu1  ;;  %7395 = vmatmul.mubr.msk.bf16.gmra.mxu1 %vm28_vm3, %v12412_v3  ;;  %v10599_v3 = vpop.f32.mrf.mxu0 }
 0x35a   :  { %12411 = vst [vmem:[#allocation108_spill] sm:$0xff] %v10577_v35  ;;  %v10584_v10 = vadd.f32 %v7232_v40, %v10258_v12  ;;  %7398 = vmatprep.mubr.msk.bf16.mxu1 %vm28_vm3, %v12414_v29  ;;  %v12418_v40 = vld [vmem:[#allocation50_spill] sm:$0xff] }
 0x35b   :  { %v4079_v45 = vpop.f32.mrf.mxu1 }
 0x35c   :  { %12413 = vst [vmem:[#allocation75_spill] sm:$0xff] %v10584_v10  ;;  %v10589_v53 = vadd.f32 %v4079_v45, %v10265_v52  ;;  %v12419_v52 = vld [vmem:[#allocation54_spill] sm:$0xff] }
 0x35d   :  { %v7233_v32 = vpop.f32.mrf.mxu1  ;;  %v12425_v10 = vld [vmem:[#allocation46_spill] sm:$0xff] }
 0x35e   :  { %12415 = vst [vmem:[#allocation95_spill] sm:$0xff] %v10589_v53  ;;  %v10594_v28 = vadd.f32 %v7233_v32, %v10268_v59  ;;  %v12420_v53 = vld [vmem:[#allocation100_spill] sm:$0xff]  ;;  %v10611_v32 = vpop.f32.mrf.mxu0 }
 0x35f   :  { %v4082_v18 = vpop.f32.mrf.mxu1 }
 0x360   :  { %12416 = vst [vmem:[#allocation129_spill] sm:$0xff] %v10594_v28  ;;  %v10597_v35 = vadd.f32 %v4082_v18, %v10275_v8  ;;  %v12422_v18 = vld [vmem:[#allocation9_spill] sm:$0xff]  ;;  %v12424_v28 = vld [vmem:[#allocation78_spill] sm:$0xff] }
 0x361   :  { %v7236_v12 = vpop.f32.mrf.mxu1  ;;  %7399 = vmatmul.mubr.msk.bf16.gmra.mxu1 %vm28_vm3, %v12418_v40  ;;  %v3937_v46 = vadd.f32 %v12425_v10, %v12424_v28 }
 0x362   :  { %12417 = vst [vmem:[#allocation128_spill] sm:$0xff] %v10597_v35  ;;  %v10604_v29 = vadd.f32 %v7236_v12, %v10280_v9  ;;  %7402 = vmatprep.mubr.msk.bf16.mxu1 %vm28_vm3, %v12419_v52  ;;  %v10620_v9 = vpop.f32.mrf.mxu0  ;;  %v12427_v52 = vld [vmem:[#allocation60_spill] sm:$0xff] }
 0x363   :  { %v4095_v45 = vpop.f32.mrf.mxu1 }
 0x364   :  { %v10609_v59 = vadd.f32 %v4095_v45, %v12420_v53  ;;  %v12428_v53 = vld [vmem:[#allocation23_spill] sm:$0xff]  ;;  %v10632_v10 = vpop.f32.mrf.mxu0 }
 0x365   :  { %v7237_v8 = vpop.f32.mrf.mxu1 }
 0x366   :  { %12421 = vst [vmem:[#allocation86_spill] sm:$0xff] %v10609_v59  ;;  %v10614_v35 = vadd.f32 %v7237_v8, %v12422_v18  ;;  %v12429_v59 = vld [vmem:[#allocation69_spill] sm:$0xff] }
 0x367   :  { %v4098_v40 = vpop.f32.mrf.mxu1 }
 0x368   :  { %12423 = vst [vmem:[#allocation131_spill] sm:$0xff] %v10614_v35  ;;  %v10618_v58 = vadd.f32 %v4098_v40, %v3937_v46  ;;  %v12432_v40 = vld [vmem:[#allocation66_spill] sm:$0xff] }
 0x369   :  { %v7240_v12 = vpop.f32.mrf.mxu1  ;;  %7403 = vmatmul.mubr.msk.bf16.gmra.mxu1 %vm28_vm3, %v12427_v52 }
 0x36a   :  { %12426 = vst [vmem:[#allocation90_spill] sm:$0xff] %v10618_v58  ;;  %v10625_v45 = vadd.f32 %v7240_v12, %v12428_v53  ;;  %7406 = vmatprep.mubr.msk.bf16.mxu1 %vm28_vm3, %v12429_v59  ;;  %v3941_v58 = vadd.f32 %v12432_v40, %v10320_v24  ;;  %v10641_v12 = vpop.f32.mrf.mxu0  ;;  %v12434_v59 = vld [vmem:[#allocation81_spill] sm:$0xff] }
 0x36b   :  { %v4111_v8 = vpop.f32.mrf.mxu1 }
 0x36c   :  { %v10630_v18 = vadd.f32 %v4111_v8, %v10317_v49  ;;  %v12436_v8 = vld [vmem:[#allocation82_spill] sm:$0xff]  ;;  %v10653_v24 = vpop.f32.mrf.mxu0 }
 0x36d   :  { %v7241_v46 = vpop.f32.mrf.mxu1 }
 0x36e   :  { %12430 = vst [vmem:[#allocation8_spill] sm:$0xff] %v10630_v18  ;;  %v10635_v28 = vadd.f32 %v7241_v46, %v10322_v38 }
 0x36f   :  { %v4114_v52 = vpop.f32.mrf.mxu1 }
 0x370   :  { %12431 = vst [vmem:[#allocation6_spill] sm:$0xff] %v10635_v28  ;;  %v10639_v35 = vadd.f32 %v4114_v52, %v3941_v58  ;;  %v12439_v52 = vld [vmem:[#allocation59_spill] sm:$0xff] }
 0x371   :  { %v7244_v53 = vpop.f32.mrf.mxu1  ;;  %7407 = vmatmul.mubr.msk.bf16.gmra.mxu1 %vm28_vm3, %v12434_v59 }
 0x372   :  { %12433 = vst [vmem:[#allocation105_spill] sm:$0xff] %v10639_v35  ;;  %v10646_v49 = vadd.f32 %v7244_v53, %v10332_v57  ;;  %7410 = vmatprep.mubr.msk.bf16.mxu1 %vm28_vm3, %v12436_v8  ;;  %v3945_v35 = vadd.f32 %v12439_v52, %v10341_v33  ;;  %v10662_v57 = vpop.f32.mrf.mxu0  ;;  %v12441_v8 = vpack.c.bf16 %v10359_v37, %v10350_v44 }
 0x373   :  { %v4127_v38 = vpop.f32.mrf.mxu1 }
 0x374   :  { %12435 = vst [vmem:[#allocation130_spill] sm:$0xff] %v10646_v49  ;;  %v10651_v46 = vadd.f32 %v4127_v38, %v10338_v34 }
 0x375   :  { %v7245_v58 = vpop.f32.mrf.mxu1 }
 0x376   :  { %12437 = vst [vmem:[#allocation4_spill] sm:$0xff] %v10651_v46  ;;  %v10656_v40 = vadd.f32 %v7245_v58, %v10343_v14  ;;  %v12443_v14 = vld [vmem:[#allocation19_spill] sm:$0xff]  ;;  %v10674_v46 = vpop.f32.mrf.mxu0 }
 0x377   :  { %v4130_v59 = vpop.f32.mrf.mxu1 }
 0x378   :  { %12438 = vst [vmem:[#allocation63_spill] sm:$0xff] %v10656_v40  ;;  %v10660_v18 = vadd.f32 %v4130_v59, %v3945_v35  ;;  %v12445_v35 = vld [vmem:[#allocation20_spill] sm:$0xff]  ;;  %v12447_v59 = vld [vmem:[#allocation70_spill] sm:$0xff]  ;;  %v10683_v37 = vpop.f32.mrf.mxu0 }
 0x379   :  { %v7248_v53 = vpop.f32.mrf.mxu1  ;;  %7411 = vmatmul.mubr.msk.bf16.gmra.mxu1 %vm28_vm3, %v12441_v8 }
 0x37a   :  { %12440 = vst [vmem:[#allocation25_spill] sm:$0xff] %v10660_v18  ;;  %v10669_v34 = vadd.f32 %v7248_v53, %v10356_v48  ;;  %v12448_v18 = vld [vmem:[#allocation58_spill] sm:$0xff] }
 0x37b   :  { %v4143_v38 = vpop.f32.mrf.mxu1  ;;  %v3949_v40 = vadd.f32 %v12448_v18, %v12447_v59  ;;  %v12454_v18 = vld [vmem:[#allocation87_spill] sm:$0xff]  ;;  %v12455_v59 = vld [vmem:[#allocation88_spill] sm:$0xff] }
 0x37c   :  { %12442 = vst [vmem:[#allocation12_spill] sm:$0xff] %v10669_v34  ;;  %v10672_v58 = vadd.f32 %v4143_v38, %v12443_v14  ;;  %v10691_v14 = vpop.f32.mrf.mxu0 }
 0x37d   :  { %v7249_v33 = vpop.f32.mrf.mxu1 }
 0x37e   :  { %12444 = vst [vmem:[#allocation22_spill] sm:$0xff] %v10672_v58  ;;  %v10677_v52 = vadd.f32 %v7249_v33, %v12445_v35  ;;  %v12452_v35 = vld [vmem:[#allocation94_spill] sm:$0xff] }
 0x37f   :  { %v4146_v49 = vpop.f32.mrf.mxu1 }
 0x380   :  { %12446 = vst [vmem:[#allocation15_spill] sm:$0xff] %v10677_v52  ;;  %v10681_v44 = vadd.f32 %v4146_v49, %v3949_v40  ;;  %v3953_v49 = vadd.f32 %v12455_v59, %v12454_v18  ;;  %v10700_v52 = vpop.f32.mrf.mxu0  ;;  %v12462_v18 = vld [vmem:[#allocation34_spill] sm:$0xff]  ;;  %v12463_v59 = vld [vmem:[#allocation33_spill] sm:$0xff] }
 0x381   :  { %v7252_v48 = vpop.f32.mrf.mxu1 }
 0x382   :  { %12449 = vst [vmem:[#allocation85_spill] sm:$0xff] %v10681_v44  ;;  %v10686_v53 = vadd.f32 %v7252_v48, %v10379_v21 }
 0x383   :  { %v4159_v8 = vpop.f32.mrf.mxu1 }
 0x384   :  { %12450 = vst [vmem:[#allocation27_spill] sm:$0xff] %v10686_v53  ;;  %v10689_v38 = vadd.f32 %v4159_v8, %v10382_v16  ;;  %v12458_v8 = vld [vmem:[#allocation79_spill] sm:$0xff]  ;;  %v10708_v53 = vpop.f32.mrf.mxu0 }
 0x385   :  { %v7253_v33 = vpop.f32.mrf.mxu1 }
 0x386   :  { %12451 = vst [vmem:[#allocation35_spill] sm:$0xff] %v10689_v38  ;;  %v10694_v58 = vadd.f32 %v7253_v33, %v12452_v35  ;;  %v12460_v35 = vld [vmem:[#allocation93_spill] sm:$0xff]  ;;  %v10717_v34 = vpop.f32.mrf.mxu0 }
 0x387   :  { %v4162_v40 = vpop.f32.mrf.mxu1  ;;  %12465 = vst [vmem:[#allocation49_spill] sm:$0xff] %v10717_v34 }
 0x388   :  { %12453 = vst [vmem:[#allocation48_spill] sm:$0xff] %v10694_v58  ;;  %v10698_v44 = vadd.f32 %v4162_v40, %v3953_v49  ;;  %v3957_v49 = vadd.f32 %v12463_v59, %v12462_v18  ;;  %v10725_v28 = vpop.f32.mrf.mxu0  ;;  %v12473_v18 = vld [vmem:[#allocation98_spill] sm:$0xff]  ;;  %v12474_v59 = vld [vmem:[#allocation92_spill] sm:$0xff] }
 0x389   :  { %v7256_v21 = vpop.f32.mrf.mxu1  ;;  %12470 = vst [vmem:[#allocation115_spill] sm:$0xff] %v10725_v28 }
 0x38a   :  { %12456 = vst [vmem:[#allocation64_spill] sm:$0xff] %v10698_v44  ;;  %v10703_v48 = vadd.f32 %v7256_v21, %v10397_v56  ;;  %v12466_v21 = vld [vmem:[#allocation74_spill] sm:$0xff]  ;;  %v10734_v34 = vpop.f32.mrf.mxu0 }
 0x38b   :  { %v4175_v16 = vpop.f32.mrf.mxu1  ;;  %12476 = vst [vmem:[#allocation68_spill] sm:$0xff] %v10734_v34 }
 0x38c   :  { %12457 = vst [vmem:[#allocation97_spill] sm:$0xff] %v10703_v48  ;;  %v10706_v38 = vadd.f32 %v4175_v16, %v12458_v8  ;;  %v12468_v8 = vld [vmem:[#allocation44_spill] sm:$0xff]  ;;  %v10742_v28 = vpop.f32.mrf.mxu0 }
 0x38d   :  { %v7257_v33 = vpop.f32.mrf.mxu1 }
 0x38e   :  { %12459 = vst [vmem:[#allocation101_spill] sm:$0xff] %v10706_v38  ;;  %v10711_v58 = vadd.f32 %v7257_v33, %v12460_v35  ;;  %v12471_v35 = vld [vmem:[#allocation47_spill] sm:$0xff]  ;;  %v10751_v34 = vpop.f32.mrf.mxu0 }
 0x38f   :  { %v4178_v40 = vpop.f32.mrf.mxu1 }
 0x390   :  { %12461 = vst [vmem:[#allocation37_spill] sm:$0xff] %v10711_v58  ;;  %v10715_v44 = vadd.f32 %v4178_v40, %v3957_v49  ;;  %v3961_v49 = vadd.f32 %v12474_v59, %v12473_v18  ;;  %v12482_v18 = vld [vmem:[#allocation57_spill] sm:$0xff]  ;;  %v12483_v59 = vld [vmem:[#allocation104_spill] sm:$0xff] }
 0x391   :  { %v7260_v56 = vpop.f32.mrf.mxu1 }
 0x392   :  { %12464 = vst [vmem:[#allocation106_spill] sm:$0xff] %v10715_v44  ;;  %v10720_v48 = vadd.f32 %v7260_v56, %v12466_v21  ;;  %v12477_v21 = vld [vmem:[#allocation102_spill] sm:$0xff] }
 0x393   :  { %v4191_v16 = vpop.f32.mrf.mxu1 }
 0x394   :  { %12467 = vst [vmem:[#allocation111_spill] sm:$0xff] %v10720_v48  ;;  %v10723_v38 = vadd.f32 %v4191_v16, %v12468_v8  ;;  %v12478_v8 = vld [vmem:[#allocation107_spill] sm:$0xff] }
 0x395   :  { %v7261_v33 = vpop.f32.mrf.mxu1 }
 0x396   :  { %12469 = vst [vmem:[#allocation51_spill] sm:$0xff] %v10723_v38  ;;  %v10728_v58 = vadd.f32 %v7261_v33, %v12471_v35  ;;  %v12480_v35 = vld [vmem:[#allocation113_spill] sm:$0xff] }
 0x397   :  { %v4194_v40 = vpop.f32.mrf.mxu1 }
 0x398   :  { %12472 = vst [vmem:[#allocation65_spill] sm:$0xff] %v10728_v58  ;;  %v10732_v44 = vadd.f32 %v4194_v40, %v3961_v49  ;;  %v3965_v49 = vadd.f32 %v12483_v59, %v12482_v18  ;;  %v12486_v18 = vld [vmem:[#allocation114_spill] sm:$0xff]  ;;  %v12487_v59 = vld [vmem:[#allocation61_spill] sm:$0xff] }
 0x399   :  { %v7264_v56 = vpop.f32.mrf.mxu1 }
 0x39a   :  { %12475 = vst [vmem:[#allocation117_spill] sm:$0xff] %v10732_v44  ;;  %v10737_v48 = vadd.f32 %v7264_v56, %v12477_v21 }
 0x39b   :  { %v4207_v16 = vpop.f32.mrf.mxu1 }
 0x39c   :  { %v10740_v38 = vadd.f32 %v4207_v16, %v12478_v8 }
 0x39d   :  { %v7265_v33 = vpop.f32.mrf.mxu1 }
 0x39e   :  { %12479 = vst [vmem:[#allocation121_spill] sm:$0xff] %v10740_v38  ;;  %v10745_v58 = vadd.f32 %v7265_v33, %v12480_v35  ;;  %v10759_v38 = vpop.f32.mrf.mxu0 }
 0x39f   :  { %v4210_v40 = vpop.f32.mrf.mxu1 }
 0x3a0   :  { %12481 = vst [vmem:[#allocation77_spill] sm:$0xff] %v10745_v58  ;;  %v10749_v44 = vadd.f32 %v4210_v40, %v3965_v49  ;;  %v3969_v49 = vadd.f32 %v12487_v59, %v12486_v18  ;;  %v10768_v58 = vpop.f32.mrf.mxu0  ;;  %v12490_v18 = vld [vmem:[#allocation103_spill] sm:$0xff] }
 0x3a1   :  { %v7268_v56 = vpop.f32.mrf.mxu1  ;;  %v3973_v59 = vadd.f32 %v12490_v18, %v10478_v11  ;;  %v3977_v11 = vadd.f32 %v10490_v2, %v10498_v55  ;;  %v3981_v2 = vadd.f32 %v10509_v62, %v10515_v20  ;;  %v4672_v62 = vadd.f32 %v10531_v5, %v10529_v39 }
 0x3a2   :  { %12484 = vst [vmem:[#allocation123_spill] sm:$0xff] %v10749_v44  ;;  %v10754_v21 = vadd.f32 %v7268_v56, %v10451_v1  ;;  %v4679_v39 = vadd.f32 %v10579_v4, %v10554_v42 }
 0x3a3   :  { %v4223_v16 = vpop.f32.mrf.mxu1 }
 0x3a4   :  { %v10757_v8 = vadd.f32 %v4223_v16, %v10454_v47 }
 0x3a5   :  { %v7269_v33 = vpop.f32.mrf.mxu1 }
 0x3a6   :  { %12485 = vst [vmem:[#allocation80_spill] sm:$0xff] %v10757_v8  ;;  %v10762_v35 = vadd.f32 %v7269_v33, %v10459_v51  ;;  %v10776_v8 = vpop.f32.mrf.mxu0 }
 0x3a7   :  { %v4226_v40 = vpop.f32.mrf.mxu1 }
 0x3a8   :  { %v10766_v44 = vadd.f32 %v4226_v40, %v3969_v49 }
 0x3a9   :  { %v7272_v1 = vpop.f32.mrf.mxu1 }
 0x3aa   :  { %12488 = vst [vmem:[#allocation96_spill] sm:$0xff] %v10766_v44  ;;  %v10771_v56 = vadd.f32 %v7272_v1, %v10469_v6  ;;  %v10785_v44 = vpop.f32.mrf.mxu0 }
 0x3ab   :  { %v4239_v47 = vpop.f32.mrf.mxu1 }
 0x3ac   :  { %v10774_v16 = vadd.f32 %v4239_v47, %v10475_v0 }
 0x3ad   :  { %v7273_v51 = vpop.f32.mrf.mxu1 }
 0x3ae   :  { %12489 = vst [vmem:[#allocation124_spill] sm:$0xff] %v10774_v16  ;;  %v10779_v33 = vadd.f32 %v7273_v51, %v10480_v50  ;;  %v10793_v16 = vpop.f32.mrf.mxu0 }
 0x3af   :  { %v4242_v49 = vpop.f32.mrf.mxu1 }
 0x3b0   :  { %v10783_v40 = vadd.f32 %v4242_v49, %v3973_v59  ;;  %v10802_v49 = vpop.f32.mrf.mxu0 }
 0x3b1   :  { %v7276_v6 = vpop.f32.mrf.mxu1 }
 0x3b2   :  { %v10788_v1 = vadd.f32 %v7276_v6, %v10492_v26 }
 0x3b3   :  { %v4255_v0 = vpop.f32.mrf.mxu1 }
 0x3b4   :  { %v10791_v47 = vadd.f32 %v4255_v0, %v10495_v63 }
 0x3b5   :  { %v7277_v50 = vpop.f32.mrf.mxu1 }
 0x3b6   :  { %12491 = vst [vmem:[#allocation99_spill] sm:$0xff] %v10791_v47  ;;  %v10796_v51 = vadd.f32 %v7277_v50, %v10500_v23  ;;  %v10810_v47 = vpop.f32.mrf.mxu0 }
 0x3b7   :  { %v4258_v18 = vpop.f32.mrf.mxu1 }
 0x3b8   :  { %v10800_v59 = vadd.f32 %v4258_v18, %v3977_v11  ;;  %v10819_v18 = vpop.f32.mrf.mxu0 }
 0x3b9   :  { %v7280_v26 = vpop.f32.mrf.mxu1 }
 0x3ba   :  { %12492 = vst [vmem:[#allocation126_spill] sm:$0xff] %v10800_v59  ;;  %v10805_v6 = vadd.f32 %v7280_v26, %v10507_v13 }
 0x3bb   :  { %v4271_v63 = vpop.f32.mrf.mxu1 }
 0x3bc   :  { %12493 = vst [vmem:[#allocation109_spill] sm:$0xff] %v10805_v6  ;;  %v10808_v0 = vadd.f32 %v4271_v63, %v10512_v43  ;;  %v4674_v43 = vadd.f32 %v10519_v27, %v10524_v54  ;;  %v4675_v63 = vadd.f32 %v10539_v25, %v10534_v17  ;;  %v4678_v25 = vadd.f32 %v10559_v41, %v10544_v22 }
 0x3bd   :  { %v7281_v23 = vpop.f32.mrf.mxu1 }
 0x3be   :  { %12494 = vst [vmem:[#allocation71_spill] sm:$0xff] %v10808_v0  ;;  %v10813_v50 = vadd.f32 %v7281_v23, %v10517_v36  ;;  %v10825_v0 = vpop.f32.mrf.mxu0 }
 0x3bf   :  { %v4274_v55 = vpop.f32.mrf.mxu1 }
 0x3c0   :  { %12495 = vst [vmem:[#allocation41_spill] sm:$0xff] %v10813_v50  ;;  %v10817_v11 = vadd.f32 %v4274_v55, %v3981_v2  ;;  %v4673_v2 = vadd.f32 %v10551_v15, %v10537_v60  ;;  %v10831_v59 = vpop.f32.mrf.mxu0 }
 0x3c1   :  { %v7352_v13 = vpop.f32.mrf.mxu1 }
 0x3c2   :  { %12496 = vst [vmem:[#allocation45_spill] sm:$0xff] %v10817_v11  ;;  %v5054_v23 = vadd.f32 %v7352_v13, %v4674_v43  ;;  %v10838_v5 = vpop.f32.mrf.mxu0  ;;  %v4676_v13 = vadd.f32 %v10571_v19, %v10549_v31 }
 0x3c3   :  { %v4797_v26 = vpop.f32.mrf.mxu1 }
 0x3c4   :  { %v5052_v11 = vadd.f32 %v4797_v26, %v4672_v62  ;;  %v12498_v62 = vld [vmem:[#allocation118_spill] sm:$0xff] }
 0x3c5   :  { %v7353_v36 = vpop.f32.mrf.mxu1 }
 0x3c6   :  { %v5055_v20 = vadd.f32 %v7353_v36, %v4675_v63  ;;  %v10845_v63 = vpop.f32.mrf.mxu0 }
 0x3c7   :  { %v4800_v55 = vpop.f32.mrf.mxu1 }
 0x3c8   :  { %v5117_v50 = vpack.c.bf16 %v5055_v20, %v5054_v23  ;;  %v5053_v6 = vadd.f32 %v4800_v55, %v4673_v2  ;;  %v12497_v23 = vld [vmem:[#allocation73_spill] sm:$0xff]  ;;  %v10852_v19 = vpop.f32.mrf.mxu0  ;;  %v4680_v20 = vadd.f32 %v10611_v32, %v12498_v62  ;;  %v12499_v55 = vld [vmem:[#allocation108_spill] sm:$0xff]  ;;  %v4690_v62 = vadd.f32 %v10683_v37, %v10604_v29 }
 0x3c9   :  { %v7356_v27 = vpop.f32.mrf.mxu1  ;;  %v4683_v31 = vadd.f32 %v10620_v9, %v12497_v23 }
 0x3ca   :  { %v5116_v54 = vpack.c.bf16 %v5053_v6, %v5052_v11  ;;  %v5058_v15 = vadd.f32 %v7356_v27, %v4678_v25  ;;  %v4677_v6 = vadd.f32 %v10591_v61, %v10557_v7  ;;  %v4681_v27 = vadd.f32 %v10632_v10, %v12499_v55  ;;  %v10859_v25 = vpop.f32.mrf.mxu0 }
 0x3cb   :  { %v4813_v17 = vpop.f32.mrf.mxu1 }
 0x3cc   :  { %7416 = vmatprep.mubr.msk.bf16.mxu0 %vm28_vm3, %v5116_v54  ;;  %v5056_v22 = vadd.f32 %v4813_v17, %v4676_v13 }
 0x3cd   :  { %v7357_v60 = vpop.f32.mrf.mxu1  ;;  %7417 = vmatmul.mubr.msk.bf16.vlgmr.msra.gmra.mxu0 %vm28_vm3, %v5117_v50  ;;  %v4682_v50 = vadd.f32 %v10599_v3, %v10564_v30 }
 0x3ce   :  { %v5059_v26 = vadd.f32 %v7357_v60, %v4679_v39 }
 0x3cf   :  { %v4816_v11 = vpop.f32.mrf.mxu1 }
 0x3d0   :  { %v5119_v41 = vpack.c.bf16 %v5059_v26, %v5058_v15  ;;  %v5057_v43 = vadd.f32 %v4816_v11, %v4677_v6  ;;  %v12500_v15 = vld [vmem:[#allocation75_spill] sm:$0xff]  ;;  %v12501_v26 = vld [vmem:[#allocation129_spill] sm:$0xff]  ;;  %v10866_v6 = vpop.f32.mrf.mxu0 }
 0x3d1   :  { %v7360_v42 = vpop.f32.mrf.mxu1  ;;  %v4686_v13 = vadd.f32 %v10641_v12, %v12500_v15  ;;  %v4687_v32 = vadd.f32 %v10662_v57, %v12501_v26  ;;  %v12507_v26 = vld [vmem:[#allocation49_spill] sm:$0xff] }
 0x3d2   :  { %v5118_v4 = vpack.c.bf16 %v5057_v43, %v5056_v22  ;;  %v5062_v61 = vadd.f32 %v7360_v42, %v4682_v50  ;;  %v12502_v22 = vld [vmem:[#allocation95_spill] sm:$0xff]  ;;  %v12503_v42 = vld [vmem:[#allocation128_spill] sm:$0xff] }
 0x3d3   :  { %v4829_v36 = vpop.f32.mrf.mxu1 }
 0x3d4   :  { %7420 = vmatprep.mubr.msk.bf16.mxu0 %vm28_vm3, %v5118_v4  ;;  %v5060_v30 = vadd.f32 %v4829_v36, %v4680_v20  ;;  %v4685_v4 = vadd.f32 %v10674_v46, %v12503_v42  ;;  %v12504_v20 = vld [vmem:[#allocation131_spill] sm:$0xff] }
 0x3d5   :  { %v7361_v7 = vpop.f32.mrf.mxu1  ;;  %7421 = vmatmul.mubr.msk.bf16.gmra.mxu0 %vm28_vm3, %v5119_v41  ;;  %v4684_v41 = vadd.f32 %v10653_v24, %v12502_v22  ;;  %v4691_v24 = vadd.f32 %v10700_v52, %v12504_v20  ;;  %v12511_v42 = vld [vmem:[#allocation115_spill] sm:$0xff] }
 0x3d6   :  { %v5063_v2 = vadd.f32 %v7361_v7, %v4683_v31  ;;  %v10873_v31 = vpop.f32.mrf.mxu0 }
 0x3d7   :  { %v4832_v54 = vpop.f32.mrf.mxu1 }
 0x3d8   :  { %v5121_v3 = vpack.c.bf16 %v5063_v2, %v5062_v61  ;;  %v5061_v17 = vadd.f32 %v4832_v54, %v4681_v27  ;;  %v10880_v2 = vpop.f32.mrf.mxu0  ;;  %v12505_v27 = vld [vmem:[#allocation86_spill] sm:$0xff] }
 0x3d9   :  { %v7364_v9 = vpop.f32.mrf.mxu1  ;;  %v4688_v54 = vadd.f32 %v10691_v14, %v12505_v27  ;;  %v12509_v14 = vld [vmem:[#allocation68_spill] sm:$0xff]  ;;  %v12514_v27 = vld [vmem:[#allocation63_spill] sm:$0xff] }
 0x3da   :  { %v5120_v39 = vpack.c.bf16 %v5061_v17, %v5060_v30  ;;  %v5066_v11 = vadd.f32 %v7364_v9, %v4686_v13 }
 0x3db   :  { %v4845_v60 = vpop.f32.mrf.mxu1 }
 0x3dc   :  { %7424 = vmatprep.mubr.msk.bf16.mxu0 %vm28_vm3, %v5120_v39  ;;  %v5064_v12 = vadd.f32 %v4845_v60, %v4684_v41  ;;  %v10887_v60 = vpop.f32.mrf.mxu0 }
 0x3dd   :  { %v7365_v10 = vpop.f32.mrf.mxu1  ;;  %7425 = vmatmul.mubr.msk.bf16.gmra.mxu0 %vm28_vm3, %v5121_v3  ;;  %v12506_v3 = vld [vmem:[#allocation90_spill] sm:$0xff] }
 0x3de   :  { %v5067_v43 = vadd.f32 %v7365_v10, %v4687_v32  ;;  %v4689_v17 = vadd.f32 %v10708_v53, %v12506_v3  ;;  %v4694_v32 = vadd.f32 %v12507_v26, %v10625_v45  ;;  %v12508_v10 = vld [vmem:[#allocation6_spill] sm:$0xff]  ;;  %v10894_v22 = vpop.f32.mrf.mxu0 }
 0x3df   :  { %v4848_v36 = vpop.f32.mrf.mxu1 }
 0x3e0   :  { %v5123_v50 = vpack.c.bf16 %v5067_v43, %v5066_v11  ;;  %v5065_v23 = vadd.f32 %v4848_v36, %v4685_v4  ;;  %v4695_v11 = vadd.f32 %v12509_v14, %v12508_v10  ;;  %v12510_v43 = vld [vmem:[#allocation8_spill] sm:$0xff] }
 0x3e1   :  { %v7368_v57 = vpop.f32.mrf.mxu1  ;;  %v4692_v4 = vadd.f32 %v12511_v42, %v12510_v43  ;;  %v12517_v14 = vld [vmem:[#allocation12_spill] sm:$0xff]  ;;  %v12519_v42 = vld [vmem:[#allocation22_spill] sm:$0xff] }
 0x3e2   :  { %v5122_v7 = vpack.c.bf16 %v5065_v23, %v5064_v12  ;;  %v5070_v55 = vadd.f32 %v7368_v57, %v4690_v62  ;;  %v12512_v12 = vld [vmem:[#allocation105_spill] sm:$0xff] }
 0x3e3   :  { %v4861_v61 = vpop.f32.mrf.mxu1 }
 0x3e4   :  { %7428 = vmatprep.mubr.msk.bf16.mxu0 %vm28_vm3, %v5122_v7  ;;  %v5068_v29 = vadd.f32 %v4861_v61, %v4688_v54  ;;  %v10901_v61 = vpop.f32.mrf.mxu0  ;;  %v4699_v54 = vadd.f32 %v10768_v58, %v12514_v27 }
 0x3e5   :  { %v7369_v46 = vpop.f32.mrf.mxu1  ;;  %7429 = vmatmul.mubr.msk.bf16.gmra.mxu0 %vm28_vm3, %v5123_v50  ;;  %v4693_v50 = vadd.f32 %v10742_v28, %v12512_v12  ;;  %v12520_v12 = vld [vmem:[#allocation85_spill] sm:$0xff] }
 0x3e6   :  { %v5071_v30 = vadd.f32 %v7369_v46, %v4691_v24  ;;  %v12513_v46 = vld [vmem:[#allocation130_spill] sm:$0xff] }
 0x3e7   :  { %v4864_v9 = vpop.f32.mrf.mxu1 }
 0x3e8   :  { %v5125_v37 = vpack.c.bf16 %v5071_v30, %v5070_v55  ;;  %v5069_v39 = vadd.f32 %v4864_v9, %v4689_v17  ;;  %v4698_v55 = vadd.f32 %v10751_v34, %v12513_v46  ;;  %v10908_v30 = vpop.f32.mrf.mxu0  ;;  %v12515_v17 = vld [vmem:[#allocation4_spill] sm:$0xff] }
 0x3e9   :  { %v7372_v52 = vpop.f32.mrf.mxu1  ;;  %v4696_v9 = vadd.f32 %v10759_v38, %v12515_v17 }
 0x3ea   :  { %v5124_v15 = vpack.c.bf16 %v5069_v39, %v5068_v29  ;;  %v5074_v41 = vadd.f32 %v7372_v52, %v4694_v32  ;;  %v10915_v26 = vpop.f32.mrf.mxu0 }
 0x3eb   :  { %v4877_v13 = vpop.f32.mrf.mxu1 }
 0x3ec   :  { %7432 = vmatprep.mubr.msk.bf16.mxu0 %vm28_vm3, %v5124_v15  ;;  %v5072_v45 = vadd.f32 %v4877_v13, %v4692_v4  ;;  %v4700_v4 = vadd.f32 %v10793_v16, %v12519_v42 }
 0x3ed   :  { %v7373_v53 = vpop.f32.mrf.mxu1  ;;  %7433 = vmatmul.mubr.msk.bf16.gmra.mxu0 %vm28_vm3, %v5125_v37  ;;  %v12516_v37 = vld [vmem:[#allocation25_spill] sm:$0xff] }
 0x3ee   :  { %v5075_v36 = vadd.f32 %v7373_v53, %v4695_v11  ;;  %v4697_v39 = vadd.f32 %v10776_v8, %v12516_v37  ;;  %v4702_v11 = vadd.f32 %v10785_v44, %v12517_v14  ;;  %v12518_v53 = vld [vmem:[#allocation15_spill] sm:$0xff] }
 0x3ef   :  { %v4880_v23 = vpop.f32.mrf.mxu1  ;;  %v4703_v38 = vadd.f32 %v10802_v49, %v12518_v53  ;;  %v12527_v53 = vld [vmem:[#allocation101_spill] sm:$0xff] }
 0x3f0   :  { %v5127_v57 = vpack.c.bf16 %v5075_v36, %v5074_v41  ;;  %v5073_v7 = vadd.f32 %v4880_v23, %v4693_v50  ;;  %v10922_v41 = vpop.f32.mrf.mxu0  ;;  %v4701_v50 = vadd.f32 %v10810_v47, %v12520_v12 }
 0x3f1   :  { %v7376_v62 = vpop.f32.mrf.mxu1 }
 0x3f2   :  { %v5126_v20 = vpack.c.bf16 %v5073_v7, %v5072_v45  ;;  %v5078_v3 = vadd.f32 %v7376_v62, %v4698_v55  ;;  %v10929_v7 = vpop.f32.mrf.mxu0  ;;  %v12522_v55 = vld [vmem:[#allocation48_spill] sm:$0xff] }
 0x3f3   :  { %v4893_v24 = vpop.f32.mrf.mxu1  ;;  %v4707_v16 = vadd.f32 %v10831_v59, %v12522_v55 }
 0x3f4   :  { %7436 = vmatprep.mubr.msk.bf16.mxu0 %vm28_vm3, %v5126_v20  ;;  %v5076_v34 = vadd.f32 %v4893_v24, %v4696_v9  ;;  %v12521_v24 = vld [vmem:[#allocation27_spill] sm:$0xff]  ;;  %v10936_v27 = vpop.f32.mrf.mxu0  ;;  %v12524_v9 = vld [vmem:[#allocation64_spill] sm:$0xff] }
 0x3f5   :  { %v7377_v28 = vpop.f32.mrf.mxu1  ;;  %7437 = vmatmul.mubr.msk.bf16.gmra.mxu0 %vm28_vm3, %v5127_v57  ;;  %v4706_v46 = vadd.f32 %v10819_v18, %v12521_v24  ;;  %v12531_v24 = vld [vmem:[#allocation51_spill] sm:$0xff] }
 0x3f6   :  { %v5079_v29 = vadd.f32 %v7377_v28, %v4699_v54  ;;  %v12523_v28 = vld [vmem:[#allocation35_spill] sm:$0xff] }
 0x3f7   :  { %v4896_v52 = vpop.f32.mrf.mxu1 }
 0x3f8   :  { %v5129_v15 = vpack.c.bf16 %v5079_v29, %v5078_v3  ;;  %v5077_v13 = vadd.f32 %v4896_v52, %v4697_v39  ;;  %v4704_v3 = vadd.f32 %v10825_v0, %v12523_v28  ;;  %v4705_v29 = vadd.f32 %v10838_v5, %v12524_v9 }
 0x3f9   :  { %v7380_v58 = vpop.f32.mrf.mxu1 }
 0x3fa   :  { %v5128_v32 = vpack.c.bf16 %v5077_v13, %v5076_v34  ;;  %v5082_v43 = vadd.f32 %v7380_v58, %v4702_v11  ;;  %v10943_v34 = vpop.f32.mrf.mxu0  ;;  %v12525_v58 = vld [vmem:[#allocation97_spill] sm:$0xff] }
 0x3fb   :  { %v4909_v10 = vpop.f32.mrf.mxu1 }
 0x3fc   :  { %7440 = vmatprep.mubr.msk.bf16.mxu0 %vm28_vm3, %v5128_v32  ;;  %v5080_v44 = vadd.f32 %v4909_v10, %v4700_v4  ;;  %v4710_v32 = vadd.f32 %v10845_v63, %v12525_v58  ;;  %v12526_v10 = vld [vmem:[#allocation37_spill] sm:$0xff]  ;;  %v10950_v14 = vpop.f32.mrf.mxu0 }
 0x3fd   :  { %v7381_v8 = vpop.f32.mrf.mxu1  ;;  %7441 = vmatmul.mubr.msk.bf16.gmra.mxu0 %vm28_vm3, %v5129_v15  ;;  %v4711_v0 = vadd.f32 %v10859_v25, %v12526_v10  ;;  %v12534_v58 = vld [vmem:[#allocation121_spill] sm:$0xff] }
 0x3fe   :  { %v5083_v36 = vadd.f32 %v7381_v8, %v4703_v38  ;;  %v4708_v38 = vadd.f32 %v10852_v19, %v12527_v53 }
 0x3ff   :  { %v4912_v23 = vpop.f32.mrf.mxu1 }
 0x400   :  { %v5131_v45 = vpack.c.bf16 %v5083_v36, %v5082_v43  ;;  %v5081_v57 = vadd.f32 %v4912_v23, %v4701_v50  ;;  %v12528_v43 = vld [vmem:[#allocation106_spill] sm:$0xff]  ;;  %v10957_v50 = vpop.f32.mrf.mxu0 }
 0x401   :  { %v7384_v49 = vpop.f32.mrf.mxu1  ;;  %v4709_v42 = vadd.f32 %v10866_v6, %v12528_v43 }
 0x402   :  { %v5130_v62 = vpack.c.bf16 %v5081_v57, %v5080_v44  ;;  %v5086_v54 = vadd.f32 %v7384_v49, %v4706_v46  ;;  %v12530_v49 = vld [vmem:[#allocation65_spill] sm:$0xff]  ;;  %v4712_v46 = vadd.f32 %v10880_v2, %v12531_v24 }
 0x403   :  { %v4925_v20 = vpop.f32.mrf.mxu1  ;;  %v4715_v19 = vadd.f32 %v10887_v60, %v12530_v49  ;;  %v12533_v2 = vld [vmem:[#allocation77_spill] sm:$0xff] }
 0x404   :  { %7444 = vmatprep.mubr.msk.bf16.mxu0 %vm28_vm3, %v5130_v62  ;;  %v5084_v18 = vadd.f32 %v4925_v20, %v4704_v3  ;;  %v10964_v62 = vpop.f32.mrf.mxu0 }
 0x405   :  { %v7385_v47 = vpop.f32.mrf.mxu1  ;;  %7445 = vmatmul.mubr.msk.bf16.gmra.mxu0 %vm28_vm3, %v5131_v45  ;;  %v12529_v45 = vld [vmem:[#allocation111_spill] sm:$0xff] }
 0x406   :  { %v5087_v17 = vadd.f32 %v7385_v47, %v4707_v16  ;;  %v4714_v57 = vadd.f32 %v10873_v31, %v12529_v45  ;;  %v12532_v16 = vld [vmem:[#allocation117_spill] sm:$0xff]  ;;  %v10971_v31 = vpop.permute.xlu0 %5281  ;;  %v7339_v60 = vpop.f32.mrf.mxu0  ;;  %v12537_v45 = vld [vmem:[#allocation96_spill] sm:$0xff] }
 0x407   :  { %v4928_v37 = vpop.f32.mrf.mxu1  ;;  %v4713_v47 = vadd.f32 %v10894_v22, %v12532_v16  ;;  %v4719_v22 = vadd.f32 %v10915_v26, %v12533_v2 }
 0x408   :  { %v5133_v39 = vpack.c.bf16 %v5087_v17, %v5086_v54  ;;  %v5085_v52 = vadd.f32 %v4928_v37, %v4705_v29 }
 0x409   :  { %v7388_v59 = vpop.f32.mrf.mxu1 }
 0x40a   :  { %v5132_v15 = vpack.c.bf16 %v5085_v52, %v5084_v18  ;;  %v5090_v11 = vadd.f32 %v7388_v59, %v4710_v32  ;;  %v10973_v18 = vpop.permute.xlu1 %5217  ;;  %v4628_v52 = vpop.f32.mrf.mxu0  ;;  %v4716_v32 = vadd.f32 %v10908_v30, %v12534_v58  ;;  %v4723_v30 = vadd.f32 %v10943_v34, %v10762_v35 }
 0x40b   :  { %v4941_v13 = vpop.f32.mrf.mxu1 }
 0x40c   :  { %7448 = vmatprep.mubr.msk.bf16.mxu0 %vm28_vm3, %v5132_v15  ;;  %v5088_v63 = vadd.f32 %v4941_v13, %v4708_v38  ;;  %v10981_v15 = vpop.permute.xlu0 %5213  ;;  %v7342_v38 = vpop.f32.mrf.mxu0 }
 0x40d   :  { %v7389_v5 = vpop.f32.mrf.mxu1  ;;  %7449 = vmatmul.mubr.msk.bf16.gmra.mxu0 %vm28_vm3, %v5133_v39  ;;  %v4718_v39 = vadd.f32 %v10901_v61, %v10737_v48  ;;  %v4730_v58 = vadd.f32 %v7342_v38, %v10788_v1 }
 0x40e   :  { %v5091_v8 = vadd.f32 %v7389_v5, %v4711_v0  ;;  %v12535_v0 = vld [vmem:[#allocation123_spill] sm:$0xff] }
 0x40f   :  { %v4944_v4 = vpop.f32.mrf.mxu1  ;;  %v4717_v5 = vadd.f32 %v10922_v41, %v12535_v0  ;;  %v4641_v41 = vpop.f32.mrf.mxu0 }
 0x410   :  { %v5135_v36 = vpack.c.bf16 %v5091_v8, %v5090_v11  ;;  %v5089_v12 = vadd.f32 %v4944_v4, %v4709_v42  ;;  %v10987_v8 = vpop.permute.xlu1 %5219  ;;  %v10989_v4 = vpop.permute.xlu0 %5277 }
 0x411   :  { %v7392_v25 = vpop.f32.mrf.mxu1 }
 0x412   :  { %v5134_v23 = vpack.c.bf16 %v5089_v12, %v5088_v63  ;;  %v5094_v20 = vadd.f32 %v7392_v25, %v4714_v57  ;;  %v4722_v63 = vadd.f32 %v10929_v7, %v10754_v21  ;;  %v12536_v25 = vld [vmem:[#allocation80_spill] sm:$0xff]  ;;  %v4721_v57 = vadd.f32 %v10950_v14, %v12537_v45  ;;  %v12543_v45 = vld [vmem:[#allocation71_spill] sm:$0xff] }
 0x413   :  { %v4957_v44 = vpop.f32.mrf.mxu1 }
 0x414   :  { %7452 = vmatprep.mubr.msk.bf16.mxu0 %vm28_vm3, %v5134_v23  ;;  %v5092_v28 = vadd.f32 %v4957_v44, %v4712_v46  ;;  %v4720_v23 = vadd.f32 %v10936_v27, %v12536_v25  ;;  %v11003_v34 = vpop.permute.xlu0 %5215  ;;  %v4727_v27 = vadd.f32 %v7339_v60, %v10779_v33  ;;  %v12542_v25 = vld [vmem:[#allocation41_spill] sm:$0xff] }
 0x415   :  { %v7393_v6 = vpop.f32.mrf.mxu1  ;;  %7453 = vmatmul.mubr.msk.bf16.gmra.mxu0 %vm28_vm3, %v5135_v36 }
 0x416   :  { %v5095_v55 = vadd.f32 %v7393_v6, %v4715_v19  ;;  %v11001_v19 = vpop.permute.xlu1 %5283 }
 0x417   :  { %v4960_v54 = vpop.f32.mrf.mxu1 }
 0x418   :  { %v5137_v3 = vpack.c.bf16 %v5095_v55, %v5094_v20  ;;  %v5093_v17 = vadd.f32 %v4960_v54, %v4713_v47  ;;  %v7343_v20 = vpop.f32.mrf.mxu0  ;;  %v4726_v55 = vadd.f32 %v10957_v50, %v10771_v56  ;;  %v11015_v56 = vpop.permute.xlu0 %5225 }
 0x419   :  { %v7396_v9 = vpop.f32.mrf.mxu1 }
 0x41a   :  { %v5136_v29 = vpack.c.bf16 %v5093_v17, %v5092_v28  ;;  %v5098_v13 = vadd.f32 %v7396_v9, %v4718_v39  ;;  %v4644_v14 = vpop.f32.mrf.mxu0  ;;  %v11010_v47 = vpop.permute.xlu1 %5279  ;;  %v12538_v28 = vld [vmem:[#allocation124_spill] sm:$0xff]  ;;  %v4725_v9 = vadd.f32 %v4628_v52, %v10783_v40 }
 0x41b   :  { %v4973_v37 = vpop.f32.mrf.mxu1 }
 0x41c   :  { %7456 = vmatprep.mubr.msk.bf16.mxu0 %vm28_vm3, %v5136_v29  ;;  %v5096_v61 = vadd.f32 %v4973_v37, %v4716_v32  ;;  %v7346_v29 = vpop.f32.mrf.mxu0  ;;  %v11023_v52 = vpop.permute.xlu0 %5289 }
 0x41d   :  { %v7397_v59 = vpop.f32.mrf.mxu1  ;;  %7457 = vmatmul.mubr.msk.bf16.gmra.mxu0 %vm28_vm3, %v5137_v3  ;;  %v4724_v3 = vadd.f32 %v10964_v62, %v12538_v28  ;;  %v4731_v62 = vadd.f32 %v7343_v20, %v10796_v51 }
 0x41e   :  { %v5099_v10 = vadd.f32 %v7397_v59, %v4719_v22  ;;  %v4657_v22 = vpop.f32.mrf.mxu0 }
 0x41f   :  { %v4976_v48 = vpop.f32.mrf.mxu1 }
 0x420   :  { %v5139_v11 = vpack.c.bf16 %v5099_v10, %v5098_v13  ;;  %v5097_v53 = vadd.f32 %v4976_v48, %v4717_v5  ;;  %v11017_v13 = vpop.permute.xlu1 %5227  ;;  %v12539_v10 = vld [vmem:[#allocation99_spill] sm:$0xff]  ;;  %v12540_v48 = vld [vmem:[#allocation126_spill] sm:$0xff] }
 0x421   :  { %v7400_v26 = vpop.f32.mrf.mxu1  ;;  %v4728_v0 = vadd.f32 %v4641_v41, %v12539_v10  ;;  %v11032_v41 = vpop.permute.xlu0 %5221 }
 0x422   :  { %v5138_v43 = vpack.c.bf16 %v5097_v53, %v5096_v61  ;;  %v5102_v12 = vadd.f32 %v7400_v26, %v4722_v63  ;;  %v4729_v61 = vadd.f32 %v4644_v14, %v12540_v48 }
 0x423   :  { %v4989_v42 = vpop.f32.mrf.mxu1 }
 0x424   :  { %7460 = vmatprep.mubr.msk.bf16.mxu0 %vm28_vm3, %v5138_v43  ;;  %v5100_v21 = vadd.f32 %v4989_v42, %v4720_v23  ;;  %v11027_v42 = vpop.permute.xlu1 %5291 }
 0x425   :  { %v7401_v36 = vpop.f32.mrf.mxu1  ;;  %7461 = vmatmul.mubr.msk.bf16.gmra.mxu0 %vm28_vm3, %v5139_v11  ;;  %v7347_v11 = vpop.f32.mrf.mxu0 }
 0x426   :  { %v5103_v44 = vadd.f32 %v7401_v36, %v4723_v30  ;;  %v12541_v36 = vld [vmem:[#allocation109_spill] sm:$0xff]  ;;  %v4735_v23 = vadd.f32 %v7347_v11, %v12542_v25  ;;  %v11039_v14 = vpop.permute.xlu0 %5285 }
 0x427   :  { %v4992_v49 = vpop.f32.mrf.mxu1  ;;  %v4660_v63 = vpop.f32.mrf.mxu0 }
 0x428   :  { %v5141_v7 = vpack.c.bf16 %v5103_v44, %v5102_v12  ;;  %v5101_v6 = vadd.f32 %v4992_v49, %v4721_v57  ;;  %v4734_v12 = vadd.f32 %v7346_v29, %v12541_v36  ;;  %v4732_v57 = vadd.f32 %v4657_v22, %v12543_v45  ;;  %v12544_v49 = vld [vmem:[#allocation45_spill] sm:$0xff] }
 0x429   :  { %v7404_v35 = vpop.f32.mrf.mxu1 }
 0x42a   :  { %v5140_v24 = vpack.c.bf16 %v5101_v6, %v5100_v21  ;;  %v5106_v54 = vadd.f32 %v7404_v35, %v4726_v55  ;;  %v4733_v21 = vadd.f32 %v4660_v63, %v12544_v49  ;;  %v11037_v55 = vpop.permute.xlu1 %5223 }
 0x42b   :  { %v5005_v46 = vpop.f32.mrf.mxu1 }
 0x42c   :  { %7464 = vmatprep.mubr.msk.bf16.mxu0 %vm28_vm3, %v5140_v24  ;;  %v5104_v50 = vadd.f32 %v5005_v46, %v4724_v3 }
 0x42d   :  { %v7405_v16 = vpop.f32.mrf.mxu1  ;;  %7465 = vmatmul.mubr.msk.bf16.gmra.mxu0 %vm28_vm3, %v5141_v7 }
 0x42e   :  { %v5107_v17 = vadd.f32 %v7405_v16, %v4727_v27  ;;  %v11043_v16 = vpop.permute.xlu1 %5287 }
 0x42f   :  { %v5008_v37 = vpop.f32.mrf.mxu1 }
 0x430   :  { %v5143_v39 = vpack.c.bf16 %v5107_v17, %v5106_v54  ;;  %v5105_v33 = vadd.f32 %v5008_v37, %v4725_v9  ;;  %v11045_v54 = vpop.permute.xlu0 %5233 }
 0x431   :  { %v7408_v60 = vpop.f32.mrf.mxu1 }
 0x432   :  { %v5142_v2 = vpack.c.bf16 %v5105_v33, %v5104_v50  ;;  %v5110_v32 = vadd.f32 %v7408_v60, %v4730_v58  ;;  %v11047_v28 = vpop.permute.xlu1 %5235 }
 0x433   :  { %v5021_v59 = vpop.f32.mrf.mxu1 }
 0x434   :  { %7468 = vmatprep.mubr.msk.bf16.mxu0 %vm28_vm3, %v5142_v2  ;;  %v5108_v26 = vadd.f32 %v5021_v59, %v4728_v0  ;;  %v11049_v3 = vpop.permute.xlu0 %5297 }
 0x435   :  { %v7409_v40 = vpop.f32.mrf.mxu1  ;;  %7469 = vmatmul.mubr.msk.bf16.gmra.mxu0 %vm28_vm3, %v5143_v39 }
 0x436   :  { %v5111_v5 = vadd.f32 %v7409_v40, %v4731_v62  ;;  %v11051_v17 = vpop.permute.xlu1 %5299 }
 0x437   :  { %v5024_v53 = vpop.f32.mrf.mxu1 }
 0x438   :  { %v5145_v43 = vpack.c.bf16 %v5111_v5, %v5110_v32  ;;  %v5109_v1 = vadd.f32 %v5024_v53, %v4729_v61  ;;  %v11053_v9 = vpop.permute.xlu0 %5229  ;;  %v11094_v53 = vld [vmem:[%s11499_s5] ss:$0 sm:$0xff] }
 0x439   :  { %v7412_v38 = vpop.f32.mrf.mxu1 }
 0x43a   :  { %v5144_v51 = vpack.c.bf16 %v5109_v1, %v5108_v26  ;;  %v5114_v7 = vadd.f32 %v7412_v38, %v4734_v12  ;;  %v11055_v29 = vpop.permute.xlu1 %5231 }
 0x43b   :  { %v5037_v30 = vpop.f32.mrf.mxu1 }
 0x43c   :  { %7472 = vmatprep.mubr.msk.bf16.mxu0 %vm28_vm3, %v5144_v51  ;;  %v5112_v35 = vadd.f32 %v5037_v30, %v4732_v57  ;;  %v11057_v37 = vpop.permute.xlu0 %5293 }
 0x43d   :  { %v7413_v44 = vpop.f32.mrf.mxu1  ;;  %7473 = vmatmul.mubr.msk.bf16.gmra.mxu0 %vm28_vm3, %v5145_v43 }
 0x43e   :  { %v5115_v6 = vadd.f32 %v7413_v44, %v4735_v23  ;;  %v11059_v50 = vpop.permute.xlu1 %5295 }
 0x43f   :  { %v5040_v20 = vpop.f32.mrf.mxu1 }
 0x440   :  { %v5147_v24 = vpack.c.bf16 %v5115_v6, %v5114_v7  ;;  %v5113_v46 = vadd.f32 %v5040_v20, %v4733_v21  ;;  %v11061_v39 = vpop.permute.xlu0 %5241 }
 0x442   :  { %v5146_v27 = vpack.c.bf16 %v5113_v46, %v5112_v35  ;;  %v11063_v33 = vpop.permute.xlu1 %5243 }
 0x444   :  { %7476 = vmatprep.mubr.msk.bf16.mxu0 %vm28_vm3, %v5146_v27  ;;  %v11065_v60 = vpop.permute.xlu0 %5305 }
 0x445   :  { %7477 = vmatmul.mubr.msk.bf16.gmra.mxu0 %vm28_vm3, %v5147_v24 }
 0x446   :  { %v11067_v2 = vpop.permute.xlu1 %5307 }
 0x448   :  { %v11069_v22 = vpop.permute.xlu0 %5237 }
 0x44a   :  { %v11071_v59 = vpop.permute.xlu1 %5239 }
 0x44c   :  { %v11073_v58 = vpop.permute.xlu0 %5301 }
 0x44e   :  { %v11075_v62 = vpop.permute.xlu1 %5303 }
 0x450   :  { %v11077_v40 = vpop.permute.xlu0 %5249 }
 0x452   :  { %v11079_v32 = vpop.permute.xlu1 %5251 }
 0x454   :  { %v11081_v10 = vpop.permute.xlu0 %5313 }
 0x456   :  { %v11083_v0 = vpop.permute.xlu1 %5315 }
 0x458   :  { %v11085_v5 = vpop.permute.xlu0 %5245 }
 0x45a   :  { %v11087_v48 = vpop.permute.xlu1 %5247 }
 0x45c   :  { %v11089_v61 = vpop.permute.xlu0 %5309 }
 0x45e   :  { %v11097_v43 = vpop.permute.xlu1 %5311 }
 0x460   :  { %v11101_v63 = vpop.permute.xlu0 %5257 }
 0x462   :  { %v11111_v45 = vpop.permute.xlu1 %5259 }
 0x464   :  { %v11119_v7 = vpop.permute.xlu0 %5321 }
 0x48d   :  { %v7418_v11 = vpop.f32.mrf.mxu0 }
 0x48e   :  { %v5547_v26 = vadd.f32 %v7418_v11, %v10973_v18  ;;  %v11133_v11 = vpop.permute.xlu1 %5323 }
 0x48f   :  { %v5538_v1 = vpop.f32.mrf.mxu0 }
 0x490   :  { %v5802_v38 = vadd.f32 %v11094_v53, %v5547_v26  ;;  %v5539_v51 = vadd.f32 %v5538_v1, %v10981_v15 }
 0x491   :  { %v7419_v30 = vpop.f32.mrf.mxu0 }
 0x492   :  { %v5866_v36 = vmax.f32 %v5802_v38, 0.0  ;;  %v5800_v12 = vadd.f32 %v11094_v53, %v5539_v51  ;;  %v5550_v25 = vadd.f32 %v7419_v30, %v10987_v8  ;;  %v11141_v51 = vpop.permute.xlu0 %5253 }
 0x493   :  { %v5541_v23 = vpop.f32.mrf.mxu0 }
 0x494   :  { %5931 = vst.msk [vmem:[%s11500_s6 + $0x10] sm:$0xff] %vm5928_vm8, %v5866_v36  ;;  %v5864_v18 = vmax.f32 %v5800_v12, 0.0  ;;  %v5803_v44 = vadd.f32 %v11094_v53, %v5550_v25  ;;  %v5542_v15 = vadd.f32 %v5541_v23, %v11003_v34 }
 0x495   :  { %v7422_v57 = vpop.f32.mrf.mxu0 }
 0x496   :  { %5929 = vst.msk [vmem:[%s11500_s6] sm:$0xff] %vm5928_vm8, %v5864_v18  ;;  %v5867_v8 = vmax.f32 %v5803_v44, 0.0  ;;  %v5801_v49 = vadd.f32 %v11094_v53, %v5542_v15  ;;  %v5563_v21 = vadd.f32 %v7422_v57, %v11015_v56  ;;  %v11155_v44 = vpop.permute.xlu1 %5255 }
 0x497   :  { %v5554_v6 = vpop.f32.mrf.mxu0 }
 0x498   :  { %5932 = vst.msk [vmem:[%s11500_s6 + $0x18] sm:$0xff] %vm5928_vm8, %v5867_v8  ;;  %v5865_v34 = vmax.f32 %v5801_v49, 0.0  ;;  %v5806_v20 = vadd.f32 %v11094_v53, %v5563_v21  ;;  %v5555_v35 = vadd.f32 %v5554_v6, %v11032_v41  ;;  %v11163_v49 = vpop.permute.xlu0 %5317 }
 0x499   :  { %v7423_v24 = vpop.f32.mrf.mxu0 }
 0x49a   :  { %5930 = vst.msk [vmem:[%s11500_s6 + $0x8] sm:$0xff] %vm5928_vm8, %v5865_v34  ;;  %v5870_v56 = vmax.f32 %v5806_v20, 0.0  ;;  %v5804_v46 = vadd.f32 %v11094_v53, %v5555_v35  ;;  %v5566_v27 = vadd.f32 %v7423_v24, %v11017_v13 }
 0x49b   :  { %v5557_v26 = vpop.f32.mrf.mxu0 }
 0x49c   :  { %5935 = vst.msk [vmem:[%s11500_s6 + $0x30] sm:$0xff] %vm5928_vm8, %v5870_v56  ;;  %v5868_v41 = vmax.f32 %v5804_v46, 0.0  ;;  %v5807_v1 = vadd.f32 %v11094_v53, %v5566_v27  ;;  %v5558_v38 = vadd.f32 %v5557_v26, %v11037_v55  ;;  %v11177_v56 = vpop.permute.xlu1 %5319 }
 0x49d   :  { %v7426_v30 = vpop.f32.mrf.mxu0 }
 0x49e   :  { %5933 = vst.msk [vmem:[%s11500_s6 + $0x20] sm:$0xff] %vm5928_vm8, %v5868_v41  ;;  %v5871_v13 = vmax.f32 %v5807_v1, 0.0  ;;  %v5805_v36 = vadd.f32 %v11094_v53, %v5558_v38  ;;  %v5579_v12 = vadd.f32 %v7426_v30, %v11045_v54  ;;  %v5266_v41 = vpop.permute.xlu0 %5265 }
 0x49f   :  { %v5570_v25 = vpop.f32.mrf.mxu0 }
 0x4a0   :  { %5936 = vst.msk [vmem:[%s11500_s6 + $0x38] sm:$0xff] %vm5928_vm8, %v5871_v13  ;;  %v5869_v55 = vmax.f32 %v5805_v36, 0.0  ;;  %v5810_v23 = vadd.f32 %v11094_v53, %v5579_v12  ;;  %v5571_v18 = vadd.f32 %v5570_v25, %v11053_v9  ;;  %v5268_v25 = vpop.permute.xlu1 %5267 }
 0x4a1   :  { %v7427_v15 = vpop.f32.mrf.mxu0 }
 0x4a2   :  { %5934 = vst.msk [vmem:[%s11500_s6 + $0x28] sm:$0xff] %vm5928_vm8, %v5869_v55  ;;  %v5874_v54 = vmax.f32 %v5810_v23, 0.0  ;;  %v5808_v57 = vadd.f32 %v11094_v53, %v5571_v18  ;;  %v5582_v8 = vadd.f32 %v7427_v15, %v11047_v28  ;;  %v11203_v15 = vpop.permute.xlu0 %5329 }
 0x4a3   :  { %v5573_v21 = vpop.f32.mrf.mxu0 }
 0x4a4   :  { %5939 = vst.msk [vmem:[%s11500_s6 + $0x50] sm:$0xff] %vm5928_vm8, %v5874_v54  ;;  %v5872_v9 = vmax.f32 %v5808_v57, 0.0  ;;  %v5811_v6 = vadd.f32 %v11094_v53, %v5582_v8  ;;  %v5574_v34 = vadd.f32 %v5573_v21, %v11055_v29 }
 0x4a5   :  { %v7430_v20 = vpop.f32.mrf.mxu0 }
 0x4a6   :  { %5937 = vst.msk [vmem:[%s11500_s6 + $0x40] sm:$0xff] %vm5928_vm8, %v5872_v9  ;;  %v5875_v28 = vmax.f32 %v5811_v6, 0.0  ;;  %v5809_v35 = vadd.f32 %v11094_v53, %v5574_v34  ;;  %v5595_v24 = vadd.f32 %v7430_v20, %v11061_v39  ;;  %v11217_v34 = vpop.permute.xlu1 %5331 }
 0x4a7   :  { %v5586_v46 = vpop.f32.mrf.mxu0 }
 0x4a8   :  { %5940 = vst.msk [vmem:[%s11500_s6 + $0x58] sm:$0xff] %vm5928_vm8, %v5875_v28  ;;  %v5873_v29 = vmax.f32 %v5809_v35, 0.0  ;;  %v5814_v27 = vadd.f32 %v11094_v53, %v5595_v24  ;;  %v5587_v26 = vadd.f32 %v5586_v46, %v11069_v22  ;;  %v5262_v24 = vpop.permute.xlu0 %5261 }
 0x4a9   :  { %v7431_v1 = vpop.f32.mrf.mxu0 }
 0x4aa   :  { %5938 = vst.msk [vmem:[%s11500_s6 + $0x48] sm:$0xff] %vm5928_vm8, %v5873_v29  ;;  %v5878_v39 = vmax.f32 %v5814_v27, 0.0  ;;  %v5812_v38 = vadd.f32 %v11094_v53, %v5587_v26  ;;  %v5598_v30 = vadd.f32 %v7431_v1, %v11063_v33 }
 0x4ab   :  { %v5589_v13 = vpop.f32.mrf.mxu0 }
 0x4ac   :  { %5943 = vst.msk [vmem:[%s11500_s6 + $0x70] sm:$0xff] %vm5928_vm8, %v5878_v39  ;;  %v5876_v36 = vmax.f32 %v5812_v38, 0.0  ;;  %v5815_v22 = vadd.f32 %v11094_v53, %v5598_v30  ;;  %v5590_v12 = vadd.f32 %v5589_v13, %v11071_v59  ;;  %v5264_v38 = vpop.permute.xlu1 %5263 }
 0x4ad   :  { %v7434_v55 = vpop.f32.mrf.mxu0 }
 0x4ae   :  { %5941 = vst.msk [vmem:[%s11500_s6 + $0x60] sm:$0xff] %vm5928_vm8, %v5876_v36  ;;  %v5879_v23 = vmax.f32 %v5815_v22, 0.0  ;;  %v5813_v33 = vadd.f32 %v11094_v53, %v5590_v12  ;;  %v5611_v18 = vadd.f32 %v7434_v55, %v11077_v40  ;;  %v11243_v22 = vpop.permute.xlu0 %5325 }
 0x4af   :  { %v5602_v54 = vpop.f32.mrf.mxu0 }
 0x4b0   :  { %5944 = vst.msk [vmem:[%s11500_s6 + $0x78] sm:$0xff] %vm5928_vm8, %v5879_v23  ;;  %v5877_v59 = vmax.f32 %v5813_v33, 0.0  ;;  %v5818_v57 = vadd.f32 %v11094_v53, %v5611_v18  ;;  %v5603_v8 = vadd.f32 %v5602_v54, %v11085_v5 }
 0x4b1   :  { %v7435_v21 = vpop.f32.mrf.mxu0 }
 0x4b2   :  { %5942 = vst.msk [vmem:[%s11500_s6 + $0x68] sm:$0xff] %vm5928_vm8, %v5877_v59  ;;  %v5882_v40 = vmax.f32 %v5818_v57, 0.0  ;;  %v5816_v9 = vadd.f32 %v11094_v53, %v5603_v8  ;;  %v5614_v6 = vadd.f32 %v7435_v21, %v11079_v32  ;;  %v11256_v59 = vpop.permute.xlu1 %5327 }
 0x4b3   :  { %v5605_v20 = vpop.f32.mrf.mxu0 }
 0x4b4   :  { %5947 = vst.msk [vmem:[%s11500_s6 + $0x90] sm:$0xff] %vm5928_vm8, %v5882_v40  ;;  %v5880_v5 = vmax.f32 %v5816_v9, 0.0  ;;  %v5819_v28 = vadd.f32 %v11094_v53, %v5614_v6  ;;  %v5606_v35 = vadd.f32 %v5605_v20, %v11087_v48  ;;  %v5274_v40 = vpop.permute.xlu0 %5273 }
 0x4b5   :  { %v7438_v46 = vpop.f32.mrf.mxu0 }
 0x4b6   :  { %5945 = vst.msk [vmem:[%s11500_s6 + $0x80] sm:$0xff] %vm5928_vm8, %v5880_v5  ;;  %v5883_v32 = vmax.f32 %v5819_v28, 0.0  ;;  %v5817_v29 = vadd.f32 %v11094_v53, %v5606_v35  ;;  %v5627_v27 = vadd.f32 %v7438_v46, %v11101_v63  ;;  %v5276_v46 = vpop.permute.xlu1 %5275 }
 0x4b7   :  { %v5618_v26 = vpop.f32.mrf.mxu0 }
 0x4b8   :  { %5948 = vst.msk [vmem:[%s11500_s6 + $0x98] sm:$0xff] %vm5928_vm8, %v5883_v32  ;;  %v5881_v1 = vmax.f32 %v5817_v29, 0.0  ;;  %v5822_v48 = vadd.f32 %v11094_v53, %v5627_v27  ;;  %v5619_v39 = vadd.f32 %v5618_v26, %v11141_v51  ;;  %v5270_v26 = vpop.permute.xlu0 %5269 }
 0x4b9   :  { %v7439_v30 = vpop.f32.mrf.mxu0 }
 0x4ba   :  { %5946 = vst.msk [vmem:[%s11500_s6 + $0x88] sm:$0xff] %vm5928_vm8, %v5881_v1  ;;  %v5886_v13 = vmax.f32 %v5822_v48, 0.0  ;;  %v5820_v63 = vadd.f32 %v11094_v53, %v5619_v39  ;;  %v5630_v36 = vadd.f32 %v7439_v30, %v11111_v45 }
 0x4bb   :  { %v5621_v12 = vpop.f32.mrf.mxu0 }
 0x4bc   :  { %5951 = vst.msk [vmem:[%s11500_s6 + $0xb0] sm:$0xff] %vm5928_vm8, %v5886_v13  ;;  %v5884_v51 = vmax.f32 %v5820_v63, 0.0  ;;  %v5823_v55 = vadd.f32 %v11094_v53, %v5630_v36  ;;  %v5622_v23 = vadd.f32 %v5621_v12, %v11155_v44  ;;  %v5272_v12 = vpop.permute.xlu1 %5271 }
 0x4bd   :  { %v7442_v33 = vpop.f32.mrf.mxu0 }
 0x4be   :  { %5949 = vst.msk [vmem:[%s11500_s6 + $0xa0] sm:$0xff] %vm5928_vm8, %v5884_v51  ;;  %v5887_v45 = vmax.f32 %v5823_v55, 0.0  ;;  %v5821_v18 = vadd.f32 %v11094_v53, %v5622_v23  ;;  %v5643_v54 = vadd.f32 %v7442_v33, %v5266_v41 }
 0x4bf   :  { %v5634_v57 = vpop.f32.mrf.mxu0 }
 0x4c0   :  { %5952 = vst.msk [vmem:[%s11500_s6 + $0xb8] sm:$0xff] %vm5928_vm8, %v5887_v45  ;;  %v5885_v8 = vmax.f32 %v5821_v18, 0.0  ;;  %v5826_v44 = vadd.f32 %v11094_v53, %v5643_v54  ;;  %v5635_v21 = vadd.f32 %v5634_v57, %v5262_v24 }
 0x4c1   :  { %v7443_v9 = vpop.f32.mrf.mxu0 }
 0x4c2   :  { %5950 = vst.msk [vmem:[%s11500_s6 + $0xa8] sm:$0xff] %vm5928_vm8, %v5885_v8  ;;  %v5890_v41 = vmax.f32 %v5826_v44, 0.0  ;;  %v5824_v6 = vadd.f32 %v11094_v53, %v5635_v21  ;;  %v5646_v20 = vadd.f32 %v7443_v9, %v5268_v25 }
 0x4c3   :  { %v5637_v5 = vpop.f32.mrf.mxu0 }
 0x4c4   :  { %5955 = vst.msk [vmem:[%s11500_s6 + $0xd0] sm:$0xff] %vm5928_vm8, %v5890_v41  ;;  %v5888_v28 = vmax.f32 %v5824_v6, 0.0  ;;  %v5827_v35 = vadd.f32 %v11094_v53, %v5646_v20  ;;  %v5638_v24 = vadd.f32 %v5637_v5, %v5264_v38 }
 0x4c5   :  { %v7446_v32 = vpop.f32.mrf.mxu0 }
 0x4c6   :  { %5953 = vst.msk [vmem:[%s11500_s6 + $0xc0] sm:$0xff] %vm5928_vm8, %v5888_v28  ;;  %v5891_v29 = vmax.f32 %v5827_v35, 0.0  ;;  %v5825_v25 = vadd.f32 %v11094_v53, %v5638_v24  ;;  %v5659_v27 = vadd.f32 %v7446_v32, %v5274_v40 }
 0x4c7   :  { %v5650_v1 = vpop.f32.mrf.mxu0 }
 0x4c8   :  { %5956 = vst.msk [vmem:[%s11500_s6 + $0xd8] sm:$0xff] %vm5928_vm8, %v5891_v29  ;;  %v5889_v48 = vmax.f32 %v5825_v25, 0.0  ;;  %v5830_v39 = vadd.f32 %v11094_v53, %v5659_v27  ;;  %v5651_v38 = vadd.f32 %v5650_v1, %v5270_v26 }
 0x4c9   :  { %v7447_v30 = vpop.f32.mrf.mxu0 }
 0x4ca   :  { %5954 = vst.msk [vmem:[%s11500_s6 + $0xc8] sm:$0xff] %vm5928_vm8, %v5889_v48  ;;  %v5894_v13 = vmax.f32 %v5830_v39, 0.0  ;;  %v5828_v63 = vadd.f32 %v11094_v53, %v5651_v38  ;;  %v5662_v36 = vadd.f32 %v7447_v30, %v5276_v46 }
 0x4cb   :  { %v5653_v51 = vpop.f32.mrf.mxu0 }
 0x4cc   :  { %5959 = vst.msk [vmem:[%s11500_s6 + $0xf0] sm:$0xff] %vm5928_vm8, %v5894_v13  ;;  %v5892_v55 = vmax.f32 %v5828_v63, 0.0  ;;  %v5831_v23 = vadd.f32 %v11094_v53, %v5662_v36  ;;  %v5654_v33 = vadd.f32 %v5653_v51, %v5272_v12 }
 0x4cd   :  { %v7450_v45 = vpop.f32.mrf.mxu0 }
 0x4ce   :  { %5957 = vst.msk [vmem:[%s11500_s6 + $0xe0] sm:$0xff] %vm5928_vm8, %v5892_v55  ;;  %v5895_v18 = vmax.f32 %v5831_v23, 0.0  ;;  %v5829_v54 = vadd.f32 %v11094_v53, %v5654_v33  ;;  %v5675_v57 = vadd.f32 %v7450_v45, %v10971_v31 }
 0x4cf   :  { %v5666_v8 = vpop.f32.mrf.mxu0 }
 0x4d0   :  { %5960 = vst.msk [vmem:[%s11500_s6 + $0xf8] sm:$0xff] %vm5928_vm8, %v5895_v18  ;;  %v5893_v44 = vmax.f32 %v5829_v54, 0.0  ;;  %v5834_v21 = vadd.f32 %v11094_v53, %v5675_v57  ;;  %v5667_v40 = vadd.f32 %v5666_v8, %v10989_v4 }
 0x4d1   :  { %v7451_v9 = vpop.f32.mrf.mxu0 }
 0x4d2   :  { %5958 = vst.msk [vmem:[%s11500_s6 + $0xe8] sm:$0xff] %vm5928_vm8, %v5893_v44  ;;  %v5898_v41 = vmax.f32 %v5834_v21, 0.0  ;;  %v5832_v31 = vadd.f32 %v11094_v53, %v5667_v40  ;;  %v5678_v6 = vadd.f32 %v7451_v9, %v11001_v19 }
 0x4d3   :  { %v5669_v20 = vpop.f32.mrf.mxu0 }
 0x4d4   :  { %5963 = vst.msk [vmem:[%s11500_s6 + $0x110] sm:$0xff] %vm5928_vm8, %v5898_v41  ;;  %v5896_v5 = vmax.f32 %v5832_v31, 0.0  ;;  %v5835_v4 = vadd.f32 %v11094_v53, %v5678_v6  ;;  %v5670_v28 = vadd.f32 %v5669_v20, %v11010_v47 }
 0x4d5   :  { %v7454_v35 = vpop.f32.mrf.mxu0 }
 0x4d6   :  { %5961 = vst.msk [vmem:[%s11500_s6 + $0x100] sm:$0xff] %vm5928_vm8, %v5896_v5  ;;  %v5899_v24 = vmax.f32 %v5835_v4, 0.0  ;;  %v5833_v19 = vadd.f32 %v11094_v53, %v5670_v28  ;;  %v5691_v46 = vadd.f32 %v7454_v35, %v11023_v52 }
 0x4d7   :  { %v5682_v32 = vpop.f32.mrf.mxu0 }
 0x4d8   :  { %5964 = vst.msk [vmem:[%s11500_s6 + $0x118] sm:$0xff] %vm5928_vm8, %v5899_v24  ;;  %v5897_v29 = vmax.f32 %v5833_v19, 0.0  ;;  %v5838_v47 = vadd.f32 %v11094_v53, %v5691_v46  ;;  %v5683_v25 = vadd.f32 %v5682_v32, %v11039_v14 }
 0x4d9   :  { %v7455_v27 = vpop.f32.mrf.mxu0 }
 0x4da   :  { %5962 = vst.msk [vmem:[%s11500_s6 + $0x108] sm:$0xff] %vm5928_vm8, %v5897_v29  ;;  %v5902_v26 = vmax.f32 %v5838_v47, 0.0  ;;  %v5836_v52 = vadd.f32 %v11094_v53, %v5683_v25  ;;  %v5694_v1 = vadd.f32 %v7455_v27, %v11027_v42 }
 0x4db   :  { %v5685_v48 = vpop.f32.mrf.mxu0 }
 0x4dc   :  { %5967 = vst.msk [vmem:[%s11500_s6 + $0x130] sm:$0xff] %vm5928_vm8, %v5902_v26  ;;  %v5900_v39 = vmax.f32 %v5836_v52, 0.0  ;;  %v5839_v14 = vadd.f32 %v11094_v53, %v5694_v1  ;;  %v5686_v38 = vadd.f32 %v5685_v48, %v11043_v16 }
 0x4dd   :  { %v7458_v30 = vpop.f32.mrf.mxu0 }
 0x4de   :  { %5965 = vst.msk [vmem:[%s11500_s6 + $0x120] sm:$0xff] %vm5928_vm8, %v5900_v39  ;;  %v5903_v13 = vmax.f32 %v5839_v14, 0.0  ;;  %v5837_v42 = vadd.f32 %v11094_v53, %v5686_v38  ;;  %v5707_v63 = vadd.f32 %v7458_v30, %v11049_v3 }
 0x4df   :  { %v5698_v36 = vpop.f32.mrf.mxu0 }
 0x4e0   :  { %5968 = vst.msk [vmem:[%s11500_s6 + $0x138] sm:$0xff] %vm5928_vm8, %v5903_v13  ;;  %v5901_v12 = vmax.f32 %v5837_v42, 0.0  ;;  %v5842_v16 = vadd.f32 %v11094_v53, %v5707_v63  ;;  %v5699_v51 = vadd.f32 %v5698_v36, %v11057_v37 }
 0x4e1   :  { %v7459_v55 = vpop.f32.mrf.mxu0 }
 0x4e2   :  { %5966 = vst.msk [vmem:[%s11500_s6 + $0x128] sm:$0xff] %vm5928_vm8, %v5901_v12  ;;  %v5906_v23 = vmax.f32 %v5842_v16, 0.0  ;;  %v5840_v3 = vadd.f32 %v11094_v53, %v5699_v51  ;;  %v5710_v33 = vadd.f32 %v7459_v55, %v11051_v17 }
 0x4e3   :  { %v5701_v45 = vpop.f32.mrf.mxu0 }
 0x4e4   :  { %5971 = vst.msk [vmem:[%s11500_s6 + $0x150] sm:$0xff] %vm5928_vm8, %v5906_v23  ;;  %v5904_v18 = vmax.f32 %v5840_v3, 0.0  ;;  %v5843_v37 = vadd.f32 %v11094_v53, %v5710_v33  ;;  %v5702_v54 = vadd.f32 %v5701_v45, %v11059_v50  ;;  %v5334_v3 = vpop.permute.xlu0 %5333 }
 0x4e5   :  { %v7462_v57 = vpop.f32.mrf.mxu0 }
 0x4e6   :  { %5969 = vst.msk [vmem:[%s11500_s6 + $0x140] sm:$0xff] %vm5928_vm8, %v5904_v18  ;;  %v5907_v8 = vmax.f32 %v5843_v37, 0.0  ;;  %v5841_v17 = vadd.f32 %v11094_v53, %v5702_v54  ;;  %v5723_v44 = vadd.f32 %v7462_v57, %v11065_v60 }
 0x4e7   :  { %v5714_v21 = vpop.f32.mrf.mxu0 }
 0x4e8   :  { %5972 = vst.msk [vmem:[%s11500_s6 + $0x158] sm:$0xff] %vm5928_vm8, %v5907_v8  ;;  %v5905_v40 = vmax.f32 %v5841_v17, 0.0  ;;  %v5846_v50 = vadd.f32 %v11094_v53, %v5723_v44  ;;  %v5715_v9 = vadd.f32 %v5714_v21, %v11073_v58  ;;  %v5336_v8 = vpop.permute.xlu1 %5335 }
 0x4e9   :  { %v7463_v41 = vpop.f32.mrf.mxu0 }
 0x4ea   :  { %5970 = vst.msk [vmem:[%s11500_s6 + $0x148] sm:$0xff] %vm5928_vm8, %v5905_v40  ;;  %v5910_v31 = vmax.f32 %v5846_v50, 0.0  ;;  %v5844_v60 = vadd.f32 %v11094_v53, %v5715_v9  ;;  %v5726_v6 = vadd.f32 %v7463_v41, %v11067_v2  ;;  %v5338_v40 = vpop.permute.xlu0 %5337 }
 0x4eb   :  { %v5717_v20 = vpop.f32.mrf.mxu0 }
 0x4ec   :  { %5975 = vst.msk [vmem:[%s11500_s6 + $0x170] sm:$0xff] %vm5928_vm8, %v5910_v31  ;;  %v5908_v5 = vmax.f32 %v5844_v60, 0.0  ;;  %v5847_v58 = vadd.f32 %v11094_v53, %v5726_v6  ;;  %v5718_v4 = vadd.f32 %v5717_v20, %v11075_v62  ;;  %v5340_v20 = vpop.permute.xlu1 %5339 }
 0x4ed   :  { %v7466_v28 = vpop.f32.mrf.mxu0 }
 0x4ee   :  { %5973 = vst.msk [vmem:[%s11500_s6 + $0x160] sm:$0xff] %vm5928_vm8, %v5908_v5  ;;  %v5911_v35 = vmax.f32 %v5847_v58, 0.0  ;;  %v5845_v2 = vadd.f32 %v11094_v53, %v5718_v4  ;;  %v5739_v24 = vadd.f32 %v7466_v28, %v11081_v10 }
 0x4ef   :  { %v5730_v19 = vpop.f32.mrf.mxu0 }
 0x4f0   :  { %5976 = vst.msk [vmem:[%s11500_s6 + $0x178] sm:$0xff] %vm5928_vm8, %v5911_v35  ;;  %v5909_v46 = vmax.f32 %v5845_v2, 0.0  ;;  %v5850_v62 = vadd.f32 %v11094_v53, %v5739_v24  ;;  %v5731_v32 = vadd.f32 %v5730_v19, %v11089_v61 }
 0x4f1   :  { %v7467_v29 = vpop.f32.mrf.mxu0 }
 0x4f2   :  { %5974 = vst.msk [vmem:[%s11500_s6 + $0x168] sm:$0xff] %vm5928_vm8, %v5909_v46  ;;  %v5914_v47 = vmax.f32 %v5850_v62, 0.0  ;;  %v5848_v10 = vadd.f32 %v11094_v53, %v5731_v32  ;;  %v5742_v25 = vadd.f32 %v7467_v29, %v11083_v0 }
 0x4f3   :  { %v5733_v27 = vpop.f32.mrf.mxu0 }
 0x4f4   :  { %5979 = vst.msk [vmem:[%s11500_s6 + $0x190] sm:$0xff] %vm5928_vm8, %v5914_v47  ;;  %v5912_v26 = vmax.f32 %v5848_v10, 0.0  ;;  %v5851_v61 = vadd.f32 %v11094_v53, %v5742_v25  ;;  %v5734_v52 = vadd.f32 %v5733_v27, %v11097_v43 }
 0x4f5   :  { %v7470_v1 = vpop.f32.mrf.mxu0 }
 0x4f6   :  { %5977 = vst.msk [vmem:[%s11500_s6 + $0x180] sm:$0xff] %vm5928_vm8, %v5912_v26  ;;  %v5915_v48 = vmax.f32 %v5851_v61, 0.0  ;;  %v5849_v0 = vadd.f32 %v11094_v53, %v5734_v52  ;;  %v5755_v39 = vadd.f32 %v7470_v1, %v11119_v7 }
 0x4f7   :  { %v5746_v14 = vpop.f32.mrf.mxu0 }
 0x4f8   :  { %5980 = vst.msk [vmem:[%s11500_s6 + $0x198] sm:$0xff] %vm5928_vm8, %v5915_v48  ;;  %v5913_v38 = vmax.f32 %v5849_v0, 0.0  ;;  %v5854_v43 = vadd.f32 %v11094_v53, %v5755_v39  ;;  %v5747_v30 = vadd.f32 %v5746_v14, %v11163_v49 }
 0x4f9   :  { %v7471_v13 = vpop.f32.mrf.mxu0 }
 0x4fa   :  { %5978 = vst.msk [vmem:[%s11500_s6 + $0x188] sm:$0xff] %vm5928_vm8, %v5913_v38  ;;  %v5918_v42 = vmax.f32 %v5854_v43, 0.0  ;;  %v5852_v7 = vadd.f32 %v11094_v53, %v5747_v30  ;;  %v5758_v63 = vadd.f32 %v7471_v13, %v11133_v11 }
 0x4fb   :  { %v5749_v36 = vpop.f32.mrf.mxu0 }
 0x4fc   :  { %5983 = vst.msk [vmem:[%s11500_s6 + $0x1b0] sm:$0xff] %vm5928_vm8, %v5918_v42  ;;  %v5916_v12 = vmax.f32 %v5852_v7, 0.0  ;;  %v5855_v49 = vadd.f32 %v11094_v53, %v5758_v63  ;;  %v5750_v16 = vadd.f32 %v5749_v36, %v11177_v56 }
 0x4fd   :  { %v7474_v51 = vpop.f32.mrf.mxu0 }
 0x4fe   :  { %5981 = vst.msk [vmem:[%s11500_s6 + $0x1a0] sm:$0xff] %vm5928_vm8, %v5916_v12  ;;  %v5919_v55 = vmax.f32 %v5855_v49, 0.0  ;;  %v5853_v11 = vadd.f32 %v11094_v53, %v5750_v16  ;;  %v5771_v23 = vadd.f32 %v7474_v51, %v11203_v15 }
 0x4ff   :  { %v5762_v33 = vpop.f32.mrf.mxu0 }
 0x500   :  { %5984 = vst.msk [vmem:[%s11500_s6 + $0x1b8] sm:$0xff] %vm5928_vm8, %v5919_v55  ;;  %v5917_v45 = vmax.f32 %v5853_v11, 0.0  ;;  %v5858_v56 = vadd.f32 %v11094_v53, %v5771_v23  ;;  %v5763_v18 = vadd.f32 %v5762_v33, %v11243_v22 }
 0x501   :  { %v7475_v37 = vpop.f32.mrf.mxu0 }
 0x502   :  { %5982 = vst.msk [vmem:[%s11500_s6 + $0x1a8] sm:$0xff] %vm5928_vm8, %v5917_v45  ;;  %v5922_v54 = vmax.f32 %v5858_v56, 0.0  ;;  %v5856_v15 = vadd.f32 %v11094_v53, %v5763_v18  ;;  %v5774_v57 = vadd.f32 %v7475_v37, %v11217_v34 }
 0x503   :  { %v5765_v17 = vpop.f32.mrf.mxu0 }
 0x504   :  { %5987 = vst.msk [vmem:[%s11500_s6 + $0x1d0] sm:$0xff] %vm5928_vm8, %v5922_v54  ;;  %v5920_v44 = vmax.f32 %v5856_v15, 0.0  ;;  %v5859_v22 = vadd.f32 %v11094_v53, %v5774_v57  ;;  %v5766_v21 = vadd.f32 %v5765_v17, %v11256_v59 }
 0x505   :  { %v7478_v50 = vpop.f32.mrf.mxu0 }
 0x506   :  { %5985 = vst.msk [vmem:[%s11500_s6 + $0x1c0] sm:$0xff] %vm5928_vm8, %v5920_v44  ;;  %v5923_v34 = vmax.f32 %v5859_v22, 0.0  ;;  %v5857_v9 = vadd.f32 %v11094_v53, %v5766_v21  ;;  %v5787_v41 = vadd.f32 %v7478_v50, %v5338_v40 }
 0x507   :  { %v5778_v31 = vpop.f32.mrf.mxu0 }
 0x508   :  { %5988 = vst.msk [vmem:[%s11500_s6 + $0x1d8] sm:$0xff] %vm5928_vm8, %v5923_v34  ;;  %v5921_v60 = vmax.f32 %v5857_v9, 0.0  ;;  %v5862_v59 = vadd.f32 %v11094_v53, %v5787_v41  ;;  %v5779_v6 = vadd.f32 %v5778_v31, %v5334_v3 }
 0x509   :  { %v7479_v5 = vpop.f32.mrf.mxu0 }
 0x50a   :  { %5986 = vst.msk [vmem:[%s11500_s6 + $0x1c8] sm:$0xff] %vm5928_vm8, %v5921_v60  ;;  %v5926_v58 = vmax.f32 %v5862_v59, 0.0  ;;  %v5860_v4 = vadd.f32 %v11094_v53, %v5779_v6  ;;  %v5790_v28 = vadd.f32 %v7479_v5, %v5340_v20 }
 0x50b   :  { %v5781_v35 = vpop.f32.mrf.mxu0 }
 0x50c   :  { %5991 = vst.msk [vmem:[%s11500_s6 + $0x1f0] sm:$0xff] %vm5928_vm8, %v5926_v58  ;;  %v5924_v2 = vmax.f32 %v5860_v4, 0.0  ;;  %v5863_v24 = vadd.f32 %v11094_v53, %v5790_v28  ;;  %v5782_v19 = vadd.f32 %v5781_v35, %v5336_v8 }
 0x50e   :  { %5989 = vst.msk [vmem:[%s11500_s6 + $0x1e0] sm:$0xff] %vm5928_vm8, %v5924_v2  ;;  %v5927_v46 = vmax.f32 %v5863_v24, 0.0  ;;  %v5861_v62 = vadd.f32 %v11094_v53, %v5782_v19 }
 0x510   :  { %5992 = vst.msk [vmem:[%s11500_s6 + $0x1f8] sm:$0xff] %vm5928_vm8, %v5927_v46  ;;  %v5925_v32 = vmax.f32 %v5861_v62, 0.0 }
 0x512   :  { %5990 = vst.msk [vmem:[%s11500_s6 + $0x1e8] sm:$0xff] %vm5928_vm8, %v5925_v32 }

</bundles_post_ra>
